<compile_context>
chip_gen: v7x
topology: tpu7x:2x2x1
jax: 0.10.0
libtpu: 0.0.40
codegen_flags: <defaults>
</compile_context>

<pallas_src>
import jax
import jax.numpy as jnp
from jax import lax
from jax.experimental import pallas as pl
from jax.experimental.pallas import tpu as pltpu

# Stand-in for Config.cfg.hyper
N_HIDDEN = 32
N_LAYERS = 2
IN_FEATURES = 53
MID = 128
BN_EPS = 1e-5

_CHUNK = 16  # sublane group size / wavefront chunk for the recurrent loop


def dscovry_kernel(x_ref, w0_ref, s1_ref, t1_ref,
                   w1_ref, s2_ref, t2a_ref,
                   w2_ref, t2b_ref,
                   wih_ref, whh_ref, blstm_ref,
                   out_ref,
                   seq_scr, gates_scr):
    H = N_HIDDEN
    T = seq_scr.shape[0]
    n_chunks = T // _CHUNK

    # ---- MLP frontend: linear -> folded BN -> relu (x3); dropout = identity.
    # Linear biases are folded into the BN shifts (t1/t2a/t2b) at param prep.
    h = jnp.dot(x_ref[...], w0_ref[...], preferred_element_type=jnp.float32)
    h = jnp.maximum(h * s1_ref[...] + t1_ref[...], 0.0)
    h = jnp.dot(h.astype(jnp.bfloat16), w1_ref[...],
                preferred_element_type=jnp.float32)
    h = jnp.maximum(h * s2_ref[...] + t2a_ref[...], 0.0)
    h = jnp.dot(h.astype(jnp.bfloat16), w2_ref[...],
                preferred_element_type=jnp.float32)
    h = jnp.maximum(h * s2_ref[...] + t2b_ref[...], 0.0)
    # TODO(synk): nn.Dropout(0.3) training-mode random masking is not
    # reproduced (identity in eval mode).

    # Loop-invariant LSTM weights, loaded once.
    wih = [wih_ref[l] for l in range(N_LAYERS)]     # (H, 4H) bf16
    whh = [whh_ref[l] for l in range(N_LAYERS)]     # (H, 4H) bf16
    bls = [blstm_ref[l] for l in range(N_LAYERS)]   # (1, 4H) f32

    # Layer-0 input-to-hidden gates for the whole sequence: one MXU-friendly
    # (T, H) @ (H, 4H) matmul, off the serial critical path.
    gates_scr[...] = (
        jnp.dot(h.astype(jnp.bfloat16), wih[0],
                preferred_element_type=jnp.float32) + bls[0])

    def lstm_chunk(g_chunk, whh_l, h_prev, c_prev):
        """_CHUNK serial LSTM steps given precomputed (ih + bias) gates.

        i/f/o pre-activations were pre-scaled by 0.5 in the params, so one
        tanh over the full (1,4H) gate row yields every gate:
          sigmoid(x) = 0.5 * tanh(x/2) + 0.5
        => 2 EUP pushes per step (tanh(gates), tanh(c)); the 0.5*t+0.5 fix-ups
        are free VALU filler.
        """
        rows = []
        for r in range(_CHUNK):                       # static (bounded) unroll
            g = (g_chunk[r:r + 1, :] +
                 jnp.dot(h_prev.astype(jnp.bfloat16), whh_l,
                         preferred_element_type=jnp.float32))
            t = jnp.tanh(g)                           # single full-vreg EUP op
            i = 0.5 * t[:, 0:H] + 0.5
            f = 0.5 * t[:, H:2 * H] + 0.5
            gg = t[:, 2 * H:3 * H]
            o = 0.5 * t[:, 3 * H:4 * H] + 0.5
            c_new = f * c_prev + i * gg
            h_new = o * jnp.tanh(c_new)
            rows.append(h_new)
            h_prev, c_prev = h_new, c_new
        return jnp.concatenate(rows, axis=0), h_prev, c_prev

    def chunk_base(c_idx):
        if isinstance(c_idx, int):
            return c_idx * _CHUNK
        return pl.multiple_of(c_idx * _CHUNK, _CHUNK)

    def run_layer(l, c_idx, h_prev, c_prev):
        base = chunk_base(c_idx)
        if l == 0:
            g_chunk = gates_scr[pl.ds(base, _CHUNK), :]   # one (CHUNK,4H) load
        else:
            x_chunk = seq_scr[pl.ds(base, _CHUNK), :]     # previous layer's out
            g_chunk = (jnp.dot(x_chunk.astype(jnp.bfloat16), wih[l],
                               preferred_element_type=jnp.float32) + bls[l])
        h_rows, h_prev, c_prev = lstm_chunk(g_chunk, whh[l], h_prev, c_prev)
        if l == N_LAYERS - 1:
            out_ref[pl.ds(base, _CHUNK), :] = h_rows      # direct writeback
        else:
            seq_scr[pl.ds(base, _CHUNK), :] = h_rows
        return h_prev, c_prev

    # Wavefront across layers: step s runs layer l on chunk s-l.  Deepest
    # layer first so every seq_scr read precedes this step's producer store.
    def wave(s, carry):
        st = list(carry)
        for l in range(N_LAYERS - 1, -1, -1):
            c_idx = s - l
            if isinstance(c_idx, int) and not (0 <= c_idx < n_chunks):
                continue                                  # static fill/drain skip
            st[2 * l], st[2 * l + 1] = run_layer(
                l, c_idx, st[2 * l], st[2 * l + 1])
        return tuple(st)

    zeros = jnp.zeros((1, H), jnp.float32)
    states = tuple([zeros] * (2 * N_LAYERS))              # (h0,c0,h1,c1,...)

    for s in range(N_LAYERS - 1):                          # pipeline fill (static)
        states = wave(s, states)
    if n_chunks > N_LAYERS - 1:                            # steady state
        states = lax.fori_loop(N_LAYERS - 1, n_chunks, wave, states)
    for s in range(max(N_LAYERS - 1, n_chunks),            # pipeline drain (static)
                   n_chunks + N_LAYERS - 1):
        states = wave(s, states)


def _tile_padded_bytes(shape, dtype):
    """VMEM footprint including (8,128)/(16,128) tile sublane/lane padding."""
    itemsize = jnp.dtype(dtype).itemsize
    shape = tuple(int(d) for d in shape)
    if len(shape) < 2:
        cols = -(-max(shape[-1] if shape else 1, 1) // 128) * 128
        return cols * max(itemsize, 4)
    sub = 8 * max(4 // itemsize, 1)
    lead = 1
    for d in shape[:-2]:
        lead *= d
    rows = -(-shape[-2] // sub) * sub
    cols = -(-shape[-1] // 128) * 128
    return lead * rows * cols * itemsize


def dscovry_block(x, p):
    N = x.shape[0]
    t_pad = -(-N // _CHUNK) * _CHUNK
    if t_pad != N:
        # Trailing pad rows cannot affect earlier timesteps (causal LSTM).
        x = jnp.pad(x, ((0, t_pad - N), (0, 0)))
    # bf16 input: halves HBM->VMEM bytes and lane-padded VMEM footprint
    # (53 lanes pad to 128 regardless); the kernel consumes bf16 anyway.
    x = x.astype(jnp.bfloat16)

    args = (x,
            p["w0"], p["s1"], p["t1"],
            p["w1"], p["s2"], p["t2a"],
            p["w2"], p["t2b"],
            p["wih"], p["whh"], p["blstm"])
    vmem = pl.BlockSpec(memory_space=pltpu.MemorySpace.VMEM)

    # Everything VMEM-resident (gridless, single TensorCore).  Budget includes
    # tile padding (53 and 32 lanes both pad to 128).
    resident = sum(_tile_padded_bytes(a.shape, a.dtype) for a in args)
    resident += _tile_padded_bytes((t_pad, N_HIDDEN), jnp.float32)       # out
    resident += _tile_padded_bytes((t_pad, N_HIDDEN), jnp.float32)       # seq_scr
    resident += _tile_padded_bytes((t_pad, 4 * N_HIDDEN), jnp.float32)   # gates_scr
    # ~two live (t_pad, 128) f32 compiler temps for the MLP intermediates
    temps = 2 * _tile_padded_bytes((t_pad, MID), jnp.float32)
    want = resident + temps + (4 << 20)
    try:
        cap = int(pltpu.get_tpu_info().vmem_capacity_bytes)  # 64 MiB v7x, 128 MiB v5e/v6e
    except Exception:
        cap = 64 << 20
    vmem_limit = int(min(max(want, 16 << 20), cap - (8 << 20)))

    out = pl.pallas_call(
        dscovry_kernel,
        out_shape=jax.ShapeDtypeStruct((t_pad, N_HIDDEN), jnp.float32),
        in_specs=[vmem] * len(args),
        out_specs=vmem,
        scratch_shapes=[pltpu.VMEM((t_pad, N_HIDDEN), jnp.float32),        # inter-layer seq
                        pltpu.VMEM((t_pad, 4 * N_HIDDEN), jnp.float32)],   # layer-0 ih gates
        compiler_params=pltpu.CompilerParams(vmem_limit_bytes=vmem_limit),
    )(*args)
    return out[:N]


def init_params(key):
    ks = jax.random.split(key, 15)

    def uni(k, shape, fan_in):
        bound = 1.0 / (fan_in ** 0.5)
        return jax.random.uniform(k, shape, jnp.float32, -bound, bound)

    # Linear weights pre-transposed to (in, out); biases as (1, out)
    w0 = uni(ks[0], (IN_FEATURES, MID), IN_FEATURES)
    b0 = uni(ks[1], (1, MID), IN_FEATURES)
    w1 = uni(ks[2], (MID, N_HIDDEN), MID)
    b1 = uni(ks[3], (1, N_HIDDEN), MID)
    w2 = uni(ks[4], (N_HIDDEN, N_HIDDEN), N_HIDDEN)
    b2 = uni(ks[5], (1, N_HIDDEN), N_HIDDEN)

    # BatchNorm1d (eval): fold gamma/beta/running stats into scale/shift
    def bn(kg, kb, km, kv, c):
        gamma = jax.random.uniform(kg, (1, c), jnp.float32, 0.5, 1.5)
        beta = jax.random.uniform(kb, (1, c), jnp.float32, -0.1, 0.1)
        mean = jax.random.uniform(km, (1, c), jnp.float32, -0.1, 0.1)
        var = jax.random.uniform(kv, (1, c), jnp.float32, 0.5, 1.5)
        scale = gamma / jnp.sqrt(var + BN_EPS)
        shift = beta - mean * scale
        return scale, shift

    s1, t1 = bn(ks[6], ks[7], ks[8], ks[9], MID)
    s2, t2 = bn(ks[10], ks[11], ks[12], ks[13], N_HIDDEN)

    # Fold the Linear bias into the BN shift:  bn(xW + b) = (xW)*s + (t + b*s)
    t1f = t1 + b0 * s1
    t2a = t2 + b1 * s2
    t2b = t2 + b2 * s2

    # LSTM: PyTorch weight_ih/hh_l{k}: (4H, H), biases (4H,).
    H = N_HIDDEN
    kl = jax.random.split(ks[14], 4 * N_LAYERS)
    bnd = 1.0 / (H ** 0.5)
    # sigmoid(x) = 0.5*(tanh(x/2)+1): pre-scale the i/f/o gate columns by 0.5
    # so the kernel needs a single tanh over the full (1,4H) gate vector.
    # (0.5 is a power of two, so (0.5*w) in bf16 == 0.5 * bf16(w) exactly.)
    gate_scale = jnp.concatenate([jnp.full((2 * H,), 0.5),   # i, f
                                  jnp.ones((H,)),            # g
                                  jnp.full((H,), 0.5)])      # o
    wih_k, whh_k, b_k = [], [], []
    wih_f, whh_f, b_f = [], [], []
    for l in range(N_LAYERS):
        w_ih = jax.random.uniform(kl[4 * l + 0], (4 * H, H), jnp.float32, -bnd, bnd)
        w_hh = jax.random.uniform(kl[4 * l + 1], (4 * H, H), jnp.float32, -bnd, bnd)
        b_ih = jax.random.uniform(kl[4 * l + 2], (4 * H,), jnp.float32, -bnd, bnd)
        b_hh = jax.random.uniform(kl[4 * l + 3], (4 * H,), jnp.float32, -bnd, bnd)
        b = (b_ih + b_hh)[None, :]
        wih_f.append(w_ih.T); whh_f.append(w_hh.T); b_f.append(b)       # (H,4H)/(1,4H)
        wih_k.append(w_ih.T * gate_scale[None, :])
        whh_k.append(w_hh.T * gate_scale[None, :])
        b_k.append(b * gate_scale[None, :])

    return dict(
        # kernel params (MXU weights bf16, i/f/o columns pre-scaled by 0.5)
        w0=w0.astype(jnp.bfloat16), w1=w1.astype(jnp.bfloat16),
        w2=w2.astype(jnp.bfloat16),
        s1=s1, t1=t1f, s2=s2, t2a=t2a, t2b=t2b,
        wih=jnp.stack(wih_k).astype(jnp.bfloat16),
        whh=jnp.stack(whh_k).astype(jnp.bfloat16),
        blstm=jnp.stack(b_k),
        # unscaled f32 copies for the independent reference
        wih_full=jnp.stack(wih_f), whh_full=jnp.stack(whh_f),
        blstm_full=jnp.stack(b_f))


def dscovry_ref(x, p):
    """Pure-JAX eval-mode reference with standard sigmoid gates and the same
    matmul precision (bf16 operands, f32 accumulation) as the kernel."""
    H = N_HIDDEN

    def mm(a, b):
        return jnp.dot(a.astype(jnp.bfloat16), b.astype(jnp.bfloat16),
                       preferred_element_type=jnp.float32)

    h = jnp.maximum(mm(x, p["w0"]) * p["s1"] + p["t1"], 0.0)
    h = jnp.maximum(mm(h, p["w1"]) * p["s2"] + p["t2a"], 0.0)
    h = jnp.maximum(mm(h, p["w2"]) * p["s2"] + p["t2b"], 0.0)
    seq = h
    for l in range(N_LAYERS):
        wih, whh, b = p["wih_full"][l], p["whh_full"][l], p["blstm_full"][l]
        ht = jnp.zeros((1, H), jnp.float32)
        ct = jnp.zeros((1, H), jnp.float32)
        hs = []
        for t in range(seq.shape[0]):
            g = mm(seq[t:t + 1], wih) + mm(ht, whh) + b
            i = jax.nn.sigmoid(g[:, 0:H])
            f = jax.nn.sigmoid(g[:, H:2 * H])
            gg = jnp.tanh(g[:, 2 * H:3 * H])
            o = jax.nn.sigmoid(g[:, 3 * H:4 * H])
            ct = f * ct + i * gg
            ht = o * jnp.tanh(ct)
            hs.append(ht)
        seq = jnp.concatenate(hs, axis=0)
    return seq


if __name__ == "__main__":
    key = jax.random.PRNGKey(0)
    kx, kp = jax.random.split(key)
    params = init_params(kp)

    # N=8 exercises the fill+drain-only path (single chunk, heavy padding);
    # N=40 exercises fill + steady-state wavefront fori + drain + trailing pad.
    for N in (8, 40):
        x = jax.random.normal(jax.random.fold_in(kx, N), (N, IN_FEATURES),
                              jnp.float32)
        out = jax.block_until_ready(dscovry_block(x, params))
        ref = dscovry_ref(x, params)
        assert out.shape == (N, N_HIDDEN)
        err = float(jnp.max(jnp.abs(out - ref)))
        assert jnp.allclose(out, ref, rtol=2e-2, atol=2e-2), (N, err)
    print("KERNEL_OK")
</pallas_src>

<mosaic_0001>
module attributes {stable_mosaic.version = 11 : i64} {
  func.func @dscovry_kernel(%arg0: memref<16x53xbf16, #tpu.memory_space<vmem>>, %arg1: memref<53x128xbf16, #tpu.memory_space<vmem>>, %arg2: memref<1x128xf32, #tpu.memory_space<vmem>>, %arg3: memref<1x128xf32, #tpu.memory_space<vmem>>, %arg4: memref<128x32xbf16, #tpu.memory_space<vmem>>, %arg5: memref<1x32xf32, #tpu.memory_space<vmem>>, %arg6: memref<1x32xf32, #tpu.memory_space<vmem>>, %arg7: memref<32x32xbf16, #tpu.memory_space<vmem>>, %arg8: memref<1x32xf32, #tpu.memory_space<vmem>>, %arg9: memref<2x32x128xbf16, #tpu.memory_space<vmem>>, %arg10: memref<2x32x128xbf16, #tpu.memory_space<vmem>>, %arg11: memref<2x1x128xf32, #tpu.memory_space<vmem>>, %arg12: memref<16x32xf32, #tpu.memory_space<vmem>>, %arg13: memref<16x32xf32, #tpu.memory_space<vmem>>, %arg14: memref<16x128xf32, #tpu.memory_space<vmem>>) attributes {dimension_semantics = [], scalar_prefetch = 0 : i64, scratch_operands = 2 : i64, tpu.core_type = #tpu.core_type<tc>} {
    %c0 = arith.constant 0 : index
    %c0_0 = arith.constant 0 : index
    %0 = vector.load %arg0[%c0, %c0_0] : memref<16x53xbf16, #tpu.memory_space<vmem>>, vector<16x53xbf16>
    %c0_1 = arith.constant 0 : index
    %c0_2 = arith.constant 0 : index
    %1 = vector.load %arg1[%c0_1, %c0_2] : memref<53x128xbf16, #tpu.memory_space<vmem>>, vector<53x128xbf16>
    %cst = arith.constant dense<0.000000e+00> : vector<16x128xf32>
    %2 = tpu.matmul %0, %1, %cst {dimension_numbers = #tpu.dot_dimension_numbers<[1], [0], [0], [1], [0, 0, 1, 1], [], []>} : vector<16x53xbf16>, vector<53x128xbf16>, vector<16x128xf32> -> vector<16x128xf32>
    %c0_3 = arith.constant 0 : index
    %c0_4 = arith.constant 0 : index
    %3 = vector.load %arg2[%c0_3, %c0_4] : memref<1x128xf32, #tpu.memory_space<vmem>>, vector<1x128xf32>
    %4 = vector.broadcast %3 : vector<1x128xf32> to vector<16x128xf32>
    %5 = arith.mulf %2, %4 : vector<16x128xf32>
    %c0_5 = arith.constant 0 : index
    %c0_6 = arith.constant 0 : index
    %6 = vector.load %arg3[%c0_5, %c0_6] : memref<1x128xf32, #tpu.memory_space<vmem>>, vector<1x128xf32>
    %7 = vector.broadcast %6 : vector<1x128xf32> to vector<16x128xf32>
    %8 = arith.addf %5, %7 : vector<16x128xf32>
    %cst_7 = arith.constant 0.000000e+00 : f32
    %9 = vector.broadcast %cst_7 : f32 to vector<16x128xf32>
    %10 = arith.maximumf %8, %9 : vector<16x128xf32>
    %11 = arith.truncf %10 : vector<16x128xf32> to vector<16x128xbf16>
    %c0_8 = arith.constant 0 : index
    %c0_9 = arith.constant 0 : index
    %12 = vector.load %arg4[%c0_8, %c0_9] : memref<128x32xbf16, #tpu.memory_space<vmem>>, vector<128x32xbf16>
    %cst_10 = arith.constant dense<0.000000e+00> : vector<16x32xf32>
    %13 = tpu.matmul %11, %12, %cst_10 {dimension_numbers = #tpu.dot_dimension_numbers<[1], [0], [0], [1], [0, 0, 1, 1], [], []>} : vector<16x128xbf16>, vector<128x32xbf16>, vector<16x32xf32> -> vector<16x32xf32>
    %c0_11 = arith.constant 0 : index
    %c0_12 = arith.constant 0 : index
    %14 = vector.load %arg5[%c0_11, %c0_12] : memref<1x32xf32, #tpu.memory_space<vmem>>, vector<1x32xf32>
    %15 = vector.broadcast %14 : vector<1x32xf32> to vector<16x32xf32>
    %16 = arith.mulf %13, %15 : vector<16x32xf32>
    %c0_13 = arith.constant 0 : index
    %c0_14 = arith.constant 0 : index
    %17 = vector.load %arg6[%c0_13, %c0_14] : memref<1x32xf32, #tpu.memory_space<vmem>>, vector<1x32xf32>
    %18 = vector.broadcast %17 : vector<1x32xf32> to vector<16x32xf32>
    %19 = arith.addf %16, %18 : vector<16x32xf32>
    %cst_15 = arith.constant 0.000000e+00 : f32
    %20 = vector.broadcast %cst_15 : f32 to vector<16x32xf32>
    %21 = arith.maximumf %19, %20 : vector<16x32xf32>
    %22 = arith.truncf %21 : vector<16x32xf32> to vector<16x32xbf16>
    %c0_16 = arith.constant 0 : index
    %c0_17 = arith.constant 0 : index
    %23 = vector.load %arg7[%c0_16, %c0_17] : memref<32x32xbf16, #tpu.memory_space<vmem>>, vector<32x32xbf16>
    %cst_18 = arith.constant dense<0.000000e+00> : vector<16x32xf32>
    %24 = tpu.matmul %22, %23, %cst_18 {dimension_numbers = #tpu.dot_dimension_numbers<[1], [0], [0], [1], [0, 0, 1, 1], [], []>} : vector<16x32xbf16>, vector<32x32xbf16>, vector<16x32xf32> -> vector<16x32xf32>
    %c0_19 = arith.constant 0 : index
    %c0_20 = arith.constant 0 : index
    %25 = vector.load %arg5[%c0_19, %c0_20] : memref<1x32xf32, #tpu.memory_space<vmem>>, vector<1x32xf32>
    %26 = vector.broadcast %25 : vector<1x32xf32> to vector<16x32xf32>
    %27 = arith.mulf %24, %26 : vector<16x32xf32>
    %c0_21 = arith.constant 0 : index
    %c0_22 = arith.constant 0 : index
    %28 = vector.load %arg8[%c0_21, %c0_22] : memref<1x32xf32, #tpu.memory_space<vmem>>, vector<1x32xf32>
    %29 = vector.broadcast %28 : vector<1x32xf32> to vector<16x32xf32>
    %30 = arith.addf %27, %29 : vector<16x32xf32>
    %cst_23 = arith.constant 0.000000e+00 : f32
    %31 = vector.broadcast %cst_23 : f32 to vector<16x32xf32>
    %32 = arith.maximumf %30, %31 : vector<16x32xf32>
    %c0_24 = arith.constant 0 : index
    %c0_25 = arith.constant 0 : index
    %c0_26 = arith.constant 0 : index
    %33 = vector.load %arg9[%c0_24, %c0_25, %c0_26] : memref<2x32x128xbf16, #tpu.memory_space<vmem>>, vector<1x32x128xbf16>
    %34 = vector.shape_cast %33 : vector<1x32x128xbf16> to vector<32x128xbf16>
    %c1 = arith.constant 1 : index
    %c0_27 = arith.constant 0 : index
    %c0_28 = arith.constant 0 : index
    %35 = vector.load %arg9[%c1, %c0_27, %c0_28] : memref<2x32x128xbf16, #tpu.memory_space<vmem>>, vector<1x32x128xbf16>
    %36 = vector.shape_cast %35 : vector<1x32x128xbf16> to vector<32x128xbf16>
    %c0_29 = arith.constant 0 : index
    %c0_30 = arith.constant 0 : index
    %c0_31 = arith.constant 0 : index
    %37 = vector.load %arg10[%c0_29, %c0_30, %c0_31] : memref<2x32x128xbf16, #tpu.memory_space<vmem>>, vector<1x32x128xbf16>
    %38 = vector.shape_cast %37 : vector<1x32x128xbf16> to vector<32x128xbf16>
    %c1_32 = arith.constant 1 : index
    %c0_33 = arith.constant 0 : index
    %c0_34 = arith.constant 0 : index
    %39 = vector.load %arg10[%c1_32, %c0_33, %c0_34] : memref<2x32x128xbf16, #tpu.memory_space<vmem>>, vector<1x32x128xbf16>
    %40 = vector.shape_cast %39 : vector<1x32x128xbf16> to vector<32x128xbf16>
    %c0_35 = arith.constant 0 : index
    %c0_36 = arith.constant 0 : index
    %c0_37 = arith.constant 0 : index
    %41 = vector.load %arg11[%c0_35, %c0_36, %c0_37] : memref<2x1x128xf32, #tpu.memory_space<vmem>>, vector<1x1x128xf32>
    %42 = vector.shape_cast %41 : vector<1x1x128xf32> to vector<1x128xf32>
    %c1_38 = arith.constant 1 : index
    %c0_39 = arith.constant 0 : index
    %c0_40 = arith.constant 0 : index
    %43 = vector.load %arg11[%c1_38, %c0_39, %c0_40] : memref<2x1x128xf32, #tpu.memory_space<vmem>>, vector<1x1x128xf32>
    %44 = vector.shape_cast %43 : vector<1x1x128xf32> to vector<1x128xf32>
    %45 = arith.truncf %32 : vector<16x32xf32> to vector<16x32xbf16>
    %cst_41 = arith.constant dense<0.000000e+00> : vector<16x128xf32>
    %46 = tpu.matmul %45, %34, %cst_41 {dimension_numbers = #tpu.dot_dimension_numbers<[1], [0], [0], [1], [0, 0, 1, 1], [], []>} : vector<16x32xbf16>, vector<32x128xbf16>, vector<16x128xf32> -> vector<16x128xf32>
    %47 = vector.broadcast %42 : vector<1x128xf32> to vector<16x128xf32>
    %48 = arith.addf %46, %47 : vector<16x128xf32>
    %c0_42 = arith.constant 0 : index
    %c0_43 = arith.constant 0 : index
    %49 = vector.load %arg14[%c0_42, %c0_43] : memref<16x128xf32, #tpu.memory_space<vmem>>, vector<16x128xf32>
    tpu.vector_store %arg14[%c0_42, %c0_43], %48 {strides = array<i32>} : memref<16x128xf32, #tpu.memory_space<vmem>>, vector<16x128xf32>,
    %cst_44 = arith.constant 0.000000e+00 : f32
    %50 = vector.broadcast %cst_44 : f32 to vector<1x32xf32>
    %c0_45 = arith.constant 0 : index
    %c0_46 = arith.constant 0 : index
    %51 = vector.load %arg14[%c0_45, %c0_46] : memref<16x128xf32, #tpu.memory_space<vmem>>, vector<16x128xf32>
    %52 = vector.extract_strided_slice %51 {offsets = [0, 0], sizes = [1, 128], strides = [1, 1]} : vector<16x128xf32> to vector<1x128xf32>
    %53 = arith.truncf %50 : vector<1x32xf32> to vector<1x32xbf16>
    %cst_47 = arith.constant dense<0.000000e+00> : vector<1x128xf32>
    %54 = tpu.matmul %53, %38, %cst_47 {dimension_numbers = #tpu.dot_dimension_numbers<[1], [0], [0], [1], [0, 0, 1, 1], [], []>} : vector<1x32xbf16>, vector<32x128xbf16>, vector<1x128xf32> -> vector<1x128xf32>
    %55 = arith.addf %52, %54 : vector<1x128xf32>
    %56 = math.tanh %55 : vector<1x128xf32>
    %57 = vector.extract_strided_slice %56 {offsets = [0, 0], sizes = [1, 32], strides = [1, 1]} : vector<1x128xf32> to vector<1x32xf32>
    %cst_48 = arith.constant 5.000000e-01 : f32
    %58 = vector.broadcast %cst_48 : f32 to vector<1x32xf32>
    %59 = arith.mulf %58, %57 : vector<1x32xf32>
    %cst_49 = arith.constant 5.000000e-01 : f32
    %60 = vector.broadcast %cst_49 : f32 to vector<1x32xf32>
    %61 = arith.addf %59, %60 : vector<1x32xf32>
    %62 = vector.extract_strided_slice %56 {offsets = [0, 32], sizes = [1, 32], strides = [1, 1]} : vector<1x128xf32> to vector<1x32xf32>
    %cst_50 = arith.constant 5.000000e-01 : f32
    %63 = vector.broadcast %cst_50 : f32 to vector<1x32xf32>
    %64 = arith.mulf %63, %62 : vector<1x32xf32>
    %cst_51 = arith.constant 5.000000e-01 : f32
    %65 = vector.broadcast %cst_51 : f32 to vector<1x32xf32>
    %66 = arith.addf %64, %65 : vector<1x32xf32>
    %67 = vector.extract_strided_slice %56 {offsets = [0, 64], sizes = [1, 32], strides = [1, 1]} : vector<1x128xf32> to vector<1x32xf32>
    %68 = vector.extract_strided_slice %56 {offsets = [0, 96], sizes = [1, 32], strides = [1, 1]} : vector<1x128xf32> to vector<1x32xf32>
    %cst_52 = arith.constant 5.000000e-01 : f32
    %69 = vector.broadcast %cst_52 : f32 to vector<1x32xf32>
    %70 = arith.mulf %69, %68 : vector<1x32xf32>
    %cst_53 = arith.constant 5.000000e-01 : f32
    %71 = vector.broadcast %cst_53 : f32 to vector<1x32xf32>
    %72 = arith.addf %70, %71 : vector<1x32xf32>
    %73 = arith.mulf %66, %50 : vector<1x32xf32>
    %74 = arith.mulf %61, %67 : vector<1x32xf32>
    %75 = arith.addf %73, %74 : vector<1x32xf32>
    %76 = math.tanh %75 : vector<1x32xf32>
    %77 = arith.mulf %72, %76 : vector<1x32xf32>
    %78 = vector.extract_strided_slice %51 {offsets = [1, 0], sizes = [1, 128], strides = [1, 1]} : vector<16x128xf32> to vector<1x128xf32>
    %79 = arith.truncf %77 : vector<1x32xf32> to vector<1x32xbf16>
    %cst_54 = arith.constant dense<0.000000e+00> : vector<1x128xf32>
    %80 = tpu.matmul %79, %38, %cst_54 {dimension_numbers = #tpu.dot_dimension_numbers<[1], [0], [0], [1], [0, 0, 1, 1], [], []>} : vector<1x32xbf16>, vector<32x128xbf16>, vector<1x128xf32> -> vector<1x128xf32>
    %81 = arith.addf %78, %80 : vector<1x128xf32>
    %82 = math.tanh %81 : vector<1x128xf32>
    %83 = vector.extract_strided_slice %82 {offsets = [0, 0], sizes = [1, 32], strides = [1, 1]} : vector<1x128xf32> to vector<1x32xf32>
    %cst_55 = arith.constant 5.000000e-01 : f32
    %84 = vector.broadcast %cst_55 : f32 to vector<1x32xf32>
    %85 = arith.mulf %84, %83 : vector<1x32xf32>
    %cst_56 = arith.constant 5.000000e-01 : f32
    %86 = vector.broadcast %cst_56 : f32 to vector<1x32xf32>
    %87 = arith.addf %85, %86 : vector<1x32xf32>
    %88 = vector.extract_strided_slice %82 {offsets = [0, 32], sizes = [1, 32], strides = [1, 1]} : vector<1x128xf32> to vector<1x32xf32>
    %cst_57 = arith.constant 5.000000e-01 : f32
    %89 = vector.broadcast %cst_57 : f32 to vector<1x32xf32>
    %90 = arith.mulf %89, %88 : vector<1x32xf32>
    %cst_58 = arith.constant 5.000000e-01 : f32
    %91 = vector.broadcast %cst_58 : f32 to vector<1x32xf32>
    %92 = arith.addf %90, %91 : vector<1x32xf32>
    %93 = vector.extract_strided_slice %82 {offsets = [0, 64], sizes = [1, 32], strides = [1, 1]} : vector<1x128xf32> to vector<1x32xf32>
    %94 = vector.extract_strided_slice %82 {offsets = [0, 96], sizes = [1, 32], strides = [1, 1]} : vector<1x128xf32> to vector<1x32xf32>
    %cst_59 = arith.constant 5.000000e-01 : f32
    %95 = vector.broadcast %cst_59 : f32 to vector<1x32xf32>
    %96 = arith.mulf %95, %94 : vector<1x32xf32>
    %cst_60 = arith.constant 5.000000e-01 : f32
    %97 = vector.broadcast %cst_60 : f32 to vector<1x32xf32>
    %98 = arith.addf %96, %97 : vector<1x32xf32>
    %99 = arith.mulf %92, %75 : vector<1x32xf32>
    %100 = arith.mulf %87, %93 : vector<1x32xf32>
    %101 = arith.addf %99, %100 : vector<1x32xf32>
    %102 = math.tanh %101 : vector<1x32xf32>
    %103 = arith.mulf %98, %102 : vector<1x32xf32>
    %104 = vector.extract_strided_slice %51 {offsets = [2, 0], sizes = [1, 128], strides = [1, 1]} : vector<16x128xf32> to vector<1x128xf32>
    %105 = arith.truncf %103 : vector<1x32xf32> to vector<1x32xbf16>
    %cst_61 = arith.constant dense<0.000000e+00> : vector<1x128xf32>
    %106 = tpu.matmul %105, %38, %cst_61 {dimension_numbers = #tpu.dot_dimension_numbers<[1], [0], [0], [1], [0, 0, 1, 1], [], []>} : vector<1x32xbf16>, vector<32x128xbf16>, vector<1x128xf32> -> vector<1x128xf32>
    %107 = arith.addf %104, %106 : vector<1x128xf32>
    %108 = math.tanh %107 : vector<1x128xf32>
    %109 = vector.extract_strided_slice %108 {offsets = [0, 0], sizes = [1, 32], strides = [1, 1]} : vector<1x128xf32> to vector<1x32xf32>
    %cst_62 = arith.constant 5.000000e-01 : f32
    %110 = vector.broadcast %cst_62 : f32 to vector<1x32xf32>
    %111 = arith.mulf %110, %109 : vector<1x32xf32>
    %cst_63 = arith.constant 5.000000e-01 : f32
    %112 = vector.broadcast %cst_63 : f32 to vector<1x32xf32>
    %113 = arith.addf %111, %112 : vector<1x32xf32>
    %114 = vector.extract_strided_slice %108 {offsets = [0, 32], sizes = [1, 32], strides = [1, 1]} : vector<1x128xf32> to vector<1x32xf32>
    %cst_64 = arith.constant 5.000000e-01 : f32
    %115 = vector.broadcast %cst_64 : f32 to vector<1x32xf32>
    %116 = arith.mulf %115, %114 : vector<1x32xf32>
    %cst_65 = arith.constant 5.000000e-01 : f32
    %117 = vector.broadcast %cst_65 : f32 to vector<1x32xf32>
    %118 = arith.addf %116, %117 : vector<1x32xf32>
    %119 = vector.extract_strided_slice %108 {offsets = [0, 64], sizes = [1, 32], strides = [1, 1]} : vector<1x128xf32> to vector<1x32xf32>
    %120 = vector.extract_strided_slice %108 {offsets = [0, 96], sizes = [1, 32], strides = [1, 1]} : vector<1x128xf32> to vector<1x32xf32>
    %cst_66 = arith.constant 5.000000e-01 : f32
    %121 = vector.broadcast %cst_66 : f32 to vector<1x32xf32>
    %122 = arith.mulf %121, %120 : vector<1x32xf32>
    %cst_67 = arith.constant 5.000000e-01 : f32
    %123 = vector.broadcast %cst_67 : f32 to vector<1x32xf32>
    %124 = arith.addf %122, %123 : vector<1x32xf32>
    %125 = arith.mulf %118, %101 : vector<1x32xf32>
    %126 = arith.mulf %113, %119 : vector<1x32xf32>
    %127 = arith.addf %125, %126 : vector<1x32xf32>
    %128 = math.tanh %127 : vector<1x32xf32>
    %129 = arith.mulf %124, %128 : vector<1x32xf32>
    %130 = vector.extract_strided_slice %51 {offsets = [3, 0], sizes = [1, 128], strides = [1, 1]} : vector<16x128xf32> to vector<1x128xf32>
    %131 = arith.truncf %129 : vector<1x32xf32> to vector<1x32xbf16>
    %cst_68 = arith.constant dense<0.000000e+00> : vector<1x128xf32>
    %132 = tpu.matmul %131, %38, %cst_68 {dimension_numbers = #tpu.dot_dimension_numbers<[1], [0], [0], [1], [0, 0, 1, 1], [], []>} : vector<1x32xbf16>, vector<32x128xbf16>, vector<1x128xf32> -> vector<1x128xf32>
    %133 = arith.addf %130, %132 : vector<1x128xf32>
    %134 = math.tanh %133 : vector<1x128xf32>
    %135 = vector.extract_strided_slice %134 {offsets = [0, 0], sizes = [1, 32], strides = [1, 1]} : vector<1x128xf32> to vector<1x32xf32>
    %cst_69 = arith.constant 5.000000e-01 : f32
    %136 = vector.broadcast %cst_69 : f32 to vector<1x32xf32>
    %137 = arith.mulf %136, %135 : vector<1x32xf32>
    %cst_70 = arith.constant 5.000000e-01 : f32
    %138 = vector.broadcast %cst_70 : f32 to vector<1x32xf32>
    %139 = arith.addf %137, %138 : vector<1x32xf32>
    %140 = vector.extract_strided_slice %134 {offsets = [0, 32], sizes = [1, 32], strides = [1, 1]} : vector<1x128xf32> to vector<1x32xf32>
    %cst_71 = arith.constant 5.000000e-01 : f32
    %141 = vector.broadcast %cst_71 : f32 to vector<1x32xf32>
    %142 = arith.mulf %141, %140 : vector<1x32xf32>
    %cst_72 = arith.constant 5.000000e-01 : f32
    %143 = vector.broadcast %cst_72 : f32 to vector<1x32xf32>
    %144 = arith.addf %142, %143 : vector<1x32xf32>
    %145 = vector.extract_strided_slice %134 {offsets = [0, 64], sizes = [1, 32], strides = [1, 1]} : vector<1x128xf32> to vector<1x32xf32>
    %146 = vector.extract_strided_slice %134 {offsets = [0, 96], sizes = [1, 32], strides = [1, 1]} : vector<1x128xf32> to vector<1x32xf32>
    %cst_73 = arith.constant 5.000000e-01 : f32
    %147 = vector.broadcast %cst_73 : f32 to vector<1x32xf32>
    %148 = arith.mulf %147, %146 : vector<1x32xf32>
    %cst_74 = arith.constant 5.000000e-01 : f32
    %149 = vector.broadcast %cst_74 : f32 to vector<1x32xf32>
    %150 = arith.addf %148, %149 : vector<1x32xf32>
    %151 = arith.mulf %144, %127 : vector<1x32xf32>
    %152 = arith.mulf %139, %145 : vector<1x32xf32>
    %153 = arith.addf %151, %152 : vector<1x32xf32>
    %154 = math.tanh %153 : vector<1x32xf32>
    %155 = arith.mulf %150, %154 : vector<1x32xf32>
    %156 = vector.extract_strided_slice %51 {offsets = [4, 0], sizes = [1, 128], strides = [1, 1]} : vector<16x128xf32> to vector<1x128xf32>
    %157 = arith.truncf %155 : vector<1x32xf32> to vector<1x32xbf16>
    %cst_75 = arith.constant dense<0.000000e+00> : vector<1x128xf32>
    %158 = tpu.matmul %157, %38, %cst_75 {dimension_numbers = #tpu.dot_dimension_numbers<[1], [0], [0], [1], [0, 0, 1, 1], [], []>} : vector<1x32xbf16>, vector<32x128xbf16>, vector<1x128xf32> -> vector<1x128xf32>
    %159 = arith.addf %156, %158 : vector<1x128xf32>
    %160 = math.tanh %159 : vector<1x128xf32>
    %161 = vector.extract_strided_slice %160 {offsets = [0, 0], sizes = [1, 32], strides = [1, 1]} : vector<1x128xf32> to vector<1x32xf32>
    %cst_76 = arith.constant 5.000000e-01 : f32
    %162 = vector.broadcast %cst_76 : f32 to vector<1x32xf32>
    %163 = arith.mulf %162, %161 : vector<1x32xf32>
    %cst_77 = arith.constant 5.000000e-01 : f32
    %164 = vector.broadcast %cst_77 : f32 to vector<1x32xf32>
    %165 = arith.addf %163, %164 : vector<1x32xf32>
    %166 = vector.extract_strided_slice %160 {offsets = [0, 32], sizes = [1, 32], strides = [1, 1]} : vector<1x128xf32> to vector<1x32xf32>
    %cst_78 = arith.constant 5.000000e-01 : f32
    %167 = vector.broadcast %cst_78 : f32 to vector<1x32xf32>
    %168 = arith.mulf %167, %166 : vector<1x32xf32>
    %cst_79 = arith.constant 5.000000e-01 : f32
    %169 = vector.broadcast %cst_79 : f32 to vector<1x32xf32>
    %170 = arith.addf %168, %169 : vector<1x32xf32>
    %171 = vector.extract_strided_slice %160 {offsets = [0, 64], sizes = [1, 32], strides = [1, 1]} : vector<1x128xf32> to vector<1x32xf32>
    %172 = vector.extract_strided_slice %160 {offsets = [0, 96], sizes = [1, 32], strides = [1, 1]} : vector<1x128xf32> to vector<1x32xf32>
    %cst_80 = arith.constant 5.000000e-01 : f32
    %173 = vector.broadcast %cst_80 : f32 to vector<1x32xf32>
    %174 = arith.mulf %173, %172 : vector<1x32xf32>
    %cst_81 = arith.constant 5.000000e-01 : f32
    %175 = vector.broadcast %cst_81 : f32 to vector<1x32xf32>
    %176 = arith.addf %174, %175 : vector<1x32xf32>
    %177 = arith.mulf %170, %153 : vector<1x32xf32>
    %178 = arith.mulf %165, %171 : vector<1x32xf32>
    %179 = arith.addf %177, %178 : vector<1x32xf32>
    %180 = math.tanh %179 : vector<1x32xf32>
    %181 = arith.mulf %176, %180 : vector<1x32xf32>
    %182 = vector.extract_strided_slice %51 {offsets = [5, 0], sizes = [1, 128], strides = [1, 1]} : vector<16x128xf32> to vector<1x128xf32>
    %183 = arith.truncf %181 : vector<1x32xf32> to vector<1x32xbf16>
    %cst_82 = arith.constant dense<0.000000e+00> : vector<1x128xf32>
    %184 = tpu.matmul %183, %38, %cst_82 {dimension_numbers = #tpu.dot_dimension_numbers<[1], [0], [0], [1], [0, 0, 1, 1], [], []>} : vector<1x32xbf16>, vector<32x128xbf16>, vector<1x128xf32> -> vector<1x128xf32>
    %185 = arith.addf %182, %184 : vector<1x128xf32>
    %186 = math.tanh %185 : vector<1x128xf32>
    %187 = vector.extract_strided_slice %186 {offsets = [0, 0], sizes = [1, 32], strides = [1, 1]} : vector<1x128xf32> to vector<1x32xf32>
    %cst_83 = arith.constant 5.000000e-01 : f32
    %188 = vector.broadcast %cst_83 : f32 to vector<1x32xf32>
    %189 = arith.mulf %188, %187 : vector<1x32xf32>
    %cst_84 = arith.constant 5.000000e-01 : f32
    %190 = vector.broadcast %cst_84 : f32 to vector<1x32xf32>
    %191 = arith.addf %189, %190 : vector<1x32xf32>
    %192 = vector.extract_strided_slice %186 {offsets = [0, 32], sizes = [1, 32], strides = [1, 1]} : vector<1x128xf32> to vector<1x32xf32>
    %cst_85 = arith.constant 5.000000e-01 : f32
    %193 = vector.broadcast %cst_85 : f32 to vector<1x32xf32>
    %194 = arith.mulf %193, %192 : vector<1x32xf32>
    %cst_86 = arith.constant 5.000000e-01 : f32
    %195 = vector.broadcast %cst_86 : f32 to vector<1x32xf32>
    %196 = arith.addf %194, %195 : vector<1x32xf32>
    %197 = vector.extract_strided_slice %186 {offsets = [0, 64], sizes = [1, 32], strides = [1, 1]} : vector<1x128xf32> to vector<1x32xf32>
    %198 = vector.extract_strided_slice %186 {offsets = [0, 96], sizes = [1, 32], strides = [1, 1]} : vector<1x128xf32> to vector<1x32xf32>
    %cst_87 = arith.constant 5.000000e-01 : f32
    %199 = vector.broadcast %cst_87 : f32 to vector<1x32xf32>
    %200 = arith.mulf %199, %198 : vector<1x32xf32>
    %cst_88 = arith.constant 5.000000e-01 : f32
    %201 = vector.broadcast %cst_88 : f32 to vector<1x32xf32>
    %202 = arith.addf %200, %201 : vector<1x32xf32>
    %203 = arith.mulf %196, %179 : vector<1x32xf32>
    %204 = arith.mulf %191, %197 : vector<1x32xf32>
    %205 = arith.addf %203, %204 : vector<1x32xf32>
    %206 = math.tanh %205 : vector<1x32xf32>
    %207 = arith.mulf %202, %206 : vector<1x32xf32>
    %208 = vector.extract_strided_slice %51 {offsets = [6, 0], sizes = [1, 128], strides = [1, 1]} : vector<16x128xf32> to vector<1x128xf32>
    %209 = arith.truncf %207 : vector<1x32xf32> to vector<1x32xbf16>
    %cst_89 = arith.constant dense<0.000000e+00> : vector<1x128xf32>
    %210 = tpu.matmul %209, %38, %cst_89 {dimension_numbers = #tpu.dot_dimension_numbers<[1], [0], [0], [1], [0, 0, 1, 1], [], []>} : vector<1x32xbf16>, vector<32x128xbf16>, vector<1x128xf32> -> vector<1x128xf32>
    %211 = arith.addf %208, %210 : vector<1x128xf32>
    %212 = math.tanh %211 : vector<1x128xf32>
    %213 = vector.extract_strided_slice %212 {offsets = [0, 0], sizes = [1, 32], strides = [1, 1]} : vector<1x128xf32> to vector<1x32xf32>
    %cst_90 = arith.constant 5.000000e-01 : f32
    %214 = vector.broadcast %cst_90 : f32 to vector<1x32xf32>
    %215 = arith.mulf %214, %213 : vector<1x32xf32>
    %cst_91 = arith.constant 5.000000e-01 : f32
    %216 = vector.broadcast %cst_91 : f32 to vector<1x32xf32>
    %217 = arith.addf %215, %216 : vector<1x32xf32>
    %218 = vector.extract_strided_slice %212 {offsets = [0, 32], sizes = [1, 32], strides = [1, 1]} : vector<1x128xf32> to vector<1x32xf32>
    %cst_92 = arith.constant 5.000000e-01 : f32
    %219 = vector.broadcast %cst_92 : f32 to vector<1x32xf32>
    %220 = arith.mulf %219, %218 : vector<1x32xf32>
    %cst_93 = arith.constant 5.000000e-01 : f32
    %221 = vector.broadcast %cst_93 : f32 to vector<1x32xf32>
    %222 = arith.addf %220, %221 : vector<1x32xf32>
    %223 = vector.extract_strided_slice %212 {offsets = [0, 64], sizes = [1, 32], strides = [1, 1]} : vector<1x128xf32> to vector<1x32xf32>
    %224 = vector.extract_strided_slice %212 {offsets = [0, 96], sizes = [1, 32], strides = [1, 1]} : vector<1x128xf32> to vector<1x32xf32>
    %cst_94 = arith.constant 5.000000e-01 : f32
    %225 = vector.broadcast %cst_94 : f32 to vector<1x32xf32>
    %226 = arith.mulf %225, %224 : vector<1x32xf32>
    %cst_95 = arith.constant 5.000000e-01 : f32
    %227 = vector.broadcast %cst_95 : f32 to vector<1x32xf32>
    %228 = arith.addf %226, %227 : vector<1x32xf32>
    %229 = arith.mulf %222, %205 : vector<1x32xf32>
    %230 = arith.mulf %217, %223 : vector<1x32xf32>
    %231 = arith.addf %229, %230 : vector<1x32xf32>
    %232 = math.tanh %231 : vector<1x32xf32>
    %233 = arith.mulf %228, %232 : vector<1x32xf32>
    %234 = vector.extract_strided_slice %51 {offsets = [7, 0], sizes = [1, 128], strides = [1, 1]} : vector<16x128xf32> to vector<1x128xf32>
    %235 = arith.truncf %233 : vector<1x32xf32> to vector<1x32xbf16>
    %cst_96 = arith.constant dense<0.000000e+00> : vector<1x128xf32>
    %236 = tpu.matmul %235, %38, %cst_96 {dimension_numbers = #tpu.dot_dimension_numbers<[1], [0], [0], [1], [0, 0, 1, 1], [], []>} : vector<1x32xbf16>, vector<32x128xbf16>, vector<1x128xf32> -> vector<1x128xf32>
    %237 = arith.addf %234, %236 : vector<1x128xf32>
    %238 = math.tanh %237 : vector<1x128xf32>
    %239 = vector.extract_strided_slice %238 {offsets = [0, 0], sizes = [1, 32], strides = [1, 1]} : vector<1x128xf32> to vector<1x32xf32>
    %cst_97 = arith.constant 5.000000e-01 : f32
    %240 = vector.broadcast %cst_97 : f32 to vector<1x32xf32>
    %241 = arith.mulf %240, %239 : vector<1x32xf32>
    %cst_98 = arith.constant 5.000000e-01 : f32
    %242 = vector.broadcast %cst_98 : f32 to vector<1x32xf32>
    %243 = arith.addf %241, %242 : vector<1x32xf32>
    %244 = vector.extract_strided_slice %238 {offsets = [0, 32], sizes = [1, 32], strides = [1, 1]} : vector<1x128xf32> to vector<1x32xf32>
    %cst_99 = arith.constant 5.000000e-01 : f32
    %245 = vector.broadcast %cst_99 : f32 to vector<1x32xf32>
    %246 = arith.mulf %245, %244 : vector<1x32xf32>
    %cst_100 = arith.constant 5.000000e-01 : f32
    %247 = vector.broadcast %cst_100 : f32 to vector<1x32xf32>
    %248 = arith.addf %246, %247 : vector<1x32xf32>
    %249 = vector.extract_strided_slice %238 {offsets = [0, 64], sizes = [1, 32], strides = [1, 1]} : vector<1x128xf32> to vector<1x32xf32>
    %250 = vector.extract_strided_slice %238 {offsets = [0, 96], sizes = [1, 32], strides = [1, 1]} : vector<1x128xf32> to vector<1x32xf32>
    %cst_101 = arith.constant 5.000000e-01 : f32
    %251 = vector.broadcast %cst_101 : f32 to vector<1x32xf32>
    %252 = arith.mulf %251, %250 : vector<1x32xf32>
    %cst_102 = arith.constant 5.000000e-01 : f32
    %253 = vector.broadcast %cst_102 : f32 to vector<1x32xf32>
    %254 = arith.addf %252, %253 : vector<1x32xf32>
    %255 = arith.mulf %248, %231 : vector<1x32xf32>
    %256 = arith.mulf %243, %249 : vector<1x32xf32>
    %257 = arith.addf %255, %256 : vector<1x32xf32>
    %258 = math.tanh %257 : vector<1x32xf32>
    %259 = arith.mulf %254, %258 : vector<1x32xf32>
    %260 = vector.extract_strided_slice %51 {offsets = [8, 0], sizes = [1, 128], strides = [1, 1]} : vector<16x128xf32> to vector<1x128xf32>
    %261 = arith.truncf %259 : vector<1x32xf32> to vector<1x32xbf16>
    %cst_103 = arith.constant dense<0.000000e+00> : vector<1x128xf32>
    %262 = tpu.matmul %261, %38, %cst_103 {dimension_numbers = #tpu.dot_dimension_numbers<[1], [0], [0], [1], [0, 0, 1, 1], [], []>} : vector<1x32xbf16>, vector<32x128xbf16>, vector<1x128xf32> -> vector<1x128xf32>
    %263 = arith.addf %260, %262 : vector<1x128xf32>
    %264 = math.tanh %263 : vector<1x128xf32>
    %265 = vector.extract_strided_slice %264 {offsets = [0, 0], sizes = [1, 32], strides = [1, 1]} : vector<1x128xf32> to vector<1x32xf32>
    %cst_104 = arith.constant 5.000000e-01 : f32
    %266 = vector.broadcast %cst_104 : f32 to vector<1x32xf32>
    %267 = arith.mulf %266, %265 : vector<1x32xf32>
    %cst_105 = arith.constant 5.000000e-01 : f32
    %268 = vector.broadcast %cst_105 : f32 to vector<1x32xf32>
    %269 = arith.addf %267, %268 : vector<1x32xf32>
    %270 = vector.extract_strided_slice %264 {offsets = [0, 32], sizes = [1, 32], strides = [1, 1]} : vector<1x128xf32> to vector<1x32xf32>
    %cst_106 = arith.constant 5.000000e-01 : f32
    %271 = vector.broadcast %cst_106 : f32 to vector<1x32xf32>
    %272 = arith.mulf %271, %270 : vector<1x32xf32>
    %cst_107 = arith.constant 5.000000e-01 : f32
    %273 = vector.broadcast %cst_107 : f32 to vector<1x32xf32>
    %274 = arith.addf %272, %273 : vector<1x32xf32>
    %275 = vector.extract_strided_slice %264 {offsets = [0, 64], sizes = [1, 32], strides = [1, 1]} : vector<1x128xf32> to vector<1x32xf32>
    %276 = vector.extract_strided_slice %264 {offsets = [0, 96], sizes = [1, 32], strides = [1, 1]} : vector<1x128xf32> to vector<1x32xf32>
    %cst_108 = arith.constant 5.000000e-01 : f32
    %277 = vector.broadcast %cst_108 : f32 to vector<1x32xf32>
    %278 = arith.mulf %277, %276 : vector<1x32xf32>
    %cst_109 = arith.constant 5.000000e-01 : f32
    %279 = vector.broadcast %cst_109 : f32 to vector<1x32xf32>
    %280 = arith.addf %278, %279 : vector<1x32xf32>
    %281 = arith.mulf %274, %257 : vector<1x32xf32>
    %282 = arith.mulf %269, %275 : vector<1x32xf32>
    %283 = arith.addf %281, %282 : vector<1x32xf32>
    %284 = math.tanh %283 : vector<1x32xf32>
    %285 = arith.mulf %280, %284 : vector<1x32xf32>
    %286 = vector.extract_strided_slice %51 {offsets = [9, 0], sizes = [1, 128], strides = [1, 1]} : vector<16x128xf32> to vector<1x128xf32>
    %287 = arith.truncf %285 : vector<1x32xf32> to vector<1x32xbf16>
    %cst_110 = arith.constant dense<0.000000e+00> : vector<1x128xf32>
    %288 = tpu.matmul %287, %38, %cst_110 {dimension_numbers = #tpu.dot_dimension_numbers<[1], [0], [0], [1], [0, 0, 1, 1], [], []>} : vector<1x32xbf16>, vector<32x128xbf16>, vector<1x128xf32> -> vector<1x128xf32>
    %289 = arith.addf %286, %288 : vector<1x128xf32>
    %290 = math.tanh %289 : vector<1x128xf32>
    %291 = vector.extract_strided_slice %290 {offsets = [0, 0], sizes = [1, 32], strides = [1, 1]} : vector<1x128xf32> to vector<1x32xf32>
    %cst_111 = arith.constant 5.000000e-01 : f32
    %292 = vector.broadcast %cst_111 : f32 to vector<1x32xf32>
    %293 = arith.mulf %292, %291 : vector<1x32xf32>
    %cst_112 = arith.constant 5.000000e-01 : f32
    %294 = vector.broadcast %cst_112 : f32 to vector<1x32xf32>
    %295 = arith.addf %293, %294 : vector<1x32xf32>
    %296 = vector.extract_strided_slice %290 {offsets = [0, 32], sizes = [1, 32], strides = [1, 1]} : vector<1x128xf32> to vector<1x32xf32>
    %cst_113 = arith.constant 5.000000e-01 : f32
    %297 = vector.broadcast %cst_113 : f32 to vector<1x32xf32>
    %298 = arith.mulf %297, %296 : vector<1x32xf32>
    %cst_114 = arith.constant 5.000000e-01 : f32
    %299 = vector.broadcast %cst_114 : f32 to vector<1x32xf32>
    %300 = arith.addf %298, %299 : vector<1x32xf32>
    %301 = vector.extract_strided_slice %290 {offsets = [0, 64], sizes = [1, 32], strides = [1, 1]} : vector<1x128xf32> to vector<1x32xf32>
    %302 = vector.extract_strided_slice %290 {offsets = [0, 96], sizes = [1, 32], strides = [1, 1]} : vector<1x128xf32> to vector<1x32xf32>
    %cst_115 = arith.constant 5.000000e-01 : f32
    %303 = vector.broadcast %cst_115 : f32 to vector<1x32xf32>
    %304 = arith.mulf %303, %302 : vector<1x32xf32>
    %cst_116 = arith.constant 5.000000e-01 : f32
    %305 = vector.broadcast %cst_116 : f32 to vector<1x32xf32>
    %306 = arith.addf %304, %305 : vector<1x32xf32>
    %307 = arith.mulf %300, %283 : vector<1x32xf32>
    %308 = arith.mulf %295, %301 : vector<1x32xf32>
    %309 = arith.addf %307, %308 : vector<1x32xf32>
    %310 = math.tanh %309 : vector<1x32xf32>
    %311 = arith.mulf %306, %310 : vector<1x32xf32>
    %312 = vector.extract_strided_slice %51 {offsets = [10, 0], sizes = [1, 128], strides = [1, 1]} : vector<16x128xf32> to vector<1x128xf32>
    %313 = arith.truncf %311 : vector<1x32xf32> to vector<1x32xbf16>
    %cst_117 = arith.constant dense<0.000000e+00> : vector<1x128xf32>
    %314 = tpu.matmul %313, %38, %cst_117 {dimension_numbers = #tpu.dot_dimension_numbers<[1], [0], [0], [1], [0, 0, 1, 1], [], []>} : vector<1x32xbf16>, vector<32x128xbf16>, vector<1x128xf32> -> vector<1x128xf32>
    %315 = arith.addf %312, %314 : vector<1x128xf32>
    %316 = math.tanh %315 : vector<1x128xf32>
    %317 = vector.extract_strided_slice %316 {offsets = [0, 0], sizes = [1, 32], strides = [1, 1]} : vector<1x128xf32> to vector<1x32xf32>
    %cst_118 = arith.constant 5.000000e-01 : f32
    %318 = vector.broadcast %cst_118 : f32 to vector<1x32xf32>
    %319 = arith.mulf %318, %317 : vector<1x32xf32>
    %cst_119 = arith.constant 5.000000e-01 : f32
    %320 = vector.broadcast %cst_119 : f32 to vector<1x32xf32>
    %321 = arith.addf %319, %320 : vector<1x32xf32>
    %322 = vector.extract_strided_slice %316 {offsets = [0, 32], sizes = [1, 32], strides = [1, 1]} : vector<1x128xf32> to vector<1x32xf32>
    %cst_120 = arith.constant 5.000000e-01 : f32
    %323 = vector.broadcast %cst_120 : f32 to vector<1x32xf32>
    %324 = arith.mulf %323, %322 : vector<1x32xf32>
    %cst_121 = arith.constant 5.000000e-01 : f32
    %325 = vector.broadcast %cst_121 : f32 to vector<1x32xf32>
    %326 = arith.addf %324, %325 : vector<1x32xf32>
    %327 = vector.extract_strided_slice %316 {offsets = [0, 64], sizes = [1, 32], strides = [1, 1]} : vector<1x128xf32> to vector<1x32xf32>
    %328 = vector.extract_strided_slice %316 {offsets = [0, 96], sizes = [1, 32], strides = [1, 1]} : vector<1x128xf32> to vector<1x32xf32>
    %cst_122 = arith.constant 5.000000e-01 : f32
    %329 = vector.broadcast %cst_122 : f32 to vector<1x32xf32>
    %330 = arith.mulf %329, %328 : vector<1x32xf32>
    %cst_123 = arith.constant 5.000000e-01 : f32
    %331 = vector.broadcast %cst_123 : f32 to vector<1x32xf32>
    %332 = arith.addf %330, %331 : vector<1x32xf32>
    %333 = arith.mulf %326, %309 : vector<1x32xf32>
    %334 = arith.mulf %321, %327 : vector<1x32xf32>
    %335 = arith.addf %333, %334 : vector<1x32xf32>
    %336 = math.tanh %335 : vector<1x32xf32>
    %337 = arith.mulf %332, %336 : vector<1x32xf32>
    %338 = vector.extract_strided_slice %51 {offsets = [11, 0], sizes = [1, 128], strides = [1, 1]} : vector<16x128xf32> to vector<1x128xf32>
    %339 = arith.truncf %337 : vector<1x32xf32> to vector<1x32xbf16>
    %cst_124 = arith.constant dense<0.000000e+00> : vector<1x128xf32>
    %340 = tpu.matmul %339, %38, %cst_124 {dimension_numbers = #tpu.dot_dimension_numbers<[1], [0], [0], [1], [0, 0, 1, 1], [], []>} : vector<1x32xbf16>, vector<32x128xbf16>, vector<1x128xf32> -> vector<1x128xf32>
    %341 = arith.addf %338, %340 : vector<1x128xf32>
    %342 = math.tanh %341 : vector<1x128xf32>
    %343 = vector.extract_strided_slice %342 {offsets = [0, 0], sizes = [1, 32], strides = [1, 1]} : vector<1x128xf32> to vector<1x32xf32>
    %cst_125 = arith.constant 5.000000e-01 : f32
    %344 = vector.broadcast %cst_125 : f32 to vector<1x32xf32>
    %345 = arith.mulf %344, %343 : vector<1x32xf32>
    %cst_126 = arith.constant 5.000000e-01 : f32
    %346 = vector.broadcast %cst_126 : f32 to vector<1x32xf32>
    %347 = arith.addf %345, %346 : vector<1x32xf32>
    %348 = vector.extract_strided_slice %342 {offsets = [0, 32], sizes = [1, 32], strides = [1, 1]} : vector<1x128xf32> to vector<1x32xf32>
    %cst_127 = arith.constant 5.000000e-01 : f32
    %349 = vector.broadcast %cst_127 : f32 to vector<1x32xf32>
    %350 = arith.mulf %349, %348 : vector<1x32xf32>
    %cst_128 = arith.constant 5.000000e-01 : f32
    %351 = vector.broadcast %cst_128 : f32 to vector<1x32xf32>
    %352 = arith.addf %350, %351 : vector<1x32xf32>
    %353 = vector.extract_strided_slice %342 {offsets = [0, 64], sizes = [1, 32], strides = [1, 1]} : vector<1x128xf32> to vector<1x32xf32>
    %354 = vector.extract_strided_slice %342 {offsets = [0, 96], sizes = [1, 32], strides = [1, 1]} : vector<1x128xf32> to vector<1x32xf32>
    %cst_129 = arith.constant 5.000000e-01 : f32
    %355 = vector.broadcast %cst_129 : f32 to vector<1x32xf32>
    %356 = arith.mulf %355, %354 : vector<1x32xf32>
    %cst_130 = arith.constant 5.000000e-01 : f32
    %357 = vector.broadcast %cst_130 : f32 to vector<1x32xf32>
    %358 = arith.addf %356, %357 : vector<1x32xf32>
    %359 = arith.mulf %352, %335 : vector<1x32xf32>
    %360 = arith.mulf %347, %353 : vector<1x32xf32>
    %361 = arith.addf %359, %360 : vector<1x32xf32>
    %362 = math.tanh %361 : vector<1x32xf32>
    %363 = arith.mulf %358, %362 : vector<1x32xf32>
    %364 = vector.extract_strided_slice %51 {offsets = [12, 0], sizes = [1, 128], strides = [1, 1]} : vector<16x128xf32> to vector<1x128xf32>
    %365 = arith.truncf %363 : vector<1x32xf32> to vector<1x32xbf16>
    %cst_131 = arith.constant dense<0.000000e+00> : vector<1x128xf32>
    %366 = tpu.matmul %365, %38, %cst_131 {dimension_numbers = #tpu.dot_dimension_numbers<[1], [0], [0], [1], [0, 0, 1, 1], [], []>} : vector<1x32xbf16>, vector<32x128xbf16>, vector<1x128xf32> -> vector<1x128xf32>
    %367 = arith.addf %364, %366 : vector<1x128xf32>
    %368 = math.tanh %367 : vector<1x128xf32>
    %369 = vector.extract_strided_slice %368 {offsets = [0, 0], sizes = [1, 32], strides = [1, 1]} : vector<1x128xf32> to vector<1x32xf32>
    %cst_132 = arith.constant 5.000000e-01 : f32
    %370 = vector.broadcast %cst_132 : f32 to vector<1x32xf32>
    %371 = arith.mulf %370, %369 : vector<1x32xf32>
    %cst_133 = arith.constant 5.000000e-01 : f32
    %372 = vector.broadcast %cst_133 : f32 to vector<1x32xf32>
    %373 = arith.addf %371, %372 : vector<1x32xf32>
    %374 = vector.extract_strided_slice %368 {offsets = [0, 32], sizes = [1, 32], strides = [1, 1]} : vector<1x128xf32> to vector<1x32xf32>
    %cst_134 = arith.constant 5.000000e-01 : f32
    %375 = vector.broadcast %cst_134 : f32 to vector<1x32xf32>
    %376 = arith.mulf %375, %374 : vector<1x32xf32>
    %cst_135 = arith.constant 5.000000e-01 : f32
    %377 = vector.broadcast %cst_135 : f32 to vector<1x32xf32>
    %378 = arith.addf %376, %377 : vector<1x32xf32>
    %379 = vector.extract_strided_slice %368 {offsets = [0, 64], sizes = [1, 32], strides = [1, 1]} : vector<1x128xf32> to vector<1x32xf32>
    %380 = vector.extract_strided_slice %368 {offsets = [0, 96], sizes = [1, 32], strides = [1, 1]} : vector<1x128xf32> to vector<1x32xf32>
    %cst_136 = arith.constant 5.000000e-01 : f32
    %381 = vector.broadcast %cst_136 : f32 to vector<1x32xf32>
    %382 = arith.mulf %381, %380 : vector<1x32xf32>
    %cst_137 = arith.constant 5.000000e-01 : f32
    %383 = vector.broadcast %cst_137 : f32 to vector<1x32xf32>
    %384 = arith.addf %382, %383 : vector<1x32xf32>
    %385 = arith.mulf %378, %361 : vector<1x32xf32>
    %386 = arith.mulf %373, %379 : vector<1x32xf32>
    %387 = arith.addf %385, %386 : vector<1x32xf32>
    %388 = math.tanh %387 : vector<1x32xf32>
    %389 = arith.mulf %384, %388 : vector<1x32xf32>
    %390 = vector.extract_strided_slice %51 {offsets = [13, 0], sizes = [1, 128], strides = [1, 1]} : vector<16x128xf32> to vector<1x128xf32>
    %391 = arith.truncf %389 : vector<1x32xf32> to vector<1x32xbf16>
    %cst_138 = arith.constant dense<0.000000e+00> : vector<1x128xf32>
    %392 = tpu.matmul %391, %38, %cst_138 {dimension_numbers = #tpu.dot_dimension_numbers<[1], [0], [0], [1], [0, 0, 1, 1], [], []>} : vector<1x32xbf16>, vector<32x128xbf16>, vector<1x128xf32> -> vector<1x128xf32>
    %393 = arith.addf %390, %392 : vector<1x128xf32>
    %394 = math.tanh %393 : vector<1x128xf32>
    %395 = vector.extract_strided_slice %394 {offsets = [0, 0], sizes = [1, 32], strides = [1, 1]} : vector<1x128xf32> to vector<1x32xf32>
    %cst_139 = arith.constant 5.000000e-01 : f32
    %396 = vector.broadcast %cst_139 : f32 to vector<1x32xf32>
    %397 = arith.mulf %396, %395 : vector<1x32xf32>
    %cst_140 = arith.constant 5.000000e-01 : f32
    %398 = vector.broadcast %cst_140 : f32 to vector<1x32xf32>
    %399 = arith.addf %397, %398 : vector<1x32xf32>
    %400 = vector.extract_strided_slice %394 {offsets = [0, 32], sizes = [1, 32], strides = [1, 1]} : vector<1x128xf32> to vector<1x32xf32>
    %cst_141 = arith.constant 5.000000e-01 : f32
    %401 = vector.broadcast %cst_141 : f32 to vector<1x32xf32>
    %402 = arith.mulf %401, %400 : vector<1x32xf32>
    %cst_142 = arith.constant 5.000000e-01 : f32
    %403 = vector.broadcast %cst_142 : f32 to vector<1x32xf32>
    %404 = arith.addf %402, %403 : vector<1x32xf32>
    %405 = vector.extract_strided_slice %394 {offsets = [0, 64], sizes = [1, 32], strides = [1, 1]} : vector<1x128xf32> to vector<1x32xf32>
    %406 = vector.extract_strided_slice %394 {offsets = [0, 96], sizes = [1, 32], strides = [1, 1]} : vector<1x128xf32> to vector<1x32xf32>
    %cst_143 = arith.constant 5.000000e-01 : f32
    %407 = vector.broadcast %cst_143 : f32 to vector<1x32xf32>
    %408 = arith.mulf %407, %406 : vector<1x32xf32>
    %cst_144 = arith.constant 5.000000e-01 : f32
    %409 = vector.broadcast %cst_144 : f32 to vector<1x32xf32>
    %410 = arith.addf %408, %409 : vector<1x32xf32>
    %411 = arith.mulf %404, %387 : vector<1x32xf32>
    %412 = arith.mulf %399, %405 : vector<1x32xf32>
    %413 = arith.addf %411, %412 : vector<1x32xf32>
    %414 = math.tanh %413 : vector<1x32xf32>
    %415 = arith.mulf %410, %414 : vector<1x32xf32>
    %416 = vector.extract_strided_slice %51 {offsets = [14, 0], sizes = [1, 128], strides = [1, 1]} : vector<16x128xf32> to vector<1x128xf32>
    %417 = arith.truncf %415 : vector<1x32xf32> to vector<1x32xbf16>
    %cst_145 = arith.constant dense<0.000000e+00> : vector<1x128xf32>
    %418 = tpu.matmul %417, %38, %cst_145 {dimension_numbers = #tpu.dot_dimension_numbers<[1], [0], [0], [1], [0, 0, 1, 1], [], []>} : vector<1x32xbf16>, vector<32x128xbf16>, vector<1x128xf32> -> vector<1x128xf32>
    %419 = arith.addf %416, %418 : vector<1x128xf32>
    %420 = math.tanh %419 : vector<1x128xf32>
    %421 = vector.extract_strided_slice %420 {offsets = [0, 0], sizes = [1, 32], strides = [1, 1]} : vector<1x128xf32> to vector<1x32xf32>
    %cst_146 = arith.constant 5.000000e-01 : f32
    %422 = vector.broadcast %cst_146 : f32 to vector<1x32xf32>
    %423 = arith.mulf %422, %421 : vector<1x32xf32>
    %cst_147 = arith.constant 5.000000e-01 : f32
    %424 = vector.broadcast %cst_147 : f32 to vector<1x32xf32>
    %425 = arith.addf %423, %424 : vector<1x32xf32>
    %426 = vector.extract_strided_slice %420 {offsets = [0, 32], sizes = [1, 32], strides = [1, 1]} : vector<1x128xf32> to vector<1x32xf32>
    %cst_148 = arith.constant 5.000000e-01 : f32
    %427 = vector.broadcast %cst_148 : f32 to vector<1x32xf32>
    %428 = arith.mulf %427, %426 : vector<1x32xf32>
    %cst_149 = arith.constant 5.000000e-01 : f32
    %429 = vector.broadcast %cst_149 : f32 to vector<1x32xf32>
    %430 = arith.addf %428, %429 : vector<1x32xf32>
    %431 = vector.extract_strided_slice %420 {offsets = [0, 64], sizes = [1, 32], strides = [1, 1]} : vector<1x128xf32> to vector<1x32xf32>
    %432 = vector.extract_strided_slice %420 {offsets = [0, 96], sizes = [1, 32], strides = [1, 1]} : vector<1x128xf32> to vector<1x32xf32>
    %cst_150 = arith.constant 5.000000e-01 : f32
    %433 = vector.broadcast %cst_150 : f32 to vector<1x32xf32>
    %434 = arith.mulf %433, %432 : vector<1x32xf32>
    %cst_151 = arith.constant 5.000000e-01 : f32
    %435 = vector.broadcast %cst_151 : f32 to vector<1x32xf32>
    %436 = arith.addf %434, %435 : vector<1x32xf32>
    %437 = arith.mulf %430, %413 : vector<1x32xf32>
    %438 = arith.mulf %425, %431 : vector<1x32xf32>
    %439 = arith.addf %437, %438 : vector<1x32xf32>
    %440 = math.tanh %439 : vector<1x32xf32>
    %441 = arith.mulf %436, %440 : vector<1x32xf32>
    %442 = vector.extract_strided_slice %51 {offsets = [15, 0], sizes = [1, 128], strides = [1, 1]} : vector<16x128xf32> to vector<1x128xf32>
    %443 = arith.truncf %441 : vector<1x32xf32> to vector<1x32xbf16>
    %cst_152 = arith.constant dense<0.000000e+00> : vector<1x128xf32>
    %444 = tpu.matmul %443, %38, %cst_152 {dimension_numbers = #tpu.dot_dimension_numbers<[1], [0], [0], [1], [0, 0, 1, 1], [], []>} : vector<1x32xbf16>, vector<32x128xbf16>, vector<1x128xf32> -> vector<1x128xf32>
    %445 = arith.addf %442, %444 : vector<1x128xf32>
    %446 = math.tanh %445 : vector<1x128xf32>
    %447 = vector.extract_strided_slice %446 {offsets = [0, 0], sizes = [1, 32], strides = [1, 1]} : vector<1x128xf32> to vector<1x32xf32>
    %cst_153 = arith.constant 5.000000e-01 : f32
    %448 = vector.broadcast %cst_153 : f32 to vector<1x32xf32>
    %449 = arith.mulf %448, %447 : vector<1x32xf32>
    %cst_154 = arith.constant 5.000000e-01 : f32
    %450 = vector.broadcast %cst_154 : f32 to vector<1x32xf32>
    %451 = arith.addf %449, %450 : vector<1x32xf32>
    %452 = vector.extract_strided_slice %446 {offsets = [0, 32], sizes = [1, 32], strides = [1, 1]} : vector<1x128xf32> to vector<1x32xf32>
    %cst_155 = arith.constant 5.000000e-01 : f32
    %453 = vector.broadcast %cst_155 : f32 to vector<1x32xf32>
    %454 = arith.mulf %453, %452 : vector<1x32xf32>
    %cst_156 = arith.constant 5.000000e-01 : f32
    %455 = vector.broadcast %cst_156 : f32 to vector<1x32xf32>
    %456 = arith.addf %454, %455 : vector<1x32xf32>
    %457 = vector.extract_strided_slice %446 {offsets = [0, 64], sizes = [1, 32], strides = [1, 1]} : vector<1x128xf32> to vector<1x32xf32>
    %458 = vector.extract_strided_slice %446 {offsets = [0, 96], sizes = [1, 32], strides = [1, 1]} : vector<1x128xf32> to vector<1x32xf32>
    %cst_157 = arith.constant 5.000000e-01 : f32
    %459 = vector.broadcast %cst_157 : f32 to vector<1x32xf32>
    %460 = arith.mulf %459, %458 : vector<1x32xf32>
    %cst_158 = arith.constant 5.000000e-01 : f32
    %461 = vector.broadcast %cst_158 : f32 to vector<1x32xf32>
    %462 = arith.addf %460, %461 : vector<1x32xf32>
    %463 = arith.mulf %456, %439 : vector<1x32xf32>
    %464 = arith.mulf %451, %457 : vector<1x32xf32>
    %465 = arith.addf %463, %464 : vector<1x32xf32>
    %466 = math.tanh %465 : vector<1x32xf32>
    %467 = arith.mulf %462, %466 : vector<1x32xf32>
    %468 = tpu.concatenate %77, %103, %129, %155, %181, %207, %233, %259, %285, %311, %337, %363, %389, %415, %441, %467 in 0 : vector<1x32xf32>, vector<1x32xf32>, vector<1x32xf32>, vector<1x32xf32>, vector<1x32xf32>, vector<1x32xf32>, vector<1x32xf32>, vector<1x32xf32>, vector<1x32xf32>, vector<1x32xf32>, vector<1x32xf32>, vector<1x32xf32>, vector<1x32xf32>, vector<1x32xf32>, vector<1x32xf32>, vector<1x32xf32> -> vector<16x32xf32>
    %c0_159 = arith.constant 0 : index
    %c0_160 = arith.constant 0 : index
    %469 = vector.load %arg13[%c0_159, %c0_160] : memref<16x32xf32, #tpu.memory_space<vmem>>, vector<16x32xf32>
    tpu.vector_store %arg13[%c0_159, %c0_160], %468 {strides = array<i32>} : memref<16x32xf32, #tpu.memory_space<vmem>>, vector<16x32xf32>,
    %c0_161 = arith.constant 0 : index
    %c0_162 = arith.constant 0 : index
    %470 = vector.load %arg13[%c0_161, %c0_162] : memref<16x32xf32, #tpu.memory_space<vmem>>, vector<16x32xf32>
    %471 = arith.truncf %470 : vector<16x32xf32> to vector<16x32xbf16>
    %cst_163 = arith.constant dense<0.000000e+00> : vector<16x128xf32>
    %472 = tpu.matmul %471, %36, %cst_163 {dimension_numbers = #tpu.dot_dimension_numbers<[1], [0], [0], [1], [0, 0, 1, 1], [], []>} : vector<16x32xbf16>, vector<32x128xbf16>, vector<16x128xf32> -> vector<16x128xf32>
    %473 = vector.broadcast %44 : vector<1x128xf32> to vector<16x128xf32>
    %474 = arith.addf %472, %473 : vector<16x128xf32>
    %475 = vector.extract_strided_slice %474 {offsets = [0, 0], sizes = [1, 128], strides = [1, 1]} : vector<16x128xf32> to vector<1x128xf32>
    %476 = arith.truncf %50 : vector<1x32xf32> to vector<1x32xbf16>
    %cst_164 = arith.constant dense<0.000000e+00> : vector<1x128xf32>
    %477 = tpu.matmul %476, %40, %cst_164 {dimension_numbers = #tpu.dot_dimension_numbers<[1], [0], [0], [1], [0, 0, 1, 1], [], []>} : vector<1x32xbf16>, vector<32x128xbf16>, vector<1x128xf32> -> vector<1x128xf32>
    %478 = arith.addf %475, %477 : vector<1x128xf32>
    %479 = math.tanh %478 : vector<1x128xf32>
    %480 = vector.extract_strided_slice %479 {offsets = [0, 0], sizes = [1, 32], strides = [1, 1]} : vector<1x128xf32> to vector<1x32xf32>
    %cst_165 = arith.constant 5.000000e-01 : f32
    %481 = vector.broadcast %cst_165 : f32 to vector<1x32xf32>
    %482 = arith.mulf %481, %480 : vector<1x32xf32>
    %cst_166 = arith.constant 5.000000e-01 : f32
    %483 = vector.broadcast %cst_166 : f32 to vector<1x32xf32>
    %484 = arith.addf %482, %483 : vector<1x32xf32>
    %485 = vector.extract_strided_slice %479 {offsets = [0, 32], sizes = [1, 32], strides = [1, 1]} : vector<1x128xf32> to vector<1x32xf32>
    %cst_167 = arith.constant 5.000000e-01 : f32
    %486 = vector.broadcast %cst_167 : f32 to vector<1x32xf32>
    %487 = arith.mulf %486, %485 : vector<1x32xf32>
    %cst_168 = arith.constant 5.000000e-01 : f32
    %488 = vector.broadcast %cst_168 : f32 to vector<1x32xf32>
    %489 = arith.addf %487, %488 : vector<1x32xf32>
    %490 = vector.extract_strided_slice %479 {offsets = [0, 64], sizes = [1, 32], strides = [1, 1]} : vector<1x128xf32> to vector<1x32xf32>
    %491 = vector.extract_strided_slice %479 {offsets = [0, 96], sizes = [1, 32], strides = [1, 1]} : vector<1x128xf32> to vector<1x32xf32>
    %cst_169 = arith.constant 5.000000e-01 : f32
    %492 = vector.broadcast %cst_169 : f32 to vector<1x32xf32>
    %493 = arith.mulf %492, %491 : vector<1x32xf32>
    %cst_170 = arith.constant 5.000000e-01 : f32
    %494 = vector.broadcast %cst_170 : f32 to vector<1x32xf32>
    %495 = arith.addf %493, %494 : vector<1x32xf32>
    %496 = arith.mulf %489, %50 : vector<1x32xf32>
    %497 = arith.mulf %484, %490 : vector<1x32xf32>
    %498 = arith.addf %496, %497 : vector<1x32xf32>
    %499 = math.tanh %498 : vector<1x32xf32>
    %500 = arith.mulf %495, %499 : vector<1x32xf32>
    %501 = vector.extract_strided_slice %474 {offsets = [1, 0], sizes = [1, 128], strides = [1, 1]} : vector<16x128xf32> to vector<1x128xf32>
    %502 = arith.truncf %500 : vector<1x32xf32> to vector<1x32xbf16>
    %cst_171 = arith.constant dense<0.000000e+00> : vector<1x128xf32>
    %503 = tpu.matmul %502, %40, %cst_171 {dimension_numbers = #tpu.dot_dimension_numbers<[1], [0], [0], [1], [0, 0, 1, 1], [], []>} : vector<1x32xbf16>, vector<32x128xbf16>, vector<1x128xf32> -> vector<1x128xf32>
    %504 = arith.addf %501, %503 : vector<1x128xf32>
    %505 = math.tanh %504 : vector<1x128xf32>
    %506 = vector.extract_strided_slice %505 {offsets = [0, 0], sizes = [1, 32], strides = [1, 1]} : vector<1x128xf32> to vector<1x32xf32>
    %cst_172 = arith.constant 5.000000e-01 : f32
    %507 = vector.broadcast %cst_172 : f32 to vector<1x32xf32>
    %508 = arith.mulf %507, %506 : vector<1x32xf32>
    %cst_173 = arith.constant 5.000000e-01 : f32
    %509 = vector.broadcast %cst_173 : f32 to vector<1x32xf32>
    %510 = arith.addf %508, %509 : vector<1x32xf32>
    %511 = vector.extract_strided_slice %505 {offsets = [0, 32], sizes = [1, 32], strides = [1, 1]} : vector<1x128xf32> to vector<1x32xf32>
    %cst_174 = arith.constant 5.000000e-01 : f32
    %512 = vector.broadcast %cst_174 : f32 to vector<1x32xf32>
    %513 = arith.mulf %512, %511 : vector<1x32xf32>
    %cst_175 = arith.constant 5.000000e-01 : f32
    %514 = vector.broadcast %cst_175 : f32 to vector<1x32xf32>
    %515 = arith.addf %513, %514 : vector<1x32xf32>
    %516 = vector.extract_strided_slice %505 {offsets = [0, 64], sizes = [1, 32], strides = [1, 1]} : vector<1x128xf32> to vector<1x32xf32>
    %517 = vector.extract_strided_slice %505 {offsets = [0, 96], sizes = [1, 32], strides = [1, 1]} : vector<1x128xf32> to vector<1x32xf32>
    %cst_176 = arith.constant 5.000000e-01 : f32
    %518 = vector.broadcast %cst_176 : f32 to vector<1x32xf32>
    %519 = arith.mulf %518, %517 : vector<1x32xf32>
    %cst_177 = arith.constant 5.000000e-01 : f32
    %520 = vector.broadcast %cst_177 : f32 to vector<1x32xf32>
    %521 = arith.addf %519, %520 : vector<1x32xf32>
    %522 = arith.mulf %515, %498 : vector<1x32xf32>
    %523 = arith.mulf %510, %516 : vector<1x32xf32>
    %524 = arith.addf %522, %523 : vector<1x32xf32>
    %525 = math.tanh %524 : vector<1x32xf32>
    %526 = arith.mulf %521, %525 : vector<1x32xf32>
    %527 = vector.extract_strided_slice %474 {offsets = [2, 0], sizes = [1, 128], strides = [1, 1]} : vector<16x128xf32> to vector<1x128xf32>
    %528 = arith.truncf %526 : vector<1x32xf32> to vector<1x32xbf16>
    %cst_178 = arith.constant dense<0.000000e+00> : vector<1x128xf32>
    %529 = tpu.matmul %528, %40, %cst_178 {dimension_numbers = #tpu.dot_dimension_numbers<[1], [0], [0], [1], [0, 0, 1, 1], [], []>} : vector<1x32xbf16>, vector<32x128xbf16>, vector<1x128xf32> -> vector<1x128xf32>
    %530 = arith.addf %527, %529 : vector<1x128xf32>
    %531 = math.tanh %530 : vector<1x128xf32>
    %532 = vector.extract_strided_slice %531 {offsets = [0, 0], sizes = [1, 32], strides = [1, 1]} : vector<1x128xf32> to vector<1x32xf32>
    %cst_179 = arith.constant 5.000000e-01 : f32
    %533 = vector.broadcast %cst_179 : f32 to vector<1x32xf32>
    %534 = arith.mulf %533, %532 : vector<1x32xf32>
    %cst_180 = arith.constant 5.000000e-01 : f32
    %535 = vector.broadcast %cst_180 : f32 to vector<1x32xf32>
    %536 = arith.addf %534, %535 : vector<1x32xf32>
    %537 = vector.extract_strided_slice %531 {offsets = [0, 32], sizes = [1, 32], strides = [1, 1]} : vector<1x128xf32> to vector<1x32xf32>
    %cst_181 = arith.constant 5.000000e-01 : f32
    %538 = vector.broadcast %cst_181 : f32 to vector<1x32xf32>
    %539 = arith.mulf %538, %537 : vector<1x32xf32>
    %cst_182 = arith.constant 5.000000e-01 : f32
    %540 = vector.broadcast %cst_182 : f32 to vector<1x32xf32>
    %541 = arith.addf %539, %540 : vector<1x32xf32>
    %542 = vector.extract_strided_slice %531 {offsets = [0, 64], sizes = [1, 32], strides = [1, 1]} : vector<1x128xf32> to vector<1x32xf32>
    %543 = vector.extract_strided_slice %531 {offsets = [0, 96], sizes = [1, 32], strides = [1, 1]} : vector<1x128xf32> to vector<1x32xf32>
    %cst_183 = arith.constant 5.000000e-01 : f32
    %544 = vector.broadcast %cst_183 : f32 to vector<1x32xf32>
    %545 = arith.mulf %544, %543 : vector<1x32xf32>
    %cst_184 = arith.constant 5.000000e-01 : f32
    %546 = vector.broadcast %cst_184 : f32 to vector<1x32xf32>
    %547 = arith.addf %545, %546 : vector<1x32xf32>
    %548 = arith.mulf %541, %524 : vector<1x32xf32>
    %549 = arith.mulf %536, %542 : vector<1x32xf32>
    %550 = arith.addf %548, %549 : vector<1x32xf32>
    %551 = math.tanh %550 : vector<1x32xf32>
    %552 = arith.mulf %547, %551 : vector<1x32xf32>
    %553 = vector.extract_strided_slice %474 {offsets = [3, 0], sizes = [1, 128], strides = [1, 1]} : vector<16x128xf32> to vector<1x128xf32>
    %554 = arith.truncf %552 : vector<1x32xf32> to vector<1x32xbf16>
    %cst_185 = arith.constant dense<0.000000e+00> : vector<1x128xf32>
    %555 = tpu.matmul %554, %40, %cst_185 {dimension_numbers = #tpu.dot_dimension_numbers<[1], [0], [0], [1], [0, 0, 1, 1], [], []>} : vector<1x32xbf16>, vector<32x128xbf16>, vector<1x128xf32> -> vector<1x128xf32>
    %556 = arith.addf %553, %555 : vector<1x128xf32>
    %557 = math.tanh %556 : vector<1x128xf32>
    %558 = vector.extract_strided_slice %557 {offsets = [0, 0], sizes = [1, 32], strides = [1, 1]} : vector<1x128xf32> to vector<1x32xf32>
    %cst_186 = arith.constant 5.000000e-01 : f32
    %559 = vector.broadcast %cst_186 : f32 to vector<1x32xf32>
    %560 = arith.mulf %559, %558 : vector<1x32xf32>
    %cst_187 = arith.constant 5.000000e-01 : f32
    %561 = vector.broadcast %cst_187 : f32 to vector<1x32xf32>
    %562 = arith.addf %560, %561 : vector<1x32xf32>
    %563 = vector.extract_strided_slice %557 {offsets = [0, 32], sizes = [1, 32], strides = [1, 1]} : vector<1x128xf32> to vector<1x32xf32>
    %cst_188 = arith.constant 5.000000e-01 : f32
    %564 = vector.broadcast %cst_188 : f32 to vector<1x32xf32>
    %565 = arith.mulf %564, %563 : vector<1x32xf32>
    %cst_189 = arith.constant 5.000000e-01 : f32
    %566 = vector.broadcast %cst_189 : f32 to vector<1x32xf32>
    %567 = arith.addf %565, %566 : vector<1x32xf32>
    %568 = vector.extract_strided_slice %557 {offsets = [0, 64], sizes = [1, 32], strides = [1, 1]} : vector<1x128xf32> to vector<1x32xf32>
    %569 = vector.extract_strided_slice %557 {offsets = [0, 96], sizes = [1, 32], strides = [1, 1]} : vector<1x128xf32> to vector<1x32xf32>
    %cst_190 = arith.constant 5.000000e-01 : f32
    %570 = vector.broadcast %cst_190 : f32 to vector<1x32xf32>
    %571 = arith.mulf %570, %569 : vector<1x32xf32>
    %cst_191 = arith.constant 5.000000e-01 : f32
    %572 = vector.broadcast %cst_191 : f32 to vector<1x32xf32>
    %573 = arith.addf %571, %572 : vector<1x32xf32>
    %574 = arith.mulf %567, %550 : vector<1x32xf32>
    %575 = arith.mulf %562, %568 : vector<1x32xf32>
    %576 = arith.addf %574, %575 : vector<1x32xf32>
    %577 = math.tanh %576 : vector<1x32xf32>
    %578 = arith.mulf %573, %577 : vector<1x32xf32>
    %579 = vector.extract_strided_slice %474 {offsets = [4, 0], sizes = [1, 128], strides = [1, 1]} : vector<16x128xf32> to vector<1x128xf32>
    %580 = arith.truncf %578 : vector<1x32xf32> to vector<1x32xbf16>
    %cst_192 = arith.constant dense<0.000000e+00> : vector<1x128xf32>
    %581 = tpu.matmul %580, %40, %cst_192 {dimension_numbers = #tpu.dot_dimension_numbers<[1], [0], [0], [1], [0, 0, 1, 1], [], []>} : vector<1x32xbf16>, vector<32x128xbf16>, vector<1x128xf32> -> vector<1x128xf32>
    %582 = arith.addf %579, %581 : vector<1x128xf32>
    %583 = math.tanh %582 : vector<1x128xf32>
    %584 = vector.extract_strided_slice %583 {offsets = [0, 0], sizes = [1, 32], strides = [1, 1]} : vector<1x128xf32> to vector<1x32xf32>
    %cst_193 = arith.constant 5.000000e-01 : f32
    %585 = vector.broadcast %cst_193 : f32 to vector<1x32xf32>
    %586 = arith.mulf %585, %584 : vector<1x32xf32>
    %cst_194 = arith.constant 5.000000e-01 : f32
    %587 = vector.broadcast %cst_194 : f32 to vector<1x32xf32>
    %588 = arith.addf %586, %587 : vector<1x32xf32>
    %589 = vector.extract_strided_slice %583 {offsets = [0, 32], sizes = [1, 32], strides = [1, 1]} : vector<1x128xf32> to vector<1x32xf32>
    %cst_195 = arith.constant 5.000000e-01 : f32
    %590 = vector.broadcast %cst_195 : f32 to vector<1x32xf32>
    %591 = arith.mulf %590, %589 : vector<1x32xf32>
    %cst_196 = arith.constant 5.000000e-01 : f32
    %592 = vector.broadcast %cst_196 : f32 to vector<1x32xf32>
    %593 = arith.addf %591, %592 : vector<1x32xf32>
    %594 = vector.extract_strided_slice %583 {offsets = [0, 64], sizes = [1, 32], strides = [1, 1]} : vector<1x128xf32> to vector<1x32xf32>
    %595 = vector.extract_strided_slice %583 {offsets = [0, 96], sizes = [1, 32], strides = [1, 1]} : vector<1x128xf32> to vector<1x32xf32>
    %cst_197 = arith.constant 5.000000e-01 : f32
    %596 = vector.broadcast %cst_197 : f32 to vector<1x32xf32>
    %597 = arith.mulf %596, %595 : vector<1x32xf32>
    %cst_198 = arith.constant 5.000000e-01 : f32
    %598 = vector.broadcast %cst_198 : f32 to vector<1x32xf32>
    %599 = arith.addf %597, %598 : vector<1x32xf32>
    %600 = arith.mulf %593, %576 : vector<1x32xf32>
    %601 = arith.mulf %588, %594 : vector<1x32xf32>
    %602 = arith.addf %600, %601 : vector<1x32xf32>
    %603 = math.tanh %602 : vector<1x32xf32>
    %604 = arith.mulf %599, %603 : vector<1x32xf32>
    %605 = vector.extract_strided_slice %474 {offsets = [5, 0], sizes = [1, 128], strides = [1, 1]} : vector<16x128xf32> to vector<1x128xf32>
    %606 = arith.truncf %604 : vector<1x32xf32> to vector<1x32xbf16>
    %cst_199 = arith.constant dense<0.000000e+00> : vector<1x128xf32>
    %607 = tpu.matmul %606, %40, %cst_199 {dimension_numbers = #tpu.dot_dimension_numbers<[1], [0], [0], [1], [0, 0, 1, 1], [], []>} : vector<1x32xbf16>, vector<32x128xbf16>, vector<1x128xf32> -> vector<1x128xf32>
    %608 = arith.addf %605, %607 : vector<1x128xf32>
    %609 = math.tanh %608 : vector<1x128xf32>
    %610 = vector.extract_strided_slice %609 {offsets = [0, 0], sizes = [1, 32], strides = [1, 1]} : vector<1x128xf32> to vector<1x32xf32>
    %cst_200 = arith.constant 5.000000e-01 : f32
    %611 = vector.broadcast %cst_200 : f32 to vector<1x32xf32>
    %612 = arith.mulf %611, %610 : vector<1x32xf32>
    %cst_201 = arith.constant 5.000000e-01 : f32
    %613 = vector.broadcast %cst_201 : f32 to vector<1x32xf32>
    %614 = arith.addf %612, %613 : vector<1x32xf32>
    %615 = vector.extract_strided_slice %609 {offsets = [0, 32], sizes = [1, 32], strides = [1, 1]} : vector<1x128xf32> to vector<1x32xf32>
    %cst_202 = arith.constant 5.000000e-01 : f32
    %616 = vector.broadcast %cst_202 : f32 to vector<1x32xf32>
    %617 = arith.mulf %616, %615 : vector<1x32xf32>
    %cst_203 = arith.constant 5.000000e-01 : f32
    %618 = vector.broadcast %cst_203 : f32 to vector<1x32xf32>
    %619 = arith.addf %617, %618 : vector<1x32xf32>
    %620 = vector.extract_strided_slice %609 {offsets = [0, 64], sizes = [1, 32], strides = [1, 1]} : vector<1x128xf32> to vector<1x32xf32>
    %621 = vector.extract_strided_slice %609 {offsets = [0, 96], sizes = [1, 32], strides = [1, 1]} : vector<1x128xf32> to vector<1x32xf32>
    %cst_204 = arith.constant 5.000000e-01 : f32
    %622 = vector.broadcast %cst_204 : f32 to vector<1x32xf32>
    %623 = arith.mulf %622, %621 : vector<1x32xf32>
    %cst_205 = arith.constant 5.000000e-01 : f32
    %624 = vector.broadcast %cst_205 : f32 to vector<1x32xf32>
    %625 = arith.addf %623, %624 : vector<1x32xf32>
    %626 = arith.mulf %619, %602 : vector<1x32xf32>
    %627 = arith.mulf %614, %620 : vector<1x32xf32>
    %628 = arith.addf %626, %627 : vector<1x32xf32>
    %629 = math.tanh %628 : vector<1x32xf32>
    %630 = arith.mulf %625, %629 : vector<1x32xf32>
    %631 = vector.extract_strided_slice %474 {offsets = [6, 0], sizes = [1, 128], strides = [1, 1]} : vector<16x128xf32> to vector<1x128xf32>
    %632 = arith.truncf %630 : vector<1x32xf32> to vector<1x32xbf16>
    %cst_206 = arith.constant dense<0.000000e+00> : vector<1x128xf32>
    %633 = tpu.matmul %632, %40, %cst_206 {dimension_numbers = #tpu.dot_dimension_numbers<[1], [0], [0], [1], [0, 0, 1, 1], [], []>} : vector<1x32xbf16>, vector<32x128xbf16>, vector<1x128xf32> -> vector<1x128xf32>
    %634 = arith.addf %631, %633 : vector<1x128xf32>
    %635 = math.tanh %634 : vector<1x128xf32>
    %636 = vector.extract_strided_slice %635 {offsets = [0, 0], sizes = [1, 32], strides = [1, 1]} : vector<1x128xf32> to vector<1x32xf32>
    %cst_207 = arith.constant 5.000000e-01 : f32
    %637 = vector.broadcast %cst_207 : f32 to vector<1x32xf32>
    %638 = arith.mulf %637, %636 : vector<1x32xf32>
    %cst_208 = arith.constant 5.000000e-01 : f32
    %639 = vector.broadcast %cst_208 : f32 to vector<1x32xf32>
    %640 = arith.addf %638, %639 : vector<1x32xf32>
    %641 = vector.extract_strided_slice %635 {offsets = [0, 32], sizes = [1, 32], strides = [1, 1]} : vector<1x128xf32> to vector<1x32xf32>
    %cst_209 = arith.constant 5.000000e-01 : f32
    %642 = vector.broadcast %cst_209 : f32 to vector<1x32xf32>
    %643 = arith.mulf %642, %641 : vector<1x32xf32>
    %cst_210 = arith.constant 5.000000e-01 : f32
    %644 = vector.broadcast %cst_210 : f32 to vector<1x32xf32>
    %645 = arith.addf %643, %644 : vector<1x32xf32>
    %646 = vector.extract_strided_slice %635 {offsets = [0, 64], sizes = [1, 32], strides = [1, 1]} : vector<1x128xf32> to vector<1x32xf32>
    %647 = vector.extract_strided_slice %635 {offsets = [0, 96], sizes = [1, 32], strides = [1, 1]} : vector<1x128xf32> to vector<1x32xf32>
    %cst_211 = arith.constant 5.000000e-01 : f32
    %648 = vector.broadcast %cst_211 : f32 to vector<1x32xf32>
    %649 = arith.mulf %648, %647 : vector<1x32xf32>
    %cst_212 = arith.constant 5.000000e-01 : f32
    %650 = vector.broadcast %cst_212 : f32 to vector<1x32xf32>
    %651 = arith.addf %649, %650 : vector<1x32xf32>
    %652 = arith.mulf %645, %628 : vector<1x32xf32>
    %653 = arith.mulf %640, %646 : vector<1x32xf32>
    %654 = arith.addf %652, %653 : vector<1x32xf32>
    %655 = math.tanh %654 : vector<1x32xf32>
    %656 = arith.mulf %651, %655 : vector<1x32xf32>
    %657 = vector.extract_strided_slice %474 {offsets = [7, 0], sizes = [1, 128], strides = [1, 1]} : vector<16x128xf32> to vector<1x128xf32>
    %658 = arith.truncf %656 : vector<1x32xf32> to vector<1x32xbf16>
    %cst_213 = arith.constant dense<0.000000e+00> : vector<1x128xf32>
    %659 = tpu.matmul %658, %40, %cst_213 {dimension_numbers = #tpu.dot_dimension_numbers<[1], [0], [0], [1], [0, 0, 1, 1], [], []>} : vector<1x32xbf16>, vector<32x128xbf16>, vector<1x128xf32> -> vector<1x128xf32>
    %660 = arith.addf %657, %659 : vector<1x128xf32>
    %661 = math.tanh %660 : vector<1x128xf32>
    %662 = vector.extract_strided_slice %661 {offsets = [0, 0], sizes = [1, 32], strides = [1, 1]} : vector<1x128xf32> to vector<1x32xf32>
    %cst_214 = arith.constant 5.000000e-01 : f32
    %663 = vector.broadcast %cst_214 : f32 to vector<1x32xf32>
    %664 = arith.mulf %663, %662 : vector<1x32xf32>
    %cst_215 = arith.constant 5.000000e-01 : f32
    %665 = vector.broadcast %cst_215 : f32 to vector<1x32xf32>
    %666 = arith.addf %664, %665 : vector<1x32xf32>
    %667 = vector.extract_strided_slice %661 {offsets = [0, 32], sizes = [1, 32], strides = [1, 1]} : vector<1x128xf32> to vector<1x32xf32>
    %cst_216 = arith.constant 5.000000e-01 : f32
    %668 = vector.broadcast %cst_216 : f32 to vector<1x32xf32>
    %669 = arith.mulf %668, %667 : vector<1x32xf32>
    %cst_217 = arith.constant 5.000000e-01 : f32
    %670 = vector.broadcast %cst_217 : f32 to vector<1x32xf32>
    %671 = arith.addf %669, %670 : vector<1x32xf32>
    %672 = vector.extract_strided_slice %661 {offsets = [0, 64], sizes = [1, 32], strides = [1, 1]} : vector<1x128xf32> to vector<1x32xf32>
    %673 = vector.extract_strided_slice %661 {offsets = [0, 96], sizes = [1, 32], strides = [1, 1]} : vector<1x128xf32> to vector<1x32xf32>
    %cst_218 = arith.constant 5.000000e-01 : f32
    %674 = vector.broadcast %cst_218 : f32 to vector<1x32xf32>
    %675 = arith.mulf %674, %673 : vector<1x32xf32>
    %cst_219 = arith.constant 5.000000e-01 : f32
    %676 = vector.broadcast %cst_219 : f32 to vector<1x32xf32>
    %677 = arith.addf %675, %676 : vector<1x32xf32>
    %678 = arith.mulf %671, %654 : vector<1x32xf32>
    %679 = arith.mulf %666, %672 : vector<1x32xf32>
    %680 = arith.addf %678, %679 : vector<1x32xf32>
    %681 = math.tanh %680 : vector<1x32xf32>
    %682 = arith.mulf %677, %681 : vector<1x32xf32>
    %683 = vector.extract_strided_slice %474 {offsets = [8, 0], sizes = [1, 128], strides = [1, 1]} : vector<16x128xf32> to vector<1x128xf32>
    %684 = arith.truncf %682 : vector<1x32xf32> to vector<1x32xbf16>
    %cst_220 = arith.constant dense<0.000000e+00> : vector<1x128xf32>
    %685 = tpu.matmul %684, %40, %cst_220 {dimension_numbers = #tpu.dot_dimension_numbers<[1], [0], [0], [1], [0, 0, 1, 1], [], []>} : vector<1x32xbf16>, vector<32x128xbf16>, vector<1x128xf32> -> vector<1x128xf32>
    %686 = arith.addf %683, %685 : vector<1x128xf32>
    %687 = math.tanh %686 : vector<1x128xf32>
    %688 = vector.extract_strided_slice %687 {offsets = [0, 0], sizes = [1, 32], strides = [1, 1]} : vector<1x128xf32> to vector<1x32xf32>
    %cst_221 = arith.constant 5.000000e-01 : f32
    %689 = vector.broadcast %cst_221 : f32 to vector<1x32xf32>
    %690 = arith.mulf %689, %688 : vector<1x32xf32>
    %cst_222 = arith.constant 5.000000e-01 : f32
    %691 = vector.broadcast %cst_222 : f32 to vector<1x32xf32>
    %692 = arith.addf %690, %691 : vector<1x32xf32>
    %693 = vector.extract_strided_slice %687 {offsets = [0, 32], sizes = [1, 32], strides = [1, 1]} : vector<1x128xf32> to vector<1x32xf32>
    %cst_223 = arith.constant 5.000000e-01 : f32
    %694 = vector.broadcast %cst_223 : f32 to vector<1x32xf32>
    %695 = arith.mulf %694, %693 : vector<1x32xf32>
    %cst_224 = arith.constant 5.000000e-01 : f32
    %696 = vector.broadcast %cst_224 : f32 to vector<1x32xf32>
    %697 = arith.addf %695, %696 : vector<1x32xf32>
    %698 = vector.extract_strided_slice %687 {offsets = [0, 64], sizes = [1, 32], strides = [1, 1]} : vector<1x128xf32> to vector<1x32xf32>
    %699 = vector.extract_strided_slice %687 {offsets = [0, 96], sizes = [1, 32], strides = [1, 1]} : vector<1x128xf32> to vector<1x32xf32>
    %cst_225 = arith.constant 5.000000e-01 : f32
    %700 = vector.broadcast %cst_225 : f32 to vector<1x32xf32>
    %701 = arith.mulf %700, %699 : vector<1x32xf32>
    %cst_226 = arith.constant 5.000000e-01 : f32
    %702 = vector.broadcast %cst_226 : f32 to vector<1x32xf32>
    %703 = arith.addf %701, %702 : vector<1x32xf32>
    %704 = arith.mulf %697, %680 : vector<1x32xf32>
    %705 = arith.mulf %692, %698 : vector<1x32xf32>
    %706 = arith.addf %704, %705 : vector<1x32xf32>
    %707 = math.tanh %706 : vector<1x32xf32>
    %708 = arith.mulf %703, %707 : vector<1x32xf32>
    %709 = vector.extract_strided_slice %474 {offsets = [9, 0], sizes = [1, 128], strides = [1, 1]} : vector<16x128xf32> to vector<1x128xf32>
    %710 = arith.truncf %708 : vector<1x32xf32> to vector<1x32xbf16>
    %cst_227 = arith.constant dense<0.000000e+00> : vector<1x128xf32>
    %711 = tpu.matmul %710, %40, %cst_227 {dimension_numbers = #tpu.dot_dimension_numbers<[1], [0], [0], [1], [0, 0, 1, 1], [], []>} : vector<1x32xbf16>, vector<32x128xbf16>, vector<1x128xf32> -> vector<1x128xf32>
    %712 = arith.addf %709, %711 : vector<1x128xf32>
    %713 = math.tanh %712 : vector<1x128xf32>
    %714 = vector.extract_strided_slice %713 {offsets = [0, 0], sizes = [1, 32], strides = [1, 1]} : vector<1x128xf32> to vector<1x32xf32>
    %cst_228 = arith.constant 5.000000e-01 : f32
    %715 = vector.broadcast %cst_228 : f32 to vector<1x32xf32>
    %716 = arith.mulf %715, %714 : vector<1x32xf32>
    %cst_229 = arith.constant 5.000000e-01 : f32
    %717 = vector.broadcast %cst_229 : f32 to vector<1x32xf32>
    %718 = arith.addf %716, %717 : vector<1x32xf32>
    %719 = vector.extract_strided_slice %713 {offsets = [0, 32], sizes = [1, 32], strides = [1, 1]} : vector<1x128xf32> to vector<1x32xf32>
    %cst_230 = arith.constant 5.000000e-01 : f32
    %720 = vector.broadcast %cst_230 : f32 to vector<1x32xf32>
    %721 = arith.mulf %720, %719 : vector<1x32xf32>
    %cst_231 = arith.constant 5.000000e-01 : f32
    %722 = vector.broadcast %cst_231 : f32 to vector<1x32xf32>
    %723 = arith.addf %721, %722 : vector<1x32xf32>
    %724 = vector.extract_strided_slice %713 {offsets = [0, 64], sizes = [1, 32], strides = [1, 1]} : vector<1x128xf32> to vector<1x32xf32>
    %725 = vector.extract_strided_slice %713 {offsets = [0, 96], sizes = [1, 32], strides = [1, 1]} : vector<1x128xf32> to vector<1x32xf32>
    %cst_232 = arith.constant 5.000000e-01 : f32
    %726 = vector.broadcast %cst_232 : f32 to vector<1x32xf32>
    %727 = arith.mulf %726, %725 : vector<1x32xf32>
    %cst_233 = arith.constant 5.000000e-01 : f32
    %728 = vector.broadcast %cst_233 : f32 to vector<1x32xf32>
    %729 = arith.addf %727, %728 : vector<1x32xf32>
    %730 = arith.mulf %723, %706 : vector<1x32xf32>
    %731 = arith.mulf %718, %724 : vector<1x32xf32>
    %732 = arith.addf %730, %731 : vector<1x32xf32>
    %733 = math.tanh %732 : vector<1x32xf32>
    %734 = arith.mulf %729, %733 : vector<1x32xf32>
    %735 = vector.extract_strided_slice %474 {offsets = [10, 0], sizes = [1, 128], strides = [1, 1]} : vector<16x128xf32> to vector<1x128xf32>
    %736 = arith.truncf %734 : vector<1x32xf32> to vector<1x32xbf16>
    %cst_234 = arith.constant dense<0.000000e+00> : vector<1x128xf32>
    %737 = tpu.matmul %736, %40, %cst_234 {dimension_numbers = #tpu.dot_dimension_numbers<[1], [0], [0], [1], [0, 0, 1, 1], [], []>} : vector<1x32xbf16>, vector<32x128xbf16>, vector<1x128xf32> -> vector<1x128xf32>
    %738 = arith.addf %735, %737 : vector<1x128xf32>
    %739 = math.tanh %738 : vector<1x128xf32>
    %740 = vector.extract_strided_slice %739 {offsets = [0, 0], sizes = [1, 32], strides = [1, 1]} : vector<1x128xf32> to vector<1x32xf32>
    %cst_235 = arith.constant 5.000000e-01 : f32
    %741 = vector.broadcast %cst_235 : f32 to vector<1x32xf32>
    %742 = arith.mulf %741, %740 : vector<1x32xf32>
    %cst_236 = arith.constant 5.000000e-01 : f32
    %743 = vector.broadcast %cst_236 : f32 to vector<1x32xf32>
    %744 = arith.addf %742, %743 : vector<1x32xf32>
    %745 = vector.extract_strided_slice %739 {offsets = [0, 32], sizes = [1, 32], strides = [1, 1]} : vector<1x128xf32> to vector<1x32xf32>
    %cst_237 = arith.constant 5.000000e-01 : f32
    %746 = vector.broadcast %cst_237 : f32 to vector<1x32xf32>
    %747 = arith.mulf %746, %745 : vector<1x32xf32>
    %cst_238 = arith.constant 5.000000e-01 : f32
    %748 = vector.broadcast %cst_238 : f32 to vector<1x32xf32>
    %749 = arith.addf %747, %748 : vector<1x32xf32>
    %750 = vector.extract_strided_slice %739 {offsets = [0, 64], sizes = [1, 32], strides = [1, 1]} : vector<1x128xf32> to vector<1x32xf32>
    %751 = vector.extract_strided_slice %739 {offsets = [0, 96], sizes = [1, 32], strides = [1, 1]} : vector<1x128xf32> to vector<1x32xf32>
    %cst_239 = arith.constant 5.000000e-01 : f32
    %752 = vector.broadcast %cst_239 : f32 to vector<1x32xf32>
    %753 = arith.mulf %752, %751 : vector<1x32xf32>
    %cst_240 = arith.constant 5.000000e-01 : f32
    %754 = vector.broadcast %cst_240 : f32 to vector<1x32xf32>
    %755 = arith.addf %753, %754 : vector<1x32xf32>
    %756 = arith.mulf %749, %732 : vector<1x32xf32>
    %757 = arith.mulf %744, %750 : vector<1x32xf32>
    %758 = arith.addf %756, %757 : vector<1x32xf32>
    %759 = math.tanh %758 : vector<1x32xf32>
    %760 = arith.mulf %755, %759 : vector<1x32xf32>
    %761 = vector.extract_strided_slice %474 {offsets = [11, 0], sizes = [1, 128], strides = [1, 1]} : vector<16x128xf32> to vector<1x128xf32>
    %762 = arith.truncf %760 : vector<1x32xf32> to vector<1x32xbf16>
    %cst_241 = arith.constant dense<0.000000e+00> : vector<1x128xf32>
    %763 = tpu.matmul %762, %40, %cst_241 {dimension_numbers = #tpu.dot_dimension_numbers<[1], [0], [0], [1], [0, 0, 1, 1], [], []>} : vector<1x32xbf16>, vector<32x128xbf16>, vector<1x128xf32> -> vector<1x128xf32>
    %764 = arith.addf %761, %763 : vector<1x128xf32>
    %765 = math.tanh %764 : vector<1x128xf32>
    %766 = vector.extract_strided_slice %765 {offsets = [0, 0], sizes = [1, 32], strides = [1, 1]} : vector<1x128xf32> to vector<1x32xf32>
    %cst_242 = arith.constant 5.000000e-01 : f32
    %767 = vector.broadcast %cst_242 : f32 to vector<1x32xf32>
    %768 = arith.mulf %767, %766 : vector<1x32xf32>
    %cst_243 = arith.constant 5.000000e-01 : f32
    %769 = vector.broadcast %cst_243 : f32 to vector<1x32xf32>
    %770 = arith.addf %768, %769 : vector<1x32xf32>
    %771 = vector.extract_strided_slice %765 {offsets = [0, 32], sizes = [1, 32], strides = [1, 1]} : vector<1x128xf32> to vector<1x32xf32>
    %cst_244 = arith.constant 5.000000e-01 : f32
    %772 = vector.broadcast %cst_244 : f32 to vector<1x32xf32>
    %773 = arith.mulf %772, %771 : vector<1x32xf32>
    %cst_245 = arith.constant 5.000000e-01 : f32
    %774 = vector.broadcast %cst_245 : f32 to vector<1x32xf32>
    %775 = arith.addf %773, %774 : vector<1x32xf32>
    %776 = vector.extract_strided_slice %765 {offsets = [0, 64], sizes = [1, 32], strides = [1, 1]} : vector<1x128xf32> to vector<1x32xf32>
    %777 = vector.extract_strided_slice %765 {offsets = [0, 96], sizes = [1, 32], strides = [1, 1]} : vector<1x128xf32> to vector<1x32xf32>
    %cst_246 = arith.constant 5.000000e-01 : f32
    %778 = vector.broadcast %cst_246 : f32 to vector<1x32xf32>
    %779 = arith.mulf %778, %777 : vector<1x32xf32>
    %cst_247 = arith.constant 5.000000e-01 : f32
    %780 = vector.broadcast %cst_247 : f32 to vector<1x32xf32>
    %781 = arith.addf %779, %780 : vector<1x32xf32>
    %782 = arith.mulf %775, %758 : vector<1x32xf32>
    %783 = arith.mulf %770, %776 : vector<1x32xf32>
    %784 = arith.addf %782, %783 : vector<1x32xf32>
    %785 = math.tanh %784 : vector<1x32xf32>
    %786 = arith.mulf %781, %785 : vector<1x32xf32>
    %787 = vector.extract_strided_slice %474 {offsets = [12, 0], sizes = [1, 128], strides = [1, 1]} : vector<16x128xf32> to vector<1x128xf32>
    %788 = arith.truncf %786 : vector<1x32xf32> to vector<1x32xbf16>
    %cst_248 = arith.constant dense<0.000000e+00> : vector<1x128xf32>
    %789 = tpu.matmul %788, %40, %cst_248 {dimension_numbers = #tpu.dot_dimension_numbers<[1], [0], [0], [1], [0, 0, 1, 1], [], []>} : vector<1x32xbf16>, vector<32x128xbf16>, vector<1x128xf32> -> vector<1x128xf32>
    %790 = arith.addf %787, %789 : vector<1x128xf32>
    %791 = math.tanh %790 : vector<1x128xf32>
    %792 = vector.extract_strided_slice %791 {offsets = [0, 0], sizes = [1, 32], strides = [1, 1]} : vector<1x128xf32> to vector<1x32xf32>
    %cst_249 = arith.constant 5.000000e-01 : f32
    %793 = vector.broadcast %cst_249 : f32 to vector<1x32xf32>
    %794 = arith.mulf %793, %792 : vector<1x32xf32>
    %cst_250 = arith.constant 5.000000e-01 : f32
    %795 = vector.broadcast %cst_250 : f32 to vector<1x32xf32>
    %796 = arith.addf %794, %795 : vector<1x32xf32>
    %797 = vector.extract_strided_slice %791 {offsets = [0, 32], sizes = [1, 32], strides = [1, 1]} : vector<1x128xf32> to vector<1x32xf32>
    %cst_251 = arith.constant 5.000000e-01 : f32
    %798 = vector.broadcast %cst_251 : f32 to vector<1x32xf32>
    %799 = arith.mulf %798, %797 : vector<1x32xf32>
    %cst_252 = arith.constant 5.000000e-01 : f32
    %800 = vector.broadcast %cst_252 : f32 to vector<1x32xf32>
    %801 = arith.addf %799, %800 : vector<1x32xf32>
    %802 = vector.extract_strided_slice %791 {offsets = [0, 64], sizes = [1, 32], strides = [1, 1]} : vector<1x128xf32> to vector<1x32xf32>
    %803 = vector.extract_strided_slice %791 {offsets = [0, 96], sizes = [1, 32], strides = [1, 1]} : vector<1x128xf32> to vector<1x32xf32>
    %cst_253 = arith.constant 5.000000e-01 : f32
    %804 = vector.broadcast %cst_253 : f32 to vector<1x32xf32>
    %805 = arith.mulf %804, %803 : vector<1x32xf32>
    %cst_254 = arith.constant 5.000000e-01 : f32
    %806 = vector.broadcast %cst_254 : f32 to vector<1x32xf32>
    %807 = arith.addf %805, %806 : vector<1x32xf32>
    %808 = arith.mulf %801, %784 : vector<1x32xf32>
    %809 = arith.mulf %796, %802 : vector<1x32xf32>
    %810 = arith.addf %808, %809 : vector<1x32xf32>
    %811 = math.tanh %810 : vector<1x32xf32>
    %812 = arith.mulf %807, %811 : vector<1x32xf32>
    %813 = vector.extract_strided_slice %474 {offsets = [13, 0], sizes = [1, 128], strides = [1, 1]} : vector<16x128xf32> to vector<1x128xf32>
    %814 = arith.truncf %812 : vector<1x32xf32> to vector<1x32xbf16>
    %cst_255 = arith.constant dense<0.000000e+00> : vector<1x128xf32>
    %815 = tpu.matmul %814, %40, %cst_255 {dimension_numbers = #tpu.dot_dimension_numbers<[1], [0], [0], [1], [0, 0, 1, 1], [], []>} : vector<1x32xbf16>, vector<32x128xbf16>, vector<1x128xf32> -> vector<1x128xf32>
    %816 = arith.addf %813, %815 : vector<1x128xf32>
    %817 = math.tanh %816 : vector<1x128xf32>
    %818 = vector.extract_strided_slice %817 {offsets = [0, 0], sizes = [1, 32], strides = [1, 1]} : vector<1x128xf32> to vector<1x32xf32>
    %cst_256 = arith.constant 5.000000e-01 : f32
    %819 = vector.broadcast %cst_256 : f32 to vector<1x32xf32>
    %820 = arith.mulf %819, %818 : vector<1x32xf32>
    %cst_257 = arith.constant 5.000000e-01 : f32
    %821 = vector.broadcast %cst_257 : f32 to vector<1x32xf32>
    %822 = arith.addf %820, %821 : vector<1x32xf32>
    %823 = vector.extract_strided_slice %817 {offsets = [0, 32], sizes = [1, 32], strides = [1, 1]} : vector<1x128xf32> to vector<1x32xf32>
    %cst_258 = arith.constant 5.000000e-01 : f32
    %824 = vector.broadcast %cst_258 : f32 to vector<1x32xf32>
    %825 = arith.mulf %824, %823 : vector<1x32xf32>
    %cst_259 = arith.constant 5.000000e-01 : f32
    %826 = vector.broadcast %cst_259 : f32 to vector<1x32xf32>
    %827 = arith.addf %825, %826 : vector<1x32xf32>
    %828 = vector.extract_strided_slice %817 {offsets = [0, 64], sizes = [1, 32], strides = [1, 1]} : vector<1x128xf32> to vector<1x32xf32>
    %829 = vector.extract_strided_slice %817 {offsets = [0, 96], sizes = [1, 32], strides = [1, 1]} : vector<1x128xf32> to vector<1x32xf32>
    %cst_260 = arith.constant 5.000000e-01 : f32
    %830 = vector.broadcast %cst_260 : f32 to vector<1x32xf32>
    %831 = arith.mulf %830, %829 : vector<1x32xf32>
    %cst_261 = arith.constant 5.000000e-01 : f32
    %832 = vector.broadcast %cst_261 : f32 to vector<1x32xf32>
    %833 = arith.addf %831, %832 : vector<1x32xf32>
    %834 = arith.mulf %827, %810 : vector<1x32xf32>
    %835 = arith.mulf %822, %828 : vector<1x32xf32>
    %836 = arith.addf %834, %835 : vector<1x32xf32>
    %837 = math.tanh %836 : vector<1x32xf32>
    %838 = arith.mulf %833, %837 : vector<1x32xf32>
    %839 = vector.extract_strided_slice %474 {offsets = [14, 0], sizes = [1, 128], strides = [1, 1]} : vector<16x128xf32> to vector<1x128xf32>
    %840 = arith.truncf %838 : vector<1x32xf32> to vector<1x32xbf16>
    %cst_262 = arith.constant dense<0.000000e+00> : vector<1x128xf32>
    %841 = tpu.matmul %840, %40, %cst_262 {dimension_numbers = #tpu.dot_dimension_numbers<[1], [0], [0], [1], [0, 0, 1, 1], [], []>} : vector<1x32xbf16>, vector<32x128xbf16>, vector<1x128xf32> -> vector<1x128xf32>
    %842 = arith.addf %839, %841 : vector<1x128xf32>
    %843 = math.tanh %842 : vector<1x128xf32>
    %844 = vector.extract_strided_slice %843 {offsets = [0, 0], sizes = [1, 32], strides = [1, 1]} : vector<1x128xf32> to vector<1x32xf32>
    %cst_263 = arith.constant 5.000000e-01 : f32
    %845 = vector.broadcast %cst_263 : f32 to vector<1x32xf32>
    %846 = arith.mulf %845, %844 : vector<1x32xf32>
    %cst_264 = arith.constant 5.000000e-01 : f32
    %847 = vector.broadcast %cst_264 : f32 to vector<1x32xf32>
    %848 = arith.addf %846, %847 : vector<1x32xf32>
    %849 = vector.extract_strided_slice %843 {offsets = [0, 32], sizes = [1, 32], strides = [1, 1]} : vector<1x128xf32> to vector<1x32xf32>
    %cst_265 = arith.constant 5.000000e-01 : f32
    %850 = vector.broadcast %cst_265 : f32 to vector<1x32xf32>
    %851 = arith.mulf %850, %849 : vector<1x32xf32>
    %cst_266 = arith.constant 5.000000e-01 : f32
    %852 = vector.broadcast %cst_266 : f32 to vector<1x32xf32>
    %853 = arith.addf %851, %852 : vector<1x32xf32>
    %854 = vector.extract_strided_slice %843 {offsets = [0, 64], sizes = [1, 32], strides = [1, 1]} : vector<1x128xf32> to vector<1x32xf32>
    %855 = vector.extract_strided_slice %843 {offsets = [0, 96], sizes = [1, 32], strides = [1, 1]} : vector<1x128xf32> to vector<1x32xf32>
    %cst_267 = arith.constant 5.000000e-01 : f32
    %856 = vector.broadcast %cst_267 : f32 to vector<1x32xf32>
    %857 = arith.mulf %856, %855 : vector<1x32xf32>
    %cst_268 = arith.constant 5.000000e-01 : f32
    %858 = vector.broadcast %cst_268 : f32 to vector<1x32xf32>
    %859 = arith.addf %857, %858 : vector<1x32xf32>
    %860 = arith.mulf %853, %836 : vector<1x32xf32>
    %861 = arith.mulf %848, %854 : vector<1x32xf32>
    %862 = arith.addf %860, %861 : vector<1x32xf32>
    %863 = math.tanh %862 : vector<1x32xf32>
    %864 = arith.mulf %859, %863 : vector<1x32xf32>
    %865 = vector.extract_strided_slice %474 {offsets = [15, 0], sizes = [1, 128], strides = [1, 1]} : vector<16x128xf32> to vector<1x128xf32>
    %866 = arith.truncf %864 : vector<1x32xf32> to vector<1x32xbf16>
    %cst_269 = arith.constant dense<0.000000e+00> : vector<1x128xf32>
    %867 = tpu.matmul %866, %40, %cst_269 {dimension_numbers = #tpu.dot_dimension_numbers<[1], [0], [0], [1], [0, 0, 1, 1], [], []>} : vector<1x32xbf16>, vector<32x128xbf16>, vector<1x128xf32> -> vector<1x128xf32>
    %868 = arith.addf %865, %867 : vector<1x128xf32>
    %869 = math.tanh %868 : vector<1x128xf32>
    %870 = vector.extract_strided_slice %869 {offsets = [0, 0], sizes = [1, 32], strides = [1, 1]} : vector<1x128xf32> to vector<1x32xf32>
    %cst_270 = arith.constant 5.000000e-01 : f32
    %871 = vector.broadcast %cst_270 : f32 to vector<1x32xf32>
    %872 = arith.mulf %871, %870 : vector<1x32xf32>
    %cst_271 = arith.constant 5.000000e-01 : f32
    %873 = vector.broadcast %cst_271 : f32 to vector<1x32xf32>
    %874 = arith.addf %872, %873 : vector<1x32xf32>
    %875 = vector.extract_strided_slice %869 {offsets = [0, 32], sizes = [1, 32], strides = [1, 1]} : vector<1x128xf32> to vector<1x32xf32>
    %cst_272 = arith.constant 5.000000e-01 : f32
    %876 = vector.broadcast %cst_272 : f32 to vector<1x32xf32>
    %877 = arith.mulf %876, %875 : vector<1x32xf32>
    %cst_273 = arith.constant 5.000000e-01 : f32
    %878 = vector.broadcast %cst_273 : f32 to vector<1x32xf32>
    %879 = arith.addf %877, %878 : vector<1x32xf32>
    %880 = vector.extract_strided_slice %869 {offsets = [0, 64], sizes = [1, 32], strides = [1, 1]} : vector<1x128xf32> to vector<1x32xf32>
    %881 = vector.extract_strided_slice %869 {offsets = [0, 96], sizes = [1, 32], strides = [1, 1]} : vector<1x128xf32> to vector<1x32xf32>
    %cst_274 = arith.constant 5.000000e-01 : f32
    %882 = vector.broadcast %cst_274 : f32 to vector<1x32xf32>
    %883 = arith.mulf %882, %881 : vector<1x32xf32>
    %cst_275 = arith.constant 5.000000e-01 : f32
    %884 = vector.broadcast %cst_275 : f32 to vector<1x32xf32>
    %885 = arith.addf %883, %884 : vector<1x32xf32>
    %886 = arith.mulf %879, %862 : vector<1x32xf32>
    %887 = arith.mulf %874, %880 : vector<1x32xf32>
    %888 = arith.addf %886, %887 : vector<1x32xf32>
    %889 = math.tanh %888 : vector<1x32xf32>
    %890 = arith.mulf %885, %889 : vector<1x32xf32>
    %891 = tpu.concatenate %500, %526, %552, %578, %604, %630, %656, %682, %708, %734, %760, %786, %812, %838, %864, %890 in 0 : vector<1x32xf32>, vector<1x32xf32>, vector<1x32xf32>, vector<1x32xf32>, vector<1x32xf32>, vector<1x32xf32>, vector<1x32xf32>, vector<1x32xf32>, vector<1x32xf32>, vector<1x32xf32>, vector<1x32xf32>, vector<1x32xf32>, vector<1x32xf32>, vector<1x32xf32>, vector<1x32xf32>, vector<1x32xf32> -> vector<16x32xf32>
    %c0_276 = arith.constant 0 : index
    %c0_277 = arith.constant 0 : index
    %892 = vector.load %arg12[%c0_276, %c0_277] : memref<16x32xf32, #tpu.memory_space<vmem>>, vector<16x32xf32>
    tpu.vector_store %arg12[%c0_276, %c0_277], %891 {strides = array<i32>} : memref<16x32xf32, #tpu.memory_space<vmem>>, vector<16x32xf32>,
    return
  }
}

</mosaic_0001>

<bundles_post_ra>
// kernel: tpu_custom_call.1
= control target key start
LH: loop header
LB: loop body
LE: loop exit
PB: predicated region body
PF: predicated region fallthrough
CT: control target
= control target key end

     0   :  { %17 = vsyncpa [#allocation5], 0  ;;  %s4440_s0 = inlined_call_operand.hbm [shape: bf16[16,53], index: 0, kind: input, shape index: {}]   ;;  %s4441_s1 = inlined_call_operand.hbm [shape: bf16[53,128], index: 1, kind: input, shape index: {}]   ;;  %s4442_s2 = inlined_call_operand.vmem [shape: f32[1,128], index: 2, kind: input, shape index: {}]   ;;  %s4443_s3 = inlined_call_operand.vmem [shape: f32[1,128], index: 3, kind: input, shape index: {}]   ;;  %s4444_s4 = inlined_call_operand.vmem [shape: bf16[128,32], index: 4, kind: input, shape index: {}]   ;;  %s4445_s5 = inlined_call_operand.vmem [shape: f32[1,32], index: 5, kind: input, shape index: {}]   ;;  %s4446_s6 = inlined_call_operand.vmem [shape: f32[1,32], index: 6, kind: input, shape index: {}]   ;;  %s4447_s7 = inlined_call_operand.vmem [shape: bf16[32,32], index: 7, kind: input, shape index: {}]   ;;  %s4448_s8 = inlined_call_operand.vmem [shape: f32[1,32], index: 8, kind: input, shape index: {}]   ;;  %s4449_s9 = inlined_call_operand.vmem [shape: bf16[2,32,128], index: 9, kind: input, shape index: {}]   ;;  %s4450_s10 = inlined_call_operand.vmem [shape: bf16[2,32,128], index: 10, kind: input, shape index: {}]   ;;  %s4451_s11 = inlined_call_operand.vmem [shape: f32[2,1,128], index: 11, kind: input, shape index: {}]   ;;  %s4452_s12 = inlined_call_operand.hbm [shape: f32[16,32], index: 12, kind: output, shape index: {}]  }
   0x1   :  { %18 = vsyncpa [#allocation8], 0 }
   0x2   :  { %19 = vsyncpa [#allocation6], 0  ;;  %s3755_s21 = smov [#allocation4]   ;;  %s3683_s25 = scalar_lea.hbm %s4440_s0, 128 }
   0x3   :  { %s25_s22 = sshll.u32 %s3755_s21, 4  ;;  %p3684_p0 = scmp.ne.s32.totalorder %s4440_s0, %s3683_s25  ;;  %s26_s22 = int_to_ptr.vmem [resolvable:$true] %s25_s22 }
   0x4   :  { %p3687_p1 = scmp.lt.u32.totalorder %s3683_s25, %s4440_s0 }
   0x6   :  { %p3689_p2 = pnand %p3687_p1, %p3684_p0 }
   0x8   :  { %3692 = shalt.err (!%p3689_p2)
}
   0x9   :  { %s3693_s30 = scalar_lea.vmem %s26_s22, 128  ;;  %p3698_p4 = scmp.lt.s32.totalorder %s26_s22, %s26_s22 }
   0xa   :  { %p3694_p3 = scmp.ne.s32.totalorder %s26_s22, %s3693_s30  ;;  %p3699_p5 = scmp.lt.s32.totalorder %s3693_s30, %s3693_s30 }
   0xc   :  { %p3700_p6 = por %p3699_p5, %p3698_p4 }
   0xe   :  { %p3701_p7 = pnand %p3700_p6, %p3694_p3 }
  0x10   :  { %3704 = shalt.err (!%p3701_p7)
}
  0x11   :  { %s3756_s13 = smov 64   ;;  %s3757_s14 = smov 4  }
  0x12   :  { %31 = dma.hbm_to_vmem [thread:$0]  %s4440_s0, 128, %s26_s22, [#allocation5], %s3756_s13, %s3756_s13, %s3757_s14  }
  0x13   :  { %s3758_s17 = smov [#allocation7]   ;;  %s3705_s21 = scalar_lea.hbm %s4441_s1, 448 }
  0x14   :  { %s37_s18 = sshll.u32 %s3758_s17, 4  ;;  %p3706_p8 = scmp.ne.s32.totalorder %s4441_s1, %s3705_s21  ;;  %s38_s18 = int_to_ptr.vmem [resolvable:$true] %s37_s18 }
  0x15   :  { %p3709_p9 = scmp.lt.u32.totalorder %s3705_s21, %s4441_s1 }
  0x17   :  { %p3711_p10 = pnand %p3709_p9, %p3706_p8 }
  0x19   :  { %3714 = shalt.err (!%p3711_p10)
}
  0x1a   :  { %s3715_s27 = scalar_lea.vmem %s38_s18, 448  ;;  %p3720_p12 = scmp.lt.s32.totalorder %s38_s18, %s38_s18 }
  0x1b   :  { %p3716_p11 = scmp.ne.s32.totalorder %s38_s18, %s3715_s27  ;;  %p3721_p13 = scmp.lt.s32.totalorder %s3715_s27, %s3715_s27 }
  0x1d   :  { %p3722_p0 = por %p3721_p13, %p3720_p12 }
  0x1f   :  { %p3723_p1 = pnand %p3722_p0, %p3716_p11 }
  0x21   :  { %3726 = shalt.err (!%p3723_p1)
}
  0x22   :  { %43 = dma.hbm_to_vmem [thread:$0]  %s4441_s1, 448, %s38_s18, [#allocation8], %s3756_s13, %s3756_s13, %s3757_s14  }
  0x23   :  { %3749 = dma.done.wait [#allocation5], 128  }
  0x24   :  { %3750 = vsyncadd [#allocation5], 4294967168 }
  0x25   :  { %3751 = dma.done.wait [#allocation8], 448  }
  0x26   :  { %3752 = vsyncadd [#allocation8], 4294966848  ;;  %v3759_v0 = vmov 0.0   ;;  %vm3760_vm0 = vmmov 0   ;;  %vm110_vm1 = vcmask 1041408   ;;  %v3532_v1 = vld [vmem:[#allocation7] sm:$0xff]  }
  0x27   :  { %3208 = vmatprep.subr.bf16.mxu0 %v3759_v0  ;;  %3220 = vmatprep.subr.bf16.mxu1 %v3759_v0  ;;  %v3533_v2 = vld [vmem:[#allocation7 + $0x8] sm:$0xff]   ;;  %vm111_vm2 = vcmask 1042432   ;;  %v3761_v3 = vmov 65535   ;;  %v3535_v5 = vld [vmem:[#allocation7 + $0x18] ss:$0 sps:$4 sm:$0x77]  }
  0x28   :  { %3216 = vmatprep.mubr.msk.bf16.mxu0 %vm3760_vm0, %v3759_v0  ;;  %3236 = vmatprep.mubr.msk.bf16.mxu1 %vm3760_vm0, %v3759_v0  ;;  %v112_v4 = vsel %vm110_vm1, 4294967295, %v3761_v3  ;;  %v3537_v6 = vld [vmem:[%s4444_s4] sm:$0xff]   ;;  %v3534_v7 = vld [vmem:[#allocation7 + $0x10] sm:$0xff]   ;;  %vm106_vm3 = vcmask 433152   ;;  %v3539_v10 = vld [vmem:[%s4444_s4 + $0x10] sm:$0xff]   ;;  %vm321_vm4 = vcmask 261120  }
  0x29   :  { %3209 = vmatpush3.bf16.msra.mxu0 %v3532_v1  ;;  %v113_v8 = vsel %vm111_vm2, %v112_v4, 0  ;;  %3221 = vmatpush3.bf16.msra.mxu1 %v3537_v6  ;;  %v3538_v9 = vld [vmem:[%s4444_s4 + $0x8] sm:$0xff]   ;;  %v3536_v12 = vld [vmem:[#allocation4] sm:$0xff]   ;;  %v3540_v13 = vld [vmem:[%s4444_s4 + $0x18] sm:$0xff]   ;;  %v3762_v62 = vmov 0   ;;  %s3763_s25 = smov 32  }
  0x2a   :  { %3210 = vmatprep.subr.bf16.mxu0 %v3759_v0  ;;  %3222 = vmatprep.subr.bf16.mxu1 %v3759_v0  ;;  %v115_v11 = vand.u32 %v3535_v5, %v113_v8  ;;  %v3541_v14 = vld [vmem:[%s4444_s4 + $0x20] sm:$0xff]   ;;  %v3542_v15 = vld [vmem:[%s4444_s4 + $0x28] sm:$0xff]   ;;  %v3543_v16 = vld [vmem:[%s4444_s4 + $0x30] sm:$0xff]   ;;  %vm1675_vm5 = vcmask 1040384   ;;  %vm1679_vm6 = vcmask 1043456   ;;  %vm1681_vm7 = vcmask 1044480  }
  0x2b   :  { %v3544_v17 = vld [vmem:[%s4444_s4 + $0x38] sm:$0xff]   ;;  %v3022_v18 = vld [vmem:[%s4442_s2] ss:$0 sm:$0xff]  ;;  %v3546_v32 = vld [vmem:[%s4447_s7 + $0x8] sm:$0xff]   ;;  %vm1683_vm8 = vcmask 1045504   ;;  %vm1685_vm9 = vcmask 1046528  }
  0x2c   :  { %v3023_v20 = vld [vmem:[%s4443_s3] ss:$0 sm:$0xff]  ;;  %v3548_v47 = vld [vmem:[%s4449_s9 + $0x8] sm:$0xff]  }
  0x2d   :  { %3211 = vmatpush3.bf16.msra.mxu0 %v3533_v2  ;;  %3223 = vmatpush3.bf16.msra.mxu1 %v3538_v9  ;;  %v3545_v31 = vld [vmem:[%s4447_s7] sm:$0xff]   ;;  %v3949_v49 = vld [vmem:[%s4450_s10 + $0x8] sm:$0xff]  }
  0x2e   :  { %3212 = vmatprep.subr.bf16.mxu0 %v3759_v0  ;;  %3224 = vmatprep.subr.bf16.mxu1 %v3759_v0  ;;  %v3032_v33 = vld [vmem:[%s4445_s5] ss:$0 sm:$0xff] }
  0x2f   :  { %v3033_v35 = vld [vmem:[%s4446_s6] ss:$0 sm:$0xff] }
  0x30   :  { %v3547_v46 = vld [vmem:[%s4449_s9] sm:$0xff]  }
  0x31   :  { %3213 = vmatpush3.bf16.msra.mxu0 %v3534_v7  ;;  %3225 = vmatpush3.bf16.msra.mxu1 %v3539_v10  ;;  %v3942_v48 = vld [vmem:[%s4450_s10] sm:$0xff]  }
  0x32   :  { %3214 = vmatprep.subr.bf16.mxu0 %v3759_v0  ;;  %3226 = vmatprep.subr.bf16.mxu1 %v3759_v0  ;;  %v3037_v51 = vld [vmem:[%s4448_s8] ss:$0 sm:$0xff] }
  0x33   :  { %v3047_v2 = vld [vmem:[%s4451_s11] ss:$0 sm:$0xff] }
  0x35   :  { %3215 = vmatpush3.bf16.msra.mxu0 %v115_v11  ;;  %3227 = vmatpush3.bf16.msra.mxu1 %v3540_v13 }
  0x36   :  { %3240 = vmatprep.subr.bf16.mxu0 %v3759_v0  ;;  %3228 = vmatprep.subr.bf16.mxu1 %v3759_v0 }
  0x38   :  { %3217 = vmatmul.mubr.msk.bf16.vlgmr.msra.gmra.mrb[0].mxu0 %vm106_vm3, %v3536_v12 }
  0x39   :  { %3244 = vmatprep.mubr.msk.bf16.mxu0 %vm3760_vm0, %v3759_v0  ;;  %3229 = vmatpush3.bf16.msra.mxu1 %v3541_v14 }
  0x3a   :  { %3230 = vmatprep.subr.bf16.mxu1 %v3759_v0  ;;  %3241 = vmatpush3.bf16.msra.mxu0 %v3545_v31 }
  0x3b   :  { %3242 = vmatprep.subr.bf16.mxu0 %v3759_v0 }
  0x3d   :  { %3231 = vmatpush3.bf16.msra.mxu1 %v3542_v15 }
  0x3e   :  { %3232 = vmatprep.subr.bf16.mxu1 %v3759_v0  ;;  %3243 = vmatpush3.bf16.msra.mxu0 %v3546_v32 }
  0x3f   :  { %3248 = vmatprep.subr.bf16.mxu0 %v3759_v0 }
  0x41   :  { %3233 = vmatpush3.bf16.msra.mxu1 %v3543_v16 }
  0x42   :  { %3234 = vmatprep.subr.bf16.mxu1 %v3759_v0 }
  0x45   :  { %3235 = vmatpush3.bf16.msra.mxu1 %v3544_v17 }
  0x46   :  { %3264 = vmatprep.subr.bf16.mxu1 %v3759_v0 }
 0x10b   :  { %v151_v19 = vpop.f32.mrb[0].mxu0 }
 0x10c   :  { %v165_v21 = vmul.f32 %v3022_v18, %v151_v19  ;;  %v3218_v22 = vpop.f32.mrb[1].mxu0 }
 0x10d   :  { %v154_v23 = vpop.f32.mrb[2].mxu0 }
 0x10e   :  { %v174_v24 = vadd.f32 %v3023_v20, %v165_v21  ;;  %v166_v25 = vmul.f32 %v3022_v18, %v154_v23  ;;  %v3219_v26 = vpop.f32.mrb[3].mxu0 }
 0x110   :  { %v175_v27 = vadd.f32 %v3023_v20, %v166_v25  ;;  %v176_v28 = vmax.f32 %v174_v24, 0.0 }
 0x112   :  { %v177_v29 = vmax.f32 %v175_v27, 0.0 }
 0x114   :  { %v178_v30 = vpack.c.bf16 %v177_v29, %v176_v28 }
 0x116   :  { %3237 = vmatmul.mubr.bf16.vlgmr.msra.gmra.mrb[0].mxu1 %v178_v30 }
 0x117   :  { %3268 = vmatprep.mubr.msk.bf16.mxu1 %vm3760_vm0, %v3759_v0  ;;  %3265 = vmatpush3.bf16.msra.mxu1 %v3942_v48 }
 0x118   :  { %3266 = vmatprep.subr.bf16.mxu1 %v3759_v0 }
 0x11b   :  { %3267 = vmatpush3.bf16.msra.mxu1 %v3949_v49 }
 0x11c   :  { %3280 = vmatprep.subr.bf16.mxu1 %v3759_v0 }
 0x1e9   :  { %v277_v34 = vpop.f32.mrb[0].mxu1 }
 0x1ea   :  { %v291_v36 = vmul.f32 %v3032_v33, %v277_v34  ;;  %v3238_v37 = vpop.f32.mrb[1].mxu1 }
 0x1eb   :  { %v280_v38 = vpop.f32.mrb[2].mxu1 }
 0x1ec   :  { %v300_v39 = vadd.f32 %v3033_v35, %v291_v36  ;;  %v292_v40 = vmul.f32 %v3032_v33, %v280_v38  ;;  %v3239_v41 = vpop.f32.mrb[3].mxu1 }
 0x1ee   :  { %v301_v42 = vadd.f32 %v3033_v35, %v292_v40  ;;  %v302_v43 = vmax.f32 %v300_v39, 0.0 }
 0x1f0   :  { %v303_v44 = vmax.f32 %v301_v42, 0.0 }
 0x1f2   :  { %v304_v45 = vpack.c.bf16 %v303_v44, %v302_v43 }
 0x1f4   :  { %3245 = vmatmul.mubr.msk.bf16.vlgmr.msra.gmra.mrb[4].mxu0 %vm321_vm4, %v304_v45 }
 0x1f5   :  { %3252 = vmatprep.mubr.msk.bf16.mxu0 %vm3760_vm0, %v3759_v0  ;;  %3249 = vmatpush3.bf16.msra.mxu0 %v3547_v46 }
 0x1f6   :  { %3250 = vmatprep.subr.bf16.mxu0 %v3759_v0 }
 0x1f9   :  { %3251 = vmatpush3.bf16.msra.mxu0 %v3548_v47 }
 0x1fa   :  { %3256 = vmatprep.subr.bf16.mxu0 %v3759_v0 }
 0x2c7   :  { %v359_v50 = vpop.f32.mrb[4].mxu0 }
 0x2c8   :  { %v366_v52 = vmul.f32 %v3032_v33, %v359_v50  ;;  %v3246_v53 = vpop.f32.mrb[5].mxu0 }
 0x2c9   :  { %v362_v54 = vpop.f32.mrb[6].mxu0 }
 0x2ca   :  { %v375_v55 = vadd.f32 %v3037_v51, %v366_v52  ;;  %v367_v56 = vmul.f32 %v3032_v33, %v362_v54  ;;  %v3247_v57 = vpop.f32.mrb[7].mxu0 }
 0x2cc   :  { %v376_v58 = vadd.f32 %v3037_v51, %v367_v56  ;;  %v377_v59 = vmax.f32 %v375_v55, 0.0 }
 0x2ce   :  { %v378_v60 = vmax.f32 %v376_v58, 0.0 }
 0x2d0   :  { %v400_v61 = vpack.c.bf16 %v378_v60, %v377_v59 }
 0x2d2   :  { %3253 = vmatmul.mubr.msk.bf16.vlgmr.msra.gmra.mrb[8].mxu0 %vm321_vm4, %v400_v61 }
 0x2d3   :  { %3257 = vmatpush3.bf16.msra.mxu0 %v3942_v48  ;;  %3260 = vmatprep.mubr.msk.bf16.mxu0 %vm3760_vm0, %v3759_v0 }
 0x2d4   :  { %3258 = vmatprep.subr.bf16.mxu0 %v3759_v0 }
 0x2d7   :  { %3259 = vmatpush3.bf16.msra.mxu0 %v3949_v49 }
 0x2d8   :  { %3272 = vmatprep.subr.bf16.mxu0 %v3759_v0 }
 0x2da   :  { %3261 = vmatmul.mubr.bf16.vlgmr.msra.gmra.mrb[12].mxu0 %v3762_v62 }
 0x2db   :  { %3273 = vmatpush3.bf16.msra.mxu0 %v3942_v48  ;;  %3276 = vmatprep.mubr.msk.bf16.mxu0 %vm3760_vm0, %v3759_v0 }
 0x2dc   :  { %3274 = vmatprep.subr.bf16.mxu0 %v3759_v0 }
 0x2df   :  { %3275 = vmatpush3.bf16.msra.mxu0 %v3949_v49 }
 0x2e0   :  { %3288 = vmatprep.subr.bf16.mxu0 %v3759_v0 }
 0x3a5   :  { %v456_v63 = vpop.f32.mrb[8].mxu0 }
 0x3a6   :  { %v3254_v1 = vpop.f32.mrb[9].mxu0  ;;  %v3975_v6 = vadd.f32 %v3047_v2, %v456_v63 }
 0x3a7   :  { %v459_v3 = vpop.f32.mrb[10].mxu0 }
 0x3a8   :  { %v3973_v4 = vadd.f32 %v3047_v2, %v459_v3  ;;  %v3255_v5 = vpop.f32.mrb[11].mxu0 }
 0x3ad   :  { %v516_v7 = vpop.f32.mrb[12].mxu0 }
 0x3ae   :  { %v522_v8 = vadd.f32 %v516_v7, %v3975_v6  ;;  %v3262_v9 = vpop.f32.mrb[13].mxu0 }
 0x3af   :  { %v519_v10 = vpop.f32.mrb[14].mxu0 }
 0x3b0   :  { %3555 = vtanh.f32 %v522_v8  ;;  %v3263_v11 = vpop.f32.mrb[15].mxu0 }
 0x3ba   :  { %v3556_v12 = vpop.eup %3555 }
 0x3bb   :  { %528 = vrot.lane.b32.xlu0 %v3556_v12, %s3756_s13  ;;  %v524_v13 = vmul.f32 0.5, %v3556_v12 }
 0x3bd   :  { %v525_v14 = vadd.f32 0.5, %v524_v13 }
 0x3bf   :  { %v526_v17 = vmul.f32 0.0, %v525_v14 }
 0x42d   :  { %v529_v15 = vpop.permute.xlu0 %528 }
 0x42e   :  { %v531_v16 = vmul.f32 %v529_v15, %v525_v14 }
 0x430   :  { %533 = vrot.lane.b32.xlu0 %v531_v16, %s3763_s25 }
 0x4a2   :  { %v534_v18 = vpop.permute.xlu0 %533 }
 0x4a3   :  { %v536_v19 = vadd.f32 %v534_v18, %v526_v17 }
 0x4a5   :  { %3557 = vtanh.f32 %v536_v19  ;;  %v598_v36 = vrot.slane %v536_v19, 7 }
 0x4af   :  { %v3558_v20 = vpop.eup %3557 }
 0x4b0   :  { %539 = vrot.lane.b32.xlu1 %v3558_v20, %s3756_s13 }
 0x522   :  { %v540_v21 = vpop.permute.xlu1 %539 }
 0x523   :  { %v3981_v22 = vmul.f32 %v540_v21, %v525_v14 }
 0x525   :  { %v543_v23 = vpack.c.bf16 %v3981_v22, %v3981_v22 }
 0x527   :  { %545 = vrot.lane.b32.xlu1 %v543_v23, %s3763_s25 }
 0x599   :  { %v546_v24 = vpop.permute.xlu1 %545 }
 0x59a   :  { %3269 = vmatmul.mubr.msk.bf16.vlgmr.msra.gmra.mrb[4].mxu1 %vm321_vm4, %v546_v24 }
 0x59b   :  { %3281 = vmatpush3.bf16.msra.mxu1 %v3942_v48  ;;  %3284 = vmatprep.mubr.msk.bf16.mxu1 %vm3760_vm0, %v3759_v0 }
 0x59c   :  { %3282 = vmatprep.subr.bf16.mxu1 %v3759_v0 }
 0x59f   :  { %3283 = vmatpush3.bf16.msra.mxu1 %v3949_v49 }
 0x5a0   :  { %3296 = vmatprep.subr.bf16.mxu1 %v3759_v0 }
 0x66d   :  { %v584_v25 = vpop.f32.mrb[4].mxu1 }
 0x66e   :  { %v591_v26 = vrot.slane %v584_v25, 7  ;;  %v3270_v27 = vpop.f32.mrb[5].mxu1 }
 0x66f   :  { %v587_v28 = vpop.f32.mrb[6].mxu1 }
 0x670   :  { %v593_v29 = vadd.f32 %v591_v26, %v3975_v6  ;;  %v3271_v30 = vpop.f32.mrb[7].mxu1 }
 0x672   :  { %3559 = vtanh.f32 %v593_v29 }
 0x67c   :  { %v3560_v31 = vpop.eup %3559 }
 0x67d   :  { %602 = vrot.lane.b32.xlu0 %v3560_v31, %s3756_s13  ;;  %v595_v32 = vmul.f32 0.5, %v3560_v31 }
 0x67f   :  { %v596_v33 = vadd.f32 0.5, %v595_v32 }
 0x681   :  { %v600_v37 = vmul.f32 %v598_v36, %v596_v33 }
 0x6ef   :  { %v603_v34 = vpop.permute.xlu0 %602 }
 0x6f0   :  { %v605_v35 = vmul.f32 %v603_v34, %v596_v33 }
 0x6f2   :  { %607 = vrot.lane.b32.xlu1 %v605_v35, %s3763_s25 }
 0x764   :  { %v608_v38 = vpop.permute.xlu1 %607 }
 0x765   :  { %v610_v39 = vadd.f32 %v608_v38, %v600_v37 }
 0x767   :  { %3561 = vtanh.f32 %v610_v39  ;;  %v674_v59 = vrot.slane %v610_v39, 7 }
 0x771   :  { %v3562_v40 = vpop.eup %3561 }
 0x772   :  { %613 = vrot.lane.b32.xlu0 %v3562_v40, %s3756_s13 }
 0x7e4   :  { %v614_v41 = vpop.permute.xlu0 %613 }
 0x7e5   :  { %v616_v42 = vmul.f32 %v614_v41, %v596_v33 }
 0x7e7   :  { %v617_v43 = vpack.c.bf16 %v616_v42, %v616_v42  ;;  %v1676_v5 = vsel %vm1675_vm5, %v3981_v22, %v616_v42 }
 0x7e9   :  { %v619_v44 = vshrl.u32 %v617_v43, 16 }
 0x7eb   :  { %621 = vrot.lane.b32.xlu1 %v619_v44, %s3763_s25 }
 0x85d   :  { %v622_v45 = vpop.permute.xlu1 %621 }
 0x85e   :  { %3277 = vmatmul.mubr.msk.bf16.vlgmr.msra.gmra.mrb[16].mxu0 %vm321_vm4, %v622_v45 }
 0x85f   :  { %3289 = vmatpush3.bf16.msra.mxu0 %v3942_v48  ;;  %3292 = vmatprep.mubr.msk.bf16.mxu0 %vm3760_vm0, %v3759_v0 }
 0x860   :  { %3290 = vmatprep.subr.bf16.mxu0 %v3759_v0 }
 0x863   :  { %3291 = vmatpush3.bf16.msra.mxu0 %v3949_v49 }
 0x864   :  { %3304 = vmatprep.subr.bf16.mxu0 %v3759_v0 }
 0x931   :  { %v660_v46 = vpop.f32.mrb[16].mxu0 }
 0x932   :  { %v667_v47 = vrot.slane %v660_v46, 6  ;;  %v3278_v50 = vpop.f32.mrb[17].mxu0 }
 0x933   :  { %v663_v51 = vpop.f32.mrb[18].mxu0 }
 0x934   :  { %v669_v52 = vadd.f32 %v667_v47, %v3975_v6  ;;  %v3279_v53 = vpop.f32.mrb[19].mxu0 }
 0x936   :  { %3563 = vtanh.f32 %v669_v52 }
 0x940   :  { %v3564_v54 = vpop.eup %3563 }
 0x941   :  { %678 = vrot.lane.b32.xlu0 %v3564_v54, %s3756_s13  ;;  %v671_v55 = vmul.f32 0.5, %v3564_v54 }
 0x943   :  { %v672_v56 = vadd.f32 0.5, %v671_v55 }
 0x945   :  { %v676_v60 = vmul.f32 %v674_v59, %v672_v56 }
 0x9b3   :  { %v679_v57 = vpop.permute.xlu0 %678 }
 0x9b4   :  { %v681_v58 = vmul.f32 %v679_v57, %v672_v56 }
 0x9b6   :  { %683 = vrot.lane.b32.xlu1 %v681_v58, %s3763_s25 }
 0xa28   :  { %v684_v61 = vpop.permute.xlu1 %683 }
 0xa29   :  { %v686_v63 = vadd.f32 %v684_v61, %v676_v60 }
 0xa2b   :  { %3565 = vtanh.f32 %v686_v63  ;;  %v749_v22 = vrot.slane %v686_v63, 7 }
 0xa35   :  { %v3566_v1 = vpop.eup %3565 }
 0xa36   :  { %689 = vrot.lane.b32.xlu0 %v3566_v1, %s3756_s13 }
 0xaa8   :  { %v690_v2 = vpop.permute.xlu0 %689 }
 0xaa9   :  { %v692_v3 = vmul.f32 %v690_v2, %v672_v56 }
 0xaab   :  { %v693_v7 = vpack.c.bf16 %v692_v3, %v692_v3  ;;  %v1677_v8 = vsel %vm110_vm1, %v1676_v5, %v692_v3 }
 0xaad   :  { %v695_v9 = vrot.slane %v693_v7, 1 }
 0xaaf   :  { %696 = vrot.lane.b32.xlu1 %v695_v9, %s3763_s25 }
 0xb21   :  { %v697_v10 = vpop.permute.xlu1 %696 }
 0xb22   :  { %3285 = vmatmul.mubr.msk.bf16.vlgmr.msra.gmra.mrb[8].mxu1 %vm321_vm4, %v697_v10 }
 0xb23   :  { %3297 = vmatpush3.bf16.msra.mxu1 %v3942_v48  ;;  %3300 = vmatprep.mubr.msk.bf16.mxu1 %vm3760_vm0, %v3759_v0 }
 0xb24   :  { %3298 = vmatprep.subr.bf16.mxu1 %v3759_v0 }
 0xb27   :  { %3299 = vmatpush3.bf16.msra.mxu1 %v3949_v49 }
 0xb28   :  { %3312 = vmatprep.subr.bf16.mxu1 %v3759_v0 }
 0xbf5   :  { %v735_v11 = vpop.f32.mrb[8].mxu1 }
 0xbf6   :  { %v742_v12 = vrot.slane %v735_v11, 5  ;;  %v3286_v13 = vpop.f32.mrb[9].mxu1 }
 0xbf7   :  { %v738_v14 = vpop.f32.mrb[10].mxu1 }
 0xbf8   :  { %v744_v15 = vadd.f32 %v742_v12, %v3975_v6  ;;  %v3287_v16 = vpop.f32.mrb[11].mxu1 }
 0xbfa   :  { %3567 = vtanh.f32 %v744_v15 }
 0xc04   :  { %v3568_v17 = vpop.eup %3567 }
 0xc05   :  { %753 = vrot.lane.b32.xlu0 %v3568_v17, %s3756_s13  ;;  %v746_v18 = vmul.f32 0.5, %v3568_v17 }
 0xc07   :  { %v747_v19 = vadd.f32 0.5, %v746_v18 }
 0xc09   :  { %v751_v23 = vmul.f32 %v749_v22, %v747_v19 }
 0xc77   :  { %v754_v20 = vpop.permute.xlu0 %753 }
 0xc78   :  { %v756_v21 = vmul.f32 %v754_v20, %v747_v19 }
 0xc7a   :  { %758 = vrot.lane.b32.xlu1 %v756_v21, %s3763_s25 }
 0xcec   :  { %v759_v24 = vpop.permute.xlu1 %758 }
 0xced   :  { %v761_v25 = vadd.f32 %v759_v24, %v751_v23 }
 0xcef   :  { %3569 = vtanh.f32 %v761_v25  ;;  %v826_v45 = vrot.slane %v761_v25, 7 }
 0xcf9   :  { %v3570_v26 = vpop.eup %3569 }
 0xcfa   :  { %764 = vrot.lane.b32.xlu0 %v3570_v26, %s3756_s13 }
 0xd6c   :  { %v765_v27 = vpop.permute.xlu0 %764 }
 0xd6d   :  { %v767_v28 = vmul.f32 %v765_v27, %v747_v19 }
 0xd6f   :  { %v768_v29 = vpack.c.bf16 %v767_v28, %v767_v28  ;;  %v1678_v30 = vsel %vm111_vm2, %v1677_v8, %v767_v28 }
 0xd71   :  { %v770_v31 = vshrl.u32 %v768_v29, 16 }
 0xd73   :  { %v772_v32 = vrot.slane %v770_v31, 1 }
 0xd75   :  { %773 = vrot.lane.b32.xlu1 %v772_v32, %s3763_s25 }
 0xde7   :  { %v774_v33 = vpop.permute.xlu1 %773 }
 0xde8   :  { %3293 = vmatmul.mubr.msk.bf16.vlgmr.msra.gmra.mrb[20].mxu0 %vm321_vm4, %v774_v33 }
 0xde9   :  { %3305 = vmatpush3.bf16.msra.mxu0 %v3942_v48  ;;  %3308 = vmatprep.mubr.msk.bf16.mxu0 %vm3760_vm0, %v3759_v0 }
 0xdea   :  { %3306 = vmatprep.subr.bf16.mxu0 %v3759_v0 }
 0xded   :  { %3307 = vmatpush3.bf16.msra.mxu0 %v3949_v49 }
 0xdee   :  { %3320 = vmatprep.subr.bf16.mxu0 %v3759_v0 }
 0xebb   :  { %v812_v34 = vpop.f32.mrb[20].mxu0 }
 0xebc   :  { %v819_v35 = vrot.slane %v812_v34, 4  ;;  %v3294_v36 = vpop.f32.mrb[21].mxu0 }
 0xebd   :  { %v815_v37 = vpop.f32.mrb[22].mxu0 }
 0xebe   :  { %v821_v38 = vadd.f32 %v819_v35, %v3975_v6  ;;  %v3295_v39 = vpop.f32.mrb[23].mxu0 }
 0xec0   :  { %3571 = vtanh.f32 %v821_v38 }
 0xeca   :  { %v3572_v40 = vpop.eup %3571 }
 0xecb   :  { %830 = vrot.lane.b32.xlu0 %v3572_v40, %s3756_s13  ;;  %v823_v41 = vmul.f32 0.5, %v3572_v40 }
 0xecd   :  { %v824_v42 = vadd.f32 0.5, %v823_v41 }
 0xecf   :  { %v828_v46 = vmul.f32 %v826_v45, %v824_v42 }
 0xf3d   :  { %v831_v43 = vpop.permute.xlu0 %830 }
 0xf3e   :  { %v833_v44 = vmul.f32 %v831_v43, %v824_v42 }
 0xf40   :  { %835 = vrot.lane.b32.xlu1 %v833_v44, %s3763_s25 }
 0xfb2   :  { %v836_v47 = vpop.permute.xlu1 %835 }
 0xfb3   :  { %v838_v50 = vadd.f32 %v836_v47, %v828_v46 }
 0xfb5   :  { %3573 = vtanh.f32 %v838_v50  ;;  %v901_v9 = vrot.slane %v838_v50, 7 }
 0xfbf   :  { %v3574_v51 = vpop.eup %3573 }
 0xfc0   :  { %841 = vrot.lane.b32.xlu0 %v3574_v51, %s3756_s13 }
0x1032   :  { %v842_v52 = vpop.permute.xlu0 %841 }
0x1033   :  { %v844_v53 = vmul.f32 %v842_v52, %v824_v42 }
0x1035   :  { %v845_v54 = vpack.c.bf16 %v844_v53, %v844_v53  ;;  %v1680_v55 = vsel %vm1679_vm6, %v1678_v30, %v844_v53 }
0x1037   :  { %v847_v56 = vrot.slane %v845_v54, 2 }
0x1039   :  { %848 = vrot.lane.b32.xlu1 %v847_v56, %s3763_s25 }
0x10ab   :  { %v849_v57 = vpop.permute.xlu1 %848 }
0x10ac   :  { %3301 = vmatmul.mubr.msk.bf16.vlgmr.msra.gmra.mrb[12].mxu1 %vm321_vm4, %v849_v57 }
0x10ad   :  { %3313 = vmatpush3.bf16.msra.mxu1 %v3942_v48  ;;  %3316 = vmatprep.mubr.msk.bf16.mxu1 %vm3760_vm0, %v3759_v0 }
0x10ae   :  { %3314 = vmatprep.subr.bf16.mxu1 %v3759_v0 }
0x10b1   :  { %3315 = vmatpush3.bf16.msra.mxu1 %v3949_v49 }
0x10b2   :  { %3328 = vmatprep.subr.bf16.mxu1 %v3759_v0 }
0x117f   :  { %v887_v58 = vpop.f32.mrb[12].mxu1 }
0x1180   :  { %v894_v59 = vrot.slane %v887_v58, 3  ;;  %v3302_v60 = vpop.f32.mrb[13].mxu1 }
0x1181   :  { %v890_v61 = vpop.f32.mrb[14].mxu1 }
0x1182   :  { %v896_v63 = vadd.f32 %v894_v59, %v3975_v6  ;;  %v3303_v1 = vpop.f32.mrb[15].mxu1 }
0x1184   :  { %3575 = vtanh.f32 %v896_v63 }
0x118e   :  { %v3576_v2 = vpop.eup %3575 }
0x118f   :  { %905 = vrot.lane.b32.xlu0 %v3576_v2, %s3756_s13  ;;  %v898_v3 = vmul.f32 0.5, %v3576_v2 }
0x1191   :  { %v899_v5 = vadd.f32 0.5, %v898_v3 }
0x1193   :  { %v903_v10 = vmul.f32 %v901_v9, %v899_v5 }
0x1201   :  { %v906_v7 = vpop.permute.xlu0 %905 }
0x1202   :  { %v908_v8 = vmul.f32 %v906_v7, %v899_v5 }
0x1204   :  { %910 = vrot.lane.b32.xlu1 %v908_v8, %s3763_s25 }
0x1276   :  { %v911_v11 = vpop.permute.xlu1 %910 }
0x1277   :  { %v913_v12 = vadd.f32 %v911_v11, %v903_v10 }
0x1279   :  { %3577 = vtanh.f32 %v913_v12  ;;  %v978_v32 = vrot.slane %v913_v12, 7 }
0x1283   :  { %v3578_v13 = vpop.eup %3577 }
0x1284   :  { %916 = vrot.lane.b32.xlu0 %v3578_v13, %s3756_s13 }
0x12f6   :  { %v917_v14 = vpop.permute.xlu0 %916 }
0x12f7   :  { %v919_v15 = vmul.f32 %v917_v14, %v899_v5 }
0x12f9   :  { %v920_v16 = vpack.c.bf16 %v919_v15, %v919_v15  ;;  %v1682_v17 = vsel %vm1681_vm7, %v1680_v55, %v919_v15 }
0x12fb   :  { %v922_v18 = vshrl.u32 %v920_v16, 16 }
0x12fd   :  { %v924_v19 = vrot.slane %v922_v18, 2 }
0x12ff   :  { %925 = vrot.lane.b32.xlu1 %v924_v19, %s3763_s25 }
0x1371   :  { %v926_v20 = vpop.permute.xlu1 %925 }
0x1372   :  { %3309 = vmatmul.mubr.msk.bf16.vlgmr.msra.gmra.mrb[24].mxu0 %vm321_vm4, %v926_v20 }
0x1373   :  { %3321 = vmatpush3.bf16.msra.mxu0 %v3942_v48  ;;  %3324 = vmatprep.mubr.msk.bf16.mxu0 %vm3760_vm0, %v3759_v0 }
0x1374   :  { %3322 = vmatprep.subr.bf16.mxu0 %v3759_v0 }
0x1377   :  { %3323 = vmatpush3.bf16.msra.mxu0 %v3949_v49 }
0x1378   :  { %3336 = vmatprep.subr.bf16.mxu0 %v3759_v0 }
0x1445   :  { %v964_v21 = vpop.f32.mrb[24].mxu0 }
0x1446   :  { %v971_v22 = vrot.slane %v964_v21, 2  ;;  %v3310_v23 = vpop.f32.mrb[25].mxu0 }
0x1447   :  { %v967_v24 = vpop.f32.mrb[26].mxu0 }
0x1448   :  { %v973_v25 = vadd.f32 %v971_v22, %v3975_v6  ;;  %v3311_v26 = vpop.f32.mrb[27].mxu0 }
0x144a   :  { %3579 = vtanh.f32 %v973_v25 }
0x1454   :  { %v3580_v27 = vpop.eup %3579 }
0x1455   :  { %982 = vrot.lane.b32.xlu0 %v3580_v27, %s3756_s13  ;;  %v975_v28 = vmul.f32 0.5, %v3580_v27 }
0x1457   :  { %v976_v29 = vadd.f32 0.5, %v975_v28 }
0x1459   :  { %v980_v33 = vmul.f32 %v978_v32, %v976_v29 }
0x14c7   :  { %v983_v30 = vpop.permute.xlu0 %982 }
0x14c8   :  { %v985_v31 = vmul.f32 %v983_v30, %v976_v29 }
0x14ca   :  { %987 = vrot.lane.b32.xlu1 %v985_v31, %s3763_s25 }
0x153c   :  { %v988_v34 = vpop.permute.xlu1 %987 }
0x153d   :  { %v990_v35 = vadd.f32 %v988_v34, %v980_v33 }
0x153f   :  { %3581 = vtanh.f32 %v990_v35  ;;  %v1053_v56 = vrot.slane %v990_v35, 7 }
0x1549   :  { %v3582_v36 = vpop.eup %3581 }
0x154a   :  { %993 = vrot.lane.b32.xlu0 %v3582_v36, %s3756_s13 }
0x15bc   :  { %v994_v37 = vpop.permute.xlu0 %993 }
0x15bd   :  { %v996_v38 = vmul.f32 %v994_v37, %v976_v29 }
0x15bf   :  { %v997_v39 = vpack.c.bf16 %v996_v38, %v996_v38  ;;  %v1684_v40 = vsel %vm1683_vm8, %v1682_v17, %v996_v38 }
0x15c1   :  { %v999_v41 = vrot.slane %v997_v39, 3 }
0x15c3   :  { %1000 = vrot.lane.b32.xlu1 %v999_v41, %s3763_s25 }
0x1635   :  { %v1001_v42 = vpop.permute.xlu1 %1000 }
0x1636   :  { %3317 = vmatmul.mubr.msk.bf16.vlgmr.msra.gmra.mrb[16].mxu1 %vm321_vm4, %v1001_v42 }
0x1637   :  { %3329 = vmatpush3.bf16.msra.mxu1 %v3942_v48  ;;  %3332 = vmatprep.mubr.msk.bf16.mxu1 %vm3760_vm0, %v3759_v0 }
0x1638   :  { %3330 = vmatprep.subr.bf16.mxu1 %v3759_v0 }
0x163b   :  { %3331 = vmatpush3.bf16.msra.mxu1 %v3949_v49 }
0x163c   :  { %3344 = vmatprep.subr.bf16.mxu1 %v3759_v0 }
0x1709   :  { %v1039_v43 = vpop.f32.mrb[16].mxu1 }
0x170a   :  { %v1046_v44 = vrot.slane %v1039_v43, 1  ;;  %v3318_v45 = vpop.f32.mrb[17].mxu1 }
0x170b   :  { %v1042_v46 = vpop.f32.mrb[18].mxu1 }
0x170c   :  { %v1048_v47 = vadd.f32 %v1046_v44, %v3975_v6  ;;  %v3319_v50 = vpop.f32.mrb[19].mxu1 }
0x170e   :  { %3583 = vtanh.f32 %v1048_v47 }
0x1718   :  { %v3584_v51 = vpop.eup %3583 }
0x1719   :  { %1057 = vrot.lane.b32.xlu0 %v3584_v51, %s3756_s13  ;;  %v1050_v52 = vmul.f32 0.5, %v3584_v51 }
0x171b   :  { %v1051_v53 = vadd.f32 0.5, %v1050_v52 }
0x171d   :  { %v1055_v57 = vmul.f32 %v1053_v56, %v1051_v53 }
0x178b   :  { %v1058_v54 = vpop.permute.xlu0 %1057 }
0x178c   :  { %v1060_v55 = vmul.f32 %v1058_v54, %v1051_v53 }
0x178e   :  { %1062 = vrot.lane.b32.xlu1 %v1060_v55, %s3763_s25 }
0x1800   :  { %v1063_v58 = vpop.permute.xlu1 %1062 }
0x1801   :  { %v1065_v59 = vadd.f32 %v1063_v58, %v1055_v57 }
0x1803   :  { %3585 = vtanh.f32 %v1065_v59  ;;  %v1127_v17 = vrot.slane %v1065_v59, 7 }
0x180d   :  { %v3586_v60 = vpop.eup %3585 }
0x180e   :  { %1068 = vrot.lane.b32.xlu0 %v3586_v60, %s3756_s13 }
0x1880   :  { %v1069_v6 = vpop.permute.xlu0 %1068 }
0x1881   :  { %v1071_v61 = vmul.f32 %v1069_v6, %v1051_v53 }
0x1883   :  { %v1072_v63 = vpack.c.bf16 %v1071_v61, %v1071_v61  ;;  %v4077_v1 = vsel %vm1685_vm9, %v1684_v40, %v1071_v61 }
0x1885   :  { %v1074_v2 = vshrl.u32 %v1072_v63, 16 }
0x1887   :  { %v1076_v3 = vrot.slane %v1074_v2, 3 }
0x1889   :  { %1077 = vrot.lane.b32.xlu1 %v1076_v3, %s3763_s25 }
0x18fb   :  { %v1078_v5 = vpop.permute.xlu1 %1077 }
0x18fc   :  { %3325 = vmatmul.mubr.msk.bf16.vlgmr.msra.gmra.mrb[28].mxu0 %vm321_vm4, %v1078_v5 }
0x18fd   :  { %3337 = vmatpush3.bf16.msra.mxu0 %v3942_v48  ;;  %3340 = vmatprep.mubr.msk.bf16.mxu0 %vm3760_vm0, %v3759_v0 }
0x18fe   :  { %3338 = vmatprep.subr.bf16.mxu0 %v3759_v0 }
0x1901   :  { %3339 = vmatpush3.bf16.msra.mxu0 %v3949_v49 }
0x1902   :  { %3352 = vmatprep.subr.bf16.mxu0 %v3759_v0 }
0x19cf   :  { %v1116_v7 = vpop.f32.mrb[28].mxu0 }
0x19d0   :  { %v1122_v8 = vadd.f32 %v1116_v7, %v3973_v4  ;;  %v3326_v9 = vpop.f32.mrb[29].mxu0 }
0x19d1   :  { %v1119_v10 = vpop.f32.mrb[30].mxu0 }
0x19d2   :  { %3587 = vtanh.f32 %v1122_v8  ;;  %v3327_v11 = vpop.f32.mrb[31].mxu0 }
0x19dc   :  { %v3588_v12 = vpop.eup %3587 }
0x19dd   :  { %1131 = vrot.lane.b32.xlu0 %v3588_v12, %s3756_s13  ;;  %v1124_v13 = vmul.f32 0.5, %v3588_v12 }
0x19df   :  { %v1125_v14 = vadd.f32 0.5, %v1124_v13 }
0x19e1   :  { %v1129_v18 = vmul.f32 %v1127_v17, %v1125_v14 }
0x1a4f   :  { %v1132_v15 = vpop.permute.xlu0 %1131 }
0x1a50   :  { %v1134_v16 = vmul.f32 %v1132_v15, %v1125_v14 }
0x1a52   :  { %1136 = vrot.lane.b32.xlu1 %v1134_v16, %s3763_s25 }
0x1ac4   :  { %v1137_v19 = vpop.permute.xlu1 %1136 }
0x1ac5   :  { %v1139_v20 = vadd.f32 %v1137_v19, %v1129_v18 }
0x1ac7   :  { %3589 = vtanh.f32 %v1139_v20  ;;  %v1201_v37 = vrot.slane %v1139_v20, 7 }
0x1ad1   :  { %v3590_v21 = vpop.eup %3589 }
0x1ad2   :  { %1142 = vrot.lane.b32.xlu0 %v3590_v21, %s3756_s13 }
0x1b44   :  { %v1143_v22 = vpop.permute.xlu0 %1142 }
0x1b45   :  { %v4091_v23 = vmul.f32 %v1143_v22, %v1125_v14 }
0x1b47   :  { %v1146_v24 = vpack.c.bf16 %v4091_v23, %v4091_v23 }
0x1b49   :  { %1148 = vrot.lane.b32.xlu1 %v1146_v24, %s3763_s25 }
0x1bbb   :  { %v1149_v25 = vpop.permute.xlu1 %1148 }
0x1bbc   :  { %3333 = vmatmul.mubr.msk.bf16.vlgmr.msra.gmra.mrb[20].mxu1 %vm321_vm4, %v1149_v25 }
0x1bbd   :  { %3345 = vmatpush3.bf16.msra.mxu1 %v3942_v48  ;;  %3348 = vmatprep.mubr.msk.bf16.mxu1 %vm3760_vm0, %v3759_v0 }
0x1bbe   :  { %3346 = vmatprep.subr.bf16.mxu1 %v3759_v0 }
0x1bc1   :  { %3347 = vmatpush3.bf16.msra.mxu1 %v3949_v49 }
0x1bc2   :  { %3360 = vmatprep.subr.bf16.mxu1 %v3759_v0 }
0x1c8f   :  { %v1187_v26 = vpop.f32.mrb[20].mxu1 }
0x1c90   :  { %v1194_v27 = vrot.slane %v1187_v26, 7  ;;  %v3334_v28 = vpop.f32.mrb[21].mxu1 }
0x1c91   :  { %v1190_v29 = vpop.f32.mrb[22].mxu1 }
0x1c92   :  { %v1196_v30 = vadd.f32 %v1194_v27, %v3973_v4  ;;  %v3335_v31 = vpop.f32.mrb[23].mxu1 }
0x1c94   :  { %3591 = vtanh.f32 %v1196_v30 }
0x1c9e   :  { %v3592_v32 = vpop.eup %3591 }
0x1c9f   :  { %1205 = vrot.lane.b32.xlu0 %v3592_v32, %s3756_s13  ;;  %v1198_v33 = vmul.f32 0.5, %v3592_v32 }
0x1ca1   :  { %v1199_v34 = vadd.f32 0.5, %v1198_v33 }
0x1ca3   :  { %v1203_v38 = vmul.f32 %v1201_v37, %v1199_v34 }
0x1d11   :  { %v1206_v35 = vpop.permute.xlu0 %1205 }
0x1d12   :  { %v1208_v36 = vmul.f32 %v1206_v35, %v1199_v34 }
0x1d14   :  { %1210 = vrot.lane.b32.xlu1 %v1208_v36, %s3763_s25 }
0x1d86   :  { %v1211_v39 = vpop.permute.xlu1 %1210 }
0x1d87   :  { %v1213_v40 = vadd.f32 %v1211_v39, %v1203_v38 }
0x1d89   :  { %3593 = vtanh.f32 %v1213_v40  ;;  %v1277_v60 = vrot.slane %v1213_v40, 7 }
0x1d93   :  { %v3594_v41 = vpop.eup %3593 }
0x1d94   :  { %1216 = vrot.lane.b32.xlu0 %v3594_v41, %s3756_s13 }
0x1e06   :  { %v1217_v42 = vpop.permute.xlu0 %1216 }
0x1e07   :  { %v1219_v43 = vmul.f32 %v1217_v42, %v1199_v34 }
0x1e09   :  { %v1220_v44 = vpack.c.bf16 %v1219_v43, %v1219_v43  ;;  %v1687_v7 = vsel %vm1675_vm5, %v4091_v23, %v1219_v43 }
0x1e0b   :  { %v1222_v45 = vshrl.u32 %v1220_v44, 16 }
0x1e0d   :  { %1224 = vrot.lane.b32.xlu1 %v1222_v45, %s3763_s25 }
0x1e7f   :  { %v1225_v46 = vpop.permute.xlu1 %1224 }
0x1e80   :  { %3341 = vmatmul.mubr.msk.bf16.vlgmr.msra.gmra.mrb[32].mxu0 %vm321_vm4, %v1225_v46 }
0x1e81   :  { %3353 = vmatpush3.bf16.msra.mxu0 %v3942_v48  ;;  %3356 = vmatprep.mubr.msk.bf16.mxu0 %vm3760_vm0, %v3759_v0 }
0x1e82   :  { %3354 = vmatprep.subr.bf16.mxu0 %v3759_v0 }
0x1e85   :  { %3355 = vmatpush3.bf16.msra.mxu0 %v3949_v49 }
0x1e86   :  { %3368 = vmatprep.subr.bf16.mxu0 %v3759_v0 }
0x1f53   :  { %v1263_v47 = vpop.f32.mrb[32].mxu0 }
0x1f54   :  { %v1270_v50 = vrot.slane %v1263_v47, 6  ;;  %v3342_v51 = vpop.f32.mrb[33].mxu0 }
0x1f55   :  { %v1266_v52 = vpop.f32.mrb[34].mxu0 }
0x1f56   :  { %v1272_v53 = vadd.f32 %v1270_v50, %v3973_v4  ;;  %v3343_v54 = vpop.f32.mrb[35].mxu0 }
0x1f58   :  { %3595 = vtanh.f32 %v1272_v53 }
0x1f62   :  { %v3596_v55 = vpop.eup %3595 }
0x1f63   :  { %1281 = vrot.lane.b32.xlu0 %v3596_v55, %s3756_s13  ;;  %v1274_v56 = vmul.f32 0.5, %v3596_v55 }
0x1f65   :  { %v1275_v57 = vadd.f32 0.5, %v1274_v56 }
0x1f67   :  { %v1279_v6 = vmul.f32 %v1277_v60, %v1275_v57 }
0x1fd5   :  { %v1282_v58 = vpop.permute.xlu0 %1281 }
0x1fd6   :  { %v1284_v59 = vmul.f32 %v1282_v58, %v1275_v57 }
0x1fd8   :  { %1286 = vrot.lane.b32.xlu1 %v1284_v59, %s3763_s25 }
0x204a   :  { %v1287_v61 = vpop.permute.xlu1 %1286 }
0x204b   :  { %v1289_v63 = vadd.f32 %v1287_v61, %v1279_v6 }
0x204d   :  { %3597 = vtanh.f32 %v1289_v63  ;;  %v1352_v23 = vrot.slane %v1289_v63, 7 }
0x2057   :  { %v3598_v2 = vpop.eup %3597 }
0x2058   :  { %1292 = vrot.lane.b32.xlu0 %v3598_v2, %s3756_s13 }
0x20ca   :  { %v1293_v3 = vpop.permute.xlu0 %1292 }
0x20cb   :  { %v1295_v5 = vmul.f32 %v1293_v3, %v1275_v57 }
0x20cd   :  { %v1296_v8 = vpack.c.bf16 %v1295_v5, %v1295_v5  ;;  %v1688_v9 = vsel %vm110_vm1, %v1687_v7, %v1295_v5 }
0x20cf   :  { %v1298_v10 = vrot.slane %v1296_v8, 1 }
0x20d1   :  { %1299 = vrot.lane.b32.xlu1 %v1298_v10, %s3763_s25 }
0x2143   :  { %v1300_v11 = vpop.permute.xlu1 %1299 }
0x2144   :  { %3349 = vmatmul.mubr.msk.bf16.vlgmr.msra.gmra.mrb[24].mxu1 %vm321_vm4, %v1300_v11 }
0x2145   :  { %3361 = vmatpush3.bf16.msra.mxu1 %v3942_v48  ;;  %3364 = vmatprep.mubr.msk.bf16.mxu1 %vm3760_vm0, %v3759_v0 }
0x2146   :  { %3362 = vmatprep.subr.bf16.mxu1 %v3759_v0 }
0x2149   :  { %3363 = vmatpush3.bf16.msra.mxu1 %v3949_v49 }
0x214a   :  { %3376 = vmatprep.subr.bf16.mxu1 %v3759_v0 }
0x2217   :  { %v1338_v12 = vpop.f32.mrb[24].mxu1 }
0x2218   :  { %v1345_v13 = vrot.slane %v1338_v12, 5  ;;  %v3350_v14 = vpop.f32.mrb[25].mxu1 }
0x2219   :  { %v1341_v15 = vpop.f32.mrb[26].mxu1 }
0x221a   :  { %v1347_v16 = vadd.f32 %v1345_v13, %v3973_v4  ;;  %v3351_v17 = vpop.f32.mrb[27].mxu1 }
0x221c   :  { %3599 = vtanh.f32 %v1347_v16 }
0x2226   :  { %v3600_v18 = vpop.eup %3599 }
0x2227   :  { %1356 = vrot.lane.b32.xlu0 %v3600_v18, %s3756_s13  ;;  %v1349_v19 = vmul.f32 0.5, %v3600_v18 }
0x2229   :  { %v1350_v20 = vadd.f32 0.5, %v1349_v19 }
0x222b   :  { %v1354_v24 = vmul.f32 %v1352_v23, %v1350_v20 }
0x2299   :  { %v1357_v21 = vpop.permute.xlu0 %1356 }
0x229a   :  { %v1359_v22 = vmul.f32 %v1357_v21, %v1350_v20 }
0x229c   :  { %1361 = vrot.lane.b32.xlu1 %v1359_v22, %s3763_s25 }
0x230e   :  { %v1362_v25 = vpop.permute.xlu1 %1361 }
0x230f   :  { %v1364_v26 = vadd.f32 %v1362_v25, %v1354_v24 }
0x2311   :  { %3601 = vtanh.f32 %v1364_v26  ;;  %v1429_v46 = vrot.slane %v1364_v26, 7 }
0x231b   :  { %v3602_v27 = vpop.eup %3601 }
0x231c   :  { %1367 = vrot.lane.b32.xlu0 %v3602_v27, %s3756_s13 }
0x238e   :  { %v1368_v28 = vpop.permute.xlu0 %1367 }
0x238f   :  { %v1370_v29 = vmul.f32 %v1368_v28, %v1350_v20 }
0x2391   :  { %v1371_v30 = vpack.c.bf16 %v1370_v29, %v1370_v29  ;;  %v1689_v31 = vsel %vm111_vm2, %v1688_v9, %v1370_v29 }
0x2393   :  { %v1373_v32 = vshrl.u32 %v1371_v30, 16 }
0x2395   :  { %v1375_v33 = vrot.slane %v1373_v32, 1 }
0x2397   :  { %1376 = vrot.lane.b32.xlu1 %v1375_v33, %s3763_s25 }
0x2409   :  { %v1377_v34 = vpop.permute.xlu1 %1376 }
0x240a   :  { %3357 = vmatmul.mubr.msk.bf16.vlgmr.msra.gmra.mrb[36].mxu0 %vm321_vm4, %v1377_v34 }
0x240b   :  { %3369 = vmatpush3.bf16.msra.mxu0 %v3942_v48  ;;  %3372 = vmatprep.mubr.msk.bf16.mxu0 %vm3760_vm0, %v3759_v0 }
0x240c   :  { %3370 = vmatprep.subr.bf16.mxu0 %v3759_v0 }
0x240f   :  { %3371 = vmatpush3.bf16.msra.mxu0 %v3949_v49 }
0x2410   :  { %3384 = vmatprep.subr.bf16.mxu0 %v3759_v0 }
0x24dd   :  { %v1415_v35 = vpop.f32.mrb[36].mxu0 }
0x24de   :  { %v1422_v36 = vrot.slane %v1415_v35, 4  ;;  %v3358_v37 = vpop.f32.mrb[37].mxu0 }
0x24df   :  { %v1418_v38 = vpop.f32.mrb[38].mxu0 }
0x24e0   :  { %v1424_v39 = vadd.f32 %v1422_v36, %v3973_v4  ;;  %v3359_v40 = vpop.f32.mrb[39].mxu0 }
0x24e2   :  { %3603 = vtanh.f32 %v1424_v39 }
0x24ec   :  { %v3604_v41 = vpop.eup %3603 }
0x24ed   :  { %1433 = vrot.lane.b32.xlu0 %v3604_v41, %s3756_s13  ;;  %v1426_v42 = vmul.f32 0.5, %v3604_v41 }
0x24ef   :  { %v1427_v43 = vadd.f32 0.5, %v1426_v42 }
0x24f1   :  { %v1431_v47 = vmul.f32 %v1429_v46, %v1427_v43 }
0x255f   :  { %v1434_v44 = vpop.permute.xlu0 %1433 }
0x2560   :  { %v1436_v45 = vmul.f32 %v1434_v44, %v1427_v43 }
0x2562   :  { %1438 = vrot.lane.b32.xlu1 %v1436_v45, %s3763_s25 }
0x25d4   :  { %v1439_v50 = vpop.permute.xlu1 %1438 }
0x25d5   :  { %v1441_v51 = vadd.f32 %v1439_v50, %v1431_v47 }
0x25d7   :  { %3605 = vtanh.f32 %v1441_v51 }
0x25e1   :  { %v3606_v52 = vpop.eup %3605 }
0x25e2   :  { %1444 = vrot.lane.b32.xlu0 %v3606_v52, %s3756_s13 }
0x2654   :  { %v1445_v53 = vpop.permute.xlu0 %1444 }
0x2655   :  { %v1447_v54 = vmul.f32 %v1445_v53, %v1427_v43 }
0x2657   :  { %v1448_v55 = vpack.c.bf16 %v1447_v54, %v1447_v54  ;;  %v1690_v56 = vsel %vm1679_vm6, %v1689_v31, %v1447_v54 }
0x2659   :  { %v1450_v57 = vrot.slane %v1448_v55, 2 }
0x265b   :  { %1451 = vrot.lane.b32.xlu1 %v1450_v57, %s3763_s25 }
0x26cd   :  { %v1452_v58 = vpop.permute.xlu1 %1451 }
0x26ce   :  { %3365 = vmatmul.mubr.msk.bf16.vlgmr.msra.gmra.mrb[28].mxu1 %vm321_vm4, %v1452_v58 }
0x26cf   :  { %3377 = vmatpush3.bf16.msra.mxu1 %v3942_v48  ;;  %3380 = vmatprep.mubr.msk.bf16.mxu1 %vm3760_vm0, %v3759_v0 }
0x26d0   :  { %3378 = vmatprep.subr.bf16.mxu1 %v3759_v0 }
0x26d3   :  { %3379 = vmatpush3.bf16.msra.mxu1 %v3949_v49  ;;  %v1504_v49 = vrot.slane %v1441_v51, 7 }
0x26d4   :  { %3392 = vmatprep.subr.bf16.mxu1 %v3759_v0 }
0x27a1   :  { %v1490_v59 = vpop.f32.mrb[28].mxu1 }
0x27a2   :  { %v1497_v60 = vrot.slane %v1490_v59, 3  ;;  %v3366_v6 = vpop.f32.mrb[29].mxu1 }
0x27a3   :  { %v1493_v61 = vpop.f32.mrb[30].mxu1  ;;  %v4187_v6 = vld [vmem:[%s4450_s10 + $0x10] sm:$0xff]  }
0x27a4   :  { %v1499_v63 = vadd.f32 %v1497_v60, %v3973_v4  ;;  %v3367_v2 = vpop.f32.mrb[31].mxu1  ;;  %v3551_v60 = vld [vmem:[%s4449_s9 + $0x10] sm:$0xff]   ;;  %v4196_v61 = vld [vmem:[%s4450_s10 + $0x18] sm:$0xff]  }
0x27a6   :  { %3607 = vtanh.f32 %v1499_v63 }
0x27b0   :  { %v3608_v3 = vpop.eup %3607 }
0x27b1   :  { %1508 = vrot.lane.b32.xlu0 %v3608_v3, %s3756_s13  ;;  %v1501_v48 = vmul.f32 0.5, %v3608_v3 }
0x27b3   :  { %v1502_v5 = vadd.f32 0.5, %v1501_v48 }
0x27b5   :  { %v1506_v9 = vmul.f32 %v1504_v49, %v1502_v5 }
0x2823   :  { %v1509_v7 = vpop.permute.xlu0 %1508 }
0x2824   :  { %v1511_v8 = vmul.f32 %v1509_v7, %v1502_v5 }
0x2826   :  { %1513 = vrot.lane.b32.xlu1 %v1511_v8, %s3763_s25 }
0x2898   :  { %v1514_v10 = vpop.permute.xlu1 %1513 }
0x2899   :  { %v1516_v11 = vadd.f32 %v1514_v10, %v1506_v9 }
0x289b   :  { %3609 = vtanh.f32 %v1516_v11  ;;  %v1581_v31 = vrot.slane %v1516_v11, 7  ;;  %v3068_v11 = vld [vmem:[%s4451_s11 + $0x1] ss:$0 sm:$0xff]  ;;  %s3764_s11 = smov [#allocation9]  }
0x289c   :  { %s3003_s28 = sshll.u32 %s3764_s11, 4  ;;  %s3004_s28 = int_to_ptr.vmem [resolvable:$true] %s3003_s28 }
0x289d   :  { %s3727_s29 = scalar_lea.vmem %s3004_s28, 256  ;;  %p3732_p3 = scmp.lt.s32.totalorder %s3004_s28, %s3004_s28 }
0x289e   :  { %p3728_p2 = scmp.ne.s32.totalorder %s3004_s28, %s3727_s29  ;;  %p3733_p4 = scmp.lt.s32.totalorder %s3727_s29, %s3727_s29 }
0x28a0   :  { %p3734_p5 = por %p3733_p4, %p3732_p3 }
0x28a2   :  { %p3735_p6 = pnand %p3734_p5, %p3728_p2 }
0x28a5   :  { %v3610_v12 = vpop.eup %3609 }
0x28a6   :  { %1519 = vrot.lane.b32.xlu0 %v3610_v12, %s3756_s13 }
0x2918   :  { %v1520_v13 = vpop.permute.xlu0 %1519 }
0x2919   :  { %v1522_v14 = vmul.f32 %v1520_v13, %v1502_v5 }
0x291b   :  { %v1523_v15 = vpack.c.bf16 %v1522_v14, %v1522_v14  ;;  %v1691_v16 = vsel %vm1681_vm7, %v1690_v56, %v1522_v14 }
0x291d   :  { %v1525_v17 = vshrl.u32 %v1523_v15, 16 }
0x291f   :  { %v1527_v18 = vrot.slane %v1525_v17, 2 }
0x2921   :  { %1528 = vrot.lane.b32.xlu1 %v1527_v18, %s3763_s25 }
0x2993   :  { %v1529_v19 = vpop.permute.xlu1 %1528 }
0x2994   :  { %3373 = vmatmul.mubr.msk.bf16.vlgmr.msra.gmra.mrb[40].mxu0 %vm321_vm4, %v1529_v19 }
0x2995   :  { %3388 = vmatprep.mubr.msk.bf16.mxu0 %vm3760_vm0, %v3759_v0  ;;  %3385 = vmatpush3.bf16.msra.mxu0 %v3551_v60 }
0x2996   :  { %3386 = vmatprep.subr.bf16.mxu0 %v3759_v0 }
0x2a67   :  { %v1567_v20 = vpop.f32.mrb[40].mxu0 }
0x2a68   :  { %v1574_v21 = vrot.slane %v1567_v20, 2  ;;  %v3374_v22 = vpop.f32.mrb[41].mxu0 }
0x2a69   :  { %v1570_v23 = vpop.f32.mrb[42].mxu0 }
0x2a6a   :  { %v1576_v24 = vadd.f32 %v1574_v21, %v3973_v4  ;;  %v3375_v25 = vpop.f32.mrb[43].mxu0 }
0x2a6c   :  { %3611 = vtanh.f32 %v1576_v24 }
0x2a76   :  { %v3612_v26 = vpop.eup %3611 }
0x2a77   :  { %1585 = vrot.lane.b32.xlu0 %v3612_v26, %s3756_s13  ;;  %v1578_v27 = vmul.f32 0.5, %v3612_v26 }
0x2a79   :  { %v1579_v28 = vadd.f32 0.5, %v1578_v27 }
0x2a7b   :  { %v1583_v32 = vmul.f32 %v1581_v31, %v1579_v28 }
0x2ae9   :  { %v1586_v29 = vpop.permute.xlu0 %1585 }
0x2aea   :  { %v1588_v30 = vmul.f32 %v1586_v29, %v1579_v28 }
0x2aec   :  { %1590 = vrot.lane.b32.xlu1 %v1588_v30, %s3763_s25 }
0x2b5e   :  { %v1591_v33 = vpop.permute.xlu1 %1590 }
0x2b5f   :  { %v1593_v34 = vadd.f32 %v1591_v33, %v1583_v32 }
0x2b61   :  { %3613 = vtanh.f32 %v1593_v34  ;;  %v1656_v55 = vrot.slane %v1593_v34, 7 }
0x2b6b   :  { %v3614_v35 = vpop.eup %3613 }
0x2b6c   :  { %1596 = vrot.lane.b32.xlu0 %v3614_v35, %s3756_s13 }
0x2bde   :  { %v1597_v36 = vpop.permute.xlu0 %1596 }
0x2bdf   :  { %v1599_v37 = vmul.f32 %v1597_v36, %v1579_v28 }
0x2be1   :  { %v1600_v38 = vpack.c.bf16 %v1599_v37, %v1599_v37  ;;  %v1692_v39 = vsel %vm1683_vm8, %v1691_v16, %v1599_v37 }
0x2be3   :  { %v1602_v40 = vrot.slane %v1600_v38, 3 }
0x2be5   :  { %1603 = vrot.lane.b32.xlu1 %v1602_v40, %s3763_s25 }
0x2c57   :  { %v1604_v41 = vpop.permute.xlu1 %1603 }
0x2c58   :  { %3381 = vmatmul.mubr.msk.bf16.vlgmr.msra.gmra.mrb[32].mxu1 %vm321_vm4, %v1604_v41 }
0x2c59   :  { %3396 = vmatprep.mubr.msk.bf16.mxu1 %vm3760_vm0, %v3759_v0  ;;  %3393 = vmatpush3.bf16.msra.mxu1 %v4187_v6 }
0x2c5a   :  { %3394 = vmatprep.subr.bf16.mxu1 %v3759_v0 }
0x2c5d   :  { %3395 = vmatpush3.bf16.msra.mxu1 %v4196_v61 }
0x2c5e   :  { %3408 = vmatprep.subr.bf16.mxu1 %v3759_v0 }
0x2c60   :  { %3397 = vmatmul.mubr.bf16.vlgmr.msra.gmra.mrb[36].mxu1 %v3762_v62 }
0x2c61   :  { %3409 = vmatpush3.bf16.msra.mxu1 %v4187_v6  ;;  %3412 = vmatprep.mubr.msk.bf16.mxu1 %vm3760_vm0, %v3759_v0 }
0x2c62   :  { %3410 = vmatprep.subr.bf16.mxu1 %v3759_v0 }
0x2c65   :  { %3411 = vmatpush3.bf16.msra.mxu1 %v4196_v61 }
0x2c66   :  { %3424 = vmatprep.subr.bf16.mxu1 %v3759_v0 }
0x2d2b   :  { %v1642_v42 = vpop.f32.mrb[32].mxu1 }
0x2d2c   :  { %v1649_v43 = vrot.slane %v1642_v42, 1  ;;  %v3382_v44 = vpop.f32.mrb[33].mxu1 }
0x2d2d   :  { %v1645_v45 = vpop.f32.mrb[34].mxu1 }
0x2d2e   :  { %v1651_v46 = vadd.f32 %v1649_v43, %v3973_v4  ;;  %v3383_v47 = vpop.f32.mrb[35].mxu1 }
0x2d30   :  { %3615 = vtanh.f32 %v1651_v46 }
0x2d33   :  { %v1815_v8 = vpop.f32.mrb[36].mxu1 }
0x2d34   :  { %v3398_v49 = vpop.f32.mrb[37].mxu1 }
0x2d35   :  { %v1818_v9 = vpop.f32.mrb[38].mxu1 }
0x2d36   :  { %v3399_v10 = vpop.f32.mrb[39].mxu1 }
0x2d3a   :  { %v3616_v50 = vpop.eup %3615 }
0x2d3b   :  { %1660 = vrot.lane.b32.xlu0 %v3616_v50, %s3756_s13  ;;  %v1653_v51 = vmul.f32 0.5, %v3616_v50 }
0x2d3d   :  { %v1654_v52 = vadd.f32 0.5, %v1653_v51 }
0x2d3f   :  { %v1658_v56 = vmul.f32 %v1656_v55, %v1654_v52 }
0x2dad   :  { %v1661_v53 = vpop.permute.xlu0 %1660 }
0x2dae   :  { %v1663_v54 = vmul.f32 %v1661_v53, %v1654_v52 }
0x2db0   :  { %1665 = vrot.lane.b32.xlu1 %v1663_v54, %s3763_s25 }
0x2db4   :  { %1696 = vrot.lane.b32.xlu1 %v4077_v1, %s3763_s25  ;;  %v3553_v1 = vld [vmem:[%s4449_s9 + $0x18] sm:$0xff]  }
0x2db5   :  { %3387 = vmatpush3.bf16.msra.mxu0 %v3553_v1 }
0x2db6   :  { %3400 = vmatprep.subr.bf16.mxu0 %v3759_v0 }
0x2e22   :  { %v1666_v57 = vpop.permute.xlu1 %1665 }
0x2e23   :  { %v1668_v58 = vadd.f32 %v1666_v57, %v1658_v56 }
0x2e25   :  { %3617 = vtanh.f32 %v1668_v58 }
0x2e26   :  { %v1697_v4 = vpop.permute.xlu1 %1696 }
0x2e27   :  { %1702 = vst.msk [vmem:[#allocation2] sm:$0xff] %vm321_vm4, %v1697_v4 }
0x2e2e   :  { %v1704_v62 = vld [vmem:[#allocation2] sm:$0xff] }
0x2e2f   :  { %v3618_v59 = vpop.eup %3617 }
0x2e30   :  { %1671 = vrot.lane.b32.xlu0 %v3618_v59, %s3756_s13 }
0x2ea2   :  { %v1672_v63 = vpop.permute.xlu0 %1671 }
0x2ea3   :  { %v1674_v2 = vmul.f32 %v1672_v63, %v1654_v52 }
0x2ea5   :  { %v1693_v3 = vsel %vm1685_vm9, %v1692_v39, %v1674_v2 }
0x2ea6   :  { %1698 = vrot.lane.b32.xlu0 %v1693_v3, %s3763_s25 }
0x2f18   :  { %v1699_v48 = vpop.permute.xlu0 %1698 }
0x2f19   :  { %1703 = vst.msk [vmem:[#allocation2 + $0x8] sm:$0xff] %vm321_vm4, %v1699_v48 }
0x2f20   :  { %v1705_v5 = vld [vmem:[#allocation2 + $0x8] sm:$0xff] }
0x2f21   :  { %v1706_v7 = vpack.c.bf16 %v1705_v5, %v1704_v62 }
0x2f23   :  { %3389 = vmatmul.mubr.msk.bf16.vlgmr.msra.gmra.mrb[44].mxu0 %vm321_vm4, %v1706_v7 }
0x2f24   :  { %3401 = vmatpush3.bf16.msra.mxu0 %v4187_v6  ;;  %3404 = vmatprep.mubr.msk.bf16.mxu0 %vm3760_vm0, %v3759_v0 }
0x2f25   :  { %3402 = vmatprep.subr.bf16.mxu0 %v3759_v0 }
0x2f28   :  { %3403 = vmatpush3.bf16.msra.mxu0 %v4196_v61 }
0x2f29   :  { %3416 = vmatprep.subr.bf16.mxu0 %v3759_v0 }
0x2ff6   :  { %v1762_v12 = vpop.f32.mrb[44].mxu0 }
0x2ff7   :  { %v4223_v13 = vadd.f32 %v3068_v11, %v1762_v12  ;;  %v3390_v14 = vpop.f32.mrb[45].mxu0 }
0x2ff8   :  { %v1765_v15 = vpop.f32.mrb[46].mxu0 }
0x2ff9   :  { %v4225_v16 = vadd.f32 %v3068_v11, %v1765_v15  ;;  %v3391_v17 = vpop.f32.mrb[47].mxu0  ;;  %v1821_v18 = vadd.f32 %v1815_v8, %v4223_v13 }
0x2ffb   :  { %3619 = vtanh.f32 %v1821_v18 }
0x3005   :  { %v3620_v19 = vpop.eup %3619 }
0x3006   :  { %1827 = vrot.lane.b32.xlu1 %v3620_v19, %s3756_s13  ;;  %v1823_v20 = vmul.f32 0.5, %v3620_v19 }
0x3008   :  { %v1824_v21 = vadd.f32 0.5, %v1823_v20 }
0x300a   :  { %v1825_v24 = vmul.f32 0.0, %v1824_v21 }
0x3078   :  { %v1828_v22 = vpop.permute.xlu1 %1827 }
0x3079   :  { %v1830_v23 = vmul.f32 %v1828_v22, %v1824_v21 }
0x307b   :  { %1832 = vrot.lane.b32.xlu0 %v1830_v23, %s3763_s25 }
0x30ed   :  { %v1833_v25 = vpop.permute.xlu0 %1832 }
0x30ee   :  { %v1835_v26 = vadd.f32 %v1833_v25, %v1825_v24 }
0x30f0   :  { %3621 = vtanh.f32 %v1835_v26  ;;  %v1897_v43 = vrot.slane %v1835_v26, 7 }
0x30fa   :  { %v3622_v27 = vpop.eup %3621 }
0x30fb   :  { %1838 = vrot.lane.b32.xlu1 %v3622_v27, %s3756_s13 }
0x316d   :  { %v1839_v28 = vpop.permute.xlu1 %1838 }
0x316e   :  { %v4231_v29 = vmul.f32 %v1839_v28, %v1824_v21 }
0x3170   :  { %v1842_v30 = vpack.c.bf16 %v4231_v29, %v4231_v29 }
0x3172   :  { %1844 = vrot.lane.b32.xlu0 %v1842_v30, %s3763_s25 }
0x31e4   :  { %v1845_v31 = vpop.permute.xlu0 %1844 }
0x31e5   :  { %3405 = vmatmul.mubr.msk.bf16.vlgmr.msra.gmra.mrb[48].mxu0 %vm321_vm4, %v1845_v31 }
0x31e6   :  { %3417 = vmatpush3.bf16.msra.mxu0 %v4187_v6  ;;  %3420 = vmatprep.mubr.msk.bf16.mxu0 %vm3760_vm0, %v3759_v0 }
0x31e7   :  { %3418 = vmatprep.subr.bf16.mxu0 %v3759_v0 }
0x31ea   :  { %3419 = vmatpush3.bf16.msra.mxu0 %v4196_v61 }
0x31eb   :  { %3432 = vmatprep.subr.bf16.mxu0 %v3759_v0 }
0x32b8   :  { %v1883_v32 = vpop.f32.mrb[48].mxu0 }
0x32b9   :  { %v1890_v33 = vrot.slane %v1883_v32, 7  ;;  %v3406_v34 = vpop.f32.mrb[49].mxu0 }
0x32ba   :  { %v1886_v35 = vpop.f32.mrb[50].mxu0 }
0x32bb   :  { %v1892_v36 = vadd.f32 %v1890_v33, %v4223_v13  ;;  %v3407_v37 = vpop.f32.mrb[51].mxu0 }
0x32bd   :  { %3623 = vtanh.f32 %v1892_v36 }
0x32c7   :  { %v3624_v38 = vpop.eup %3623 }
0x32c8   :  { %1901 = vrot.lane.b32.xlu1 %v3624_v38, %s3756_s13  ;;  %v1894_v39 = vmul.f32 0.5, %v3624_v38 }
0x32ca   :  { %v1895_v40 = vadd.f32 0.5, %v1894_v39 }
0x32cc   :  { %v1899_v44 = vmul.f32 %v1897_v43, %v1895_v40 }
0x333a   :  { %v1902_v41 = vpop.permute.xlu1 %1901 }
0x333b   :  { %v1904_v42 = vmul.f32 %v1902_v41, %v1895_v40 }
0x333d   :  { %1906 = vrot.lane.b32.xlu0 %v1904_v42, %s3763_s25 }
0x33af   :  { %v1907_v45 = vpop.permute.xlu0 %1906 }
0x33b0   :  { %v1909_v46 = vadd.f32 %v1907_v45, %v1899_v44 }
0x33b2   :  { %3625 = vtanh.f32 %v1909_v46  ;;  %v1973_v48 = vrot.slane %v1909_v46, 7 }
0x33bc   :  { %v3626_v47 = vpop.eup %3625 }
0x33bd   :  { %1912 = vrot.lane.b32.xlu1 %v3626_v47, %s3756_s13 }
0x342f   :  { %v1913_v50 = vpop.permute.xlu1 %1912 }
0x3430   :  { %v1915_v51 = vmul.f32 %v1913_v50, %v1895_v40 }
0x3432   :  { %v1916_v52 = vpack.c.bf16 %v1915_v51, %v1915_v51  ;;  %v2974_v10 = vsel %vm1675_vm5, %v4231_v29, %v1915_v51 }
0x3434   :  { %v1918_v53 = vshrl.u32 %v1916_v52, 16 }
0x3436   :  { %1920 = vrot.lane.b32.xlu0 %v1918_v53, %s3763_s25 }
0x34a8   :  { %v1921_v54 = vpop.permute.xlu0 %1920 }
0x34a9   :  { %3413 = vmatmul.mubr.msk.bf16.vlgmr.msra.gmra.mrb[40].mxu1 %vm321_vm4, %v1921_v54 }
0x34aa   :  { %3425 = vmatpush3.bf16.msra.mxu1 %v4187_v6  ;;  %3428 = vmatprep.mubr.msk.bf16.mxu1 %vm3760_vm0, %v3759_v0 }
0x34ab   :  { %3426 = vmatprep.subr.bf16.mxu1 %v3759_v0 }
0x34ae   :  { %3427 = vmatpush3.bf16.msra.mxu1 %v4196_v61 }
0x34af   :  { %3440 = vmatprep.subr.bf16.mxu1 %v3759_v0 }
0x357c   :  { %v1959_v55 = vpop.f32.mrb[40].mxu1 }
0x357d   :  { %v1966_v56 = vrot.slane %v1959_v55, 6  ;;  %v3414_v57 = vpop.f32.mrb[41].mxu1 }
0x357e   :  { %v1962_v58 = vpop.f32.mrb[42].mxu1 }
0x357f   :  { %v1968_v4 = vadd.f32 %v1966_v56, %v4223_v13  ;;  %v3415_v59 = vpop.f32.mrb[43].mxu1 }
0x3581   :  { %3627 = vtanh.f32 %v1968_v4 }
0x358b   :  { %v3628_v60 = vpop.eup %3627 }
0x358c   :  { %1977 = vrot.lane.b32.xlu1 %v3628_v60, %s3756_s13  ;;  %v1970_v1 = vmul.f32 0.5, %v3628_v60 }
0x358e   :  { %v1971_v63 = vadd.f32 0.5, %v1970_v1 }
0x3590   :  { %v1975_v62 = vmul.f32 %v1973_v48, %v1971_v63 }
0x35fe   :  { %v1978_v2 = vpop.permute.xlu1 %1977 }
0x35ff   :  { %v1980_v3 = vmul.f32 %v1978_v2, %v1971_v63 }
0x3601   :  { %1982 = vrot.lane.b32.xlu0 %v1980_v3, %s3763_s25 }
0x3673   :  { %v1983_v5 = vpop.permute.xlu0 %1982 }
0x3674   :  { %v1985_v7 = vadd.f32 %v1983_v5, %v1975_v62 }
0x3676   :  { %3629 = vtanh.f32 %v1985_v7  ;;  %v2048_v28 = vrot.slane %v1985_v7, 7 }
0x3680   :  { %v3630_v8 = vpop.eup %3629 }
0x3681   :  { %1988 = vrot.lane.b32.xlu1 %v3630_v8, %s3756_s13 }
0x36f3   :  { %v1989_v49 = vpop.permute.xlu1 %1988 }
0x36f4   :  { %v1991_v9 = vmul.f32 %v1989_v49, %v1971_v63 }
0x36f6   :  { %v1992_v11 = vpack.c.bf16 %v1991_v9, %v1991_v9  ;;  %v2975_v12 = vsel %vm110_vm1, %v2974_v10, %v1991_v9 }
0x36f8   :  { %v1994_v14 = vrot.slane %v1992_v11, 1 }
0x36fa   :  { %1995 = vrot.lane.b32.xlu0 %v1994_v14, %s3763_s25 }
0x376c   :  { %v1996_v15 = vpop.permute.xlu0 %1995 }
0x376d   :  { %3421 = vmatmul.mubr.msk.bf16.vlgmr.msra.gmra.mrb[52].mxu0 %vm321_vm4, %v1996_v15 }
0x376e   :  { %3433 = vmatpush3.bf16.msra.mxu0 %v4187_v6  ;;  %3436 = vmatprep.mubr.msk.bf16.mxu0 %vm3760_vm0, %v3759_v0 }
0x376f   :  { %3434 = vmatprep.subr.bf16.mxu0 %v3759_v0 }
0x3772   :  { %3435 = vmatpush3.bf16.msra.mxu0 %v4196_v61 }
0x3773   :  { %3448 = vmatprep.subr.bf16.mxu0 %v3759_v0 }
0x3840   :  { %v2034_v17 = vpop.f32.mrb[52].mxu0 }
0x3841   :  { %v2041_v18 = vrot.slane %v2034_v17, 5  ;;  %v3422_v19 = vpop.f32.mrb[53].mxu0 }
0x3842   :  { %v2037_v20 = vpop.f32.mrb[54].mxu0 }
0x3843   :  { %v2043_v21 = vadd.f32 %v2041_v18, %v4223_v13  ;;  %v3423_v22 = vpop.f32.mrb[55].mxu0 }
0x3845   :  { %3631 = vtanh.f32 %v2043_v21 }
0x384f   :  { %v3632_v23 = vpop.eup %3631 }
0x3850   :  { %2052 = vrot.lane.b32.xlu1 %v3632_v23, %s3756_s13  ;;  %v2045_v24 = vmul.f32 0.5, %v3632_v23 }
0x3852   :  { %v2046_v25 = vadd.f32 0.5, %v2045_v24 }
0x3854   :  { %v2050_v29 = vmul.f32 %v2048_v28, %v2046_v25 }
0x38c2   :  { %v2053_v26 = vpop.permute.xlu1 %2052 }
0x38c3   :  { %v2055_v27 = vmul.f32 %v2053_v26, %v2046_v25 }
0x38c5   :  { %2057 = vrot.lane.b32.xlu0 %v2055_v27, %s3763_s25 }
0x3937   :  { %v2058_v30 = vpop.permute.xlu0 %2057 }
0x3938   :  { %v2060_v31 = vadd.f32 %v2058_v30, %v2050_v29 }
0x393a   :  { %3633 = vtanh.f32 %v2060_v31  ;;  %v2125_v53 = vrot.slane %v2060_v31, 7 }
0x3944   :  { %v3634_v32 = vpop.eup %3633 }
0x3945   :  { %2063 = vrot.lane.b32.xlu1 %v3634_v32, %s3756_s13 }
0x39b7   :  { %v2064_v33 = vpop.permute.xlu1 %2063 }
0x39b8   :  { %v2066_v34 = vmul.f32 %v2064_v33, %v2046_v25 }
0x39ba   :  { %v2067_v35 = vpack.c.bf16 %v2066_v34, %v2066_v34  ;;  %v2976_v36 = vsel %vm111_vm2, %v2975_v12, %v2066_v34 }
0x39bc   :  { %v2069_v37 = vshrl.u32 %v2067_v35, 16 }
0x39be   :  { %v2071_v38 = vrot.slane %v2069_v37, 1 }
0x39c0   :  { %2072 = vrot.lane.b32.xlu0 %v2071_v38, %s3763_s25 }
0x3a32   :  { %v2073_v39 = vpop.permute.xlu0 %2072 }
0x3a33   :  { %3429 = vmatmul.mubr.msk.bf16.vlgmr.msra.gmra.mrb[44].mxu1 %vm321_vm4, %v2073_v39 }
0x3a34   :  { %3441 = vmatpush3.bf16.msra.mxu1 %v4187_v6  ;;  %3444 = vmatprep.mubr.msk.bf16.mxu1 %vm3760_vm0, %v3759_v0 }
0x3a35   :  { %3442 = vmatprep.subr.bf16.mxu1 %v3759_v0 }
0x3a38   :  { %3443 = vmatpush3.bf16.msra.mxu1 %v4196_v61 }
0x3a39   :  { %3456 = vmatprep.subr.bf16.mxu1 %v3759_v0 }
0x3b06   :  { %v2111_v40 = vpop.f32.mrb[44].mxu1 }
0x3b07   :  { %v2118_v41 = vrot.slane %v2111_v40, 4  ;;  %v3430_v42 = vpop.f32.mrb[45].mxu1 }
0x3b08   :  { %v2114_v43 = vpop.f32.mrb[46].mxu1 }
0x3b09   :  { %v2120_v44 = vadd.f32 %v2118_v41, %v4223_v13  ;;  %v3431_v45 = vpop.f32.mrb[47].mxu1 }
0x3b0b   :  { %3635 = vtanh.f32 %v2120_v44 }
0x3b15   :  { %v3636_v46 = vpop.eup %3635 }
0x3b16   :  { %2129 = vrot.lane.b32.xlu1 %v3636_v46, %s3756_s13  ;;  %v2122_v47 = vmul.f32 0.5, %v3636_v46 }
0x3b18   :  { %v2123_v50 = vadd.f32 0.5, %v2122_v47 }
0x3b1a   :  { %v2127_v54 = vmul.f32 %v2125_v53, %v2123_v50 }
0x3b88   :  { %v2130_v51 = vpop.permute.xlu1 %2129 }
0x3b89   :  { %v2132_v52 = vmul.f32 %v2130_v51, %v2123_v50 }
0x3b8b   :  { %2134 = vrot.lane.b32.xlu0 %v2132_v52, %s3763_s25 }
0x3bfd   :  { %v2135_v55 = vpop.permute.xlu0 %2134 }
0x3bfe   :  { %v2137_v56 = vadd.f32 %v2135_v55, %v2127_v54 }
0x3c00   :  { %3637 = vtanh.f32 %v2137_v56  ;;  %v2200_v12 = vrot.slane %v2137_v56, 7 }
0x3c0a   :  { %v3638_v57 = vpop.eup %3637 }
0x3c0b   :  { %2140 = vrot.lane.b32.xlu1 %v3638_v57, %s3756_s13 }
0x3c7d   :  { %v2141_v58 = vpop.permute.xlu1 %2140 }
0x3c7e   :  { %v2143_v4 = vmul.f32 %v2141_v58, %v2123_v50 }
0x3c80   :  { %v2144_v59 = vpack.c.bf16 %v2143_v4, %v2143_v4  ;;  %v2977_v60 = vsel %vm1679_vm6, %v2976_v36, %v2143_v4 }
0x3c82   :  { %v2146_v1 = vrot.slane %v2144_v59, 2 }
0x3c84   :  { %2147 = vrot.lane.b32.xlu0 %v2146_v1, %s3763_s25 }
0x3cf6   :  { %v2148_v63 = vpop.permute.xlu0 %2147 }
0x3cf7   :  { %3437 = vmatmul.mubr.msk.bf16.vlgmr.msra.gmra.mrb[56].mxu0 %vm321_vm4, %v2148_v63 }
0x3cf8   :  { %3449 = vmatpush3.bf16.msra.mxu0 %v4187_v6  ;;  %3452 = vmatprep.mubr.msk.bf16.mxu0 %vm3760_vm0, %v3759_v0 }
0x3cf9   :  { %3450 = vmatprep.subr.bf16.mxu0 %v3759_v0 }
0x3cfc   :  { %3451 = vmatpush3.bf16.msra.mxu0 %v4196_v61 }
0x3cfd   :  { %3464 = vmatprep.subr.bf16.mxu0 %v3759_v0 }
0x3dca   :  { %v2186_v2 = vpop.f32.mrb[56].mxu0 }
0x3dcb   :  { %v2193_v3 = vrot.slane %v2186_v2, 3  ;;  %v3438_v48 = vpop.f32.mrb[57].mxu0 }
0x3dcc   :  { %v2189_v62 = vpop.f32.mrb[58].mxu0 }
0x3dcd   :  { %v2195_v5 = vadd.f32 %v2193_v3, %v4223_v13  ;;  %v3439_v7 = vpop.f32.mrb[59].mxu0 }
0x3dcf   :  { %3639 = vtanh.f32 %v2195_v5 }
0x3dd9   :  { %v3640_v8 = vpop.eup %3639 }
0x3dda   :  { %2204 = vrot.lane.b32.xlu1 %v3640_v8, %s3756_s13  ;;  %v2197_v49 = vmul.f32 0.5, %v3640_v8 }
0x3ddc   :  { %v2198_v9 = vadd.f32 0.5, %v2197_v49 }
0x3dde   :  { %v2202_v14 = vmul.f32 %v2200_v12, %v2198_v9 }
0x3e4c   :  { %v2205_v10 = vpop.permute.xlu1 %2204 }
0x3e4d   :  { %v2207_v11 = vmul.f32 %v2205_v10, %v2198_v9 }
0x3e4f   :  { %2209 = vrot.lane.b32.xlu0 %v2207_v11, %s3763_s25 }
0x3ec1   :  { %v2210_v15 = vpop.permute.xlu0 %2209 }
0x3ec2   :  { %v2212_v17 = vadd.f32 %v2210_v15, %v2202_v14 }
0x3ec4   :  { %3641 = vtanh.f32 %v2212_v17  ;;  %v2277_v37 = vrot.slane %v2212_v17, 7 }
0x3ece   :  { %v3642_v18 = vpop.eup %3641 }
0x3ecf   :  { %2215 = vrot.lane.b32.xlu1 %v3642_v18, %s3756_s13 }
0x3f41   :  { %v2216_v19 = vpop.permute.xlu1 %2215 }
0x3f42   :  { %v2218_v20 = vmul.f32 %v2216_v19, %v2198_v9 }
0x3f44   :  { %v2219_v21 = vpack.c.bf16 %v2218_v20, %v2218_v20  ;;  %v2978_v22 = vsel %vm1681_vm7, %v2977_v60, %v2218_v20 }
0x3f46   :  { %v2221_v23 = vshrl.u32 %v2219_v21, 16 }
0x3f48   :  { %v2223_v24 = vrot.slane %v2221_v23, 2 }
0x3f4a   :  { %2224 = vrot.lane.b32.xlu0 %v2223_v24, %s3763_s25 }
0x3fbc   :  { %v2225_v25 = vpop.permute.xlu0 %2224 }
0x3fbd   :  { %3445 = vmatmul.mubr.msk.bf16.vlgmr.msra.gmra.mrb[48].mxu1 %vm321_vm4, %v2225_v25 }
0x3fbe   :  { %3457 = vmatpush3.bf16.msra.mxu1 %v4187_v6  ;;  %3460 = vmatprep.mubr.msk.bf16.mxu1 %vm3760_vm0, %v3759_v0 }
0x3fbf   :  { %3458 = vmatprep.subr.bf16.mxu1 %v3759_v0 }
0x3fc2   :  { %3459 = vmatpush3.bf16.msra.mxu1 %v4196_v61 }
0x3fc3   :  { %3472 = vmatprep.subr.bf16.mxu1 %v3759_v0 }
0x4090   :  { %v2263_v26 = vpop.f32.mrb[48].mxu1 }
0x4091   :  { %v2270_v27 = vrot.slane %v2263_v26, 2  ;;  %v3446_v28 = vpop.f32.mrb[49].mxu1 }
0x4092   :  { %v2266_v29 = vpop.f32.mrb[50].mxu1 }
0x4093   :  { %v2272_v30 = vadd.f32 %v2270_v27, %v4223_v13  ;;  %v3447_v31 = vpop.f32.mrb[51].mxu1 }
0x4095   :  { %3643 = vtanh.f32 %v2272_v30 }
0x409f   :  { %v3644_v32 = vpop.eup %3643 }
0x40a0   :  { %2281 = vrot.lane.b32.xlu1 %v3644_v32, %s3756_s13  ;;  %v2274_v33 = vmul.f32 0.5, %v3644_v32 }
0x40a2   :  { %v2275_v34 = vadd.f32 0.5, %v2274_v33 }
0x40a4   :  { %v2279_v38 = vmul.f32 %v2277_v37, %v2275_v34 }
0x4112   :  { %v2282_v35 = vpop.permute.xlu1 %2281 }
0x4113   :  { %v2284_v36 = vmul.f32 %v2282_v35, %v2275_v34 }
0x4115   :  { %2286 = vrot.lane.b32.xlu0 %v2284_v36, %s3763_s25 }
0x4187   :  { %v2287_v39 = vpop.permute.xlu0 %2286 }
0x4188   :  { %v2289_v40 = vadd.f32 %v2287_v39, %v2279_v38 }
0x418a   :  { %3645 = vtanh.f32 %v2289_v40  ;;  %v2352_v60 = vrot.slane %v2289_v40, 7 }
0x4194   :  { %v3646_v41 = vpop.eup %3645 }
0x4195   :  { %2292 = vrot.lane.b32.xlu1 %v3646_v41, %s3756_s13 }
0x4207   :  { %v2293_v42 = vpop.permute.xlu1 %2292 }
0x4208   :  { %v2295_v43 = vmul.f32 %v2293_v42, %v2275_v34 }
0x420a   :  { %v2296_v44 = vpack.c.bf16 %v2295_v43, %v2295_v43  ;;  %v2979_v45 = vsel %vm1683_vm8, %v2978_v22, %v2295_v43 }
0x420c   :  { %v2298_v46 = vrot.slane %v2296_v44, 3 }
0x420e   :  { %2299 = vrot.lane.b32.xlu0 %v2298_v46, %s3763_s25 }
0x4280   :  { %v2300_v47 = vpop.permute.xlu0 %2299 }
0x4281   :  { %3453 = vmatmul.mubr.msk.bf16.vlgmr.msra.gmra.mrb[60].mxu0 %vm321_vm4, %v2300_v47 }
0x4282   :  { %3465 = vmatpush3.bf16.msra.mxu0 %v4187_v6  ;;  %3468 = vmatprep.mubr.msk.bf16.mxu0 %vm3760_vm0, %v3759_v0 }
0x4283   :  { %3466 = vmatprep.subr.bf16.mxu0 %v3759_v0 }
0x4286   :  { %3467 = vmatpush3.bf16.msra.mxu0 %v4196_v61 }
0x4287   :  { %3480 = vmatprep.subr.bf16.mxu0 %v3759_v0 }
0x4354   :  { %v2338_v50 = vpop.f32.mrb[60].mxu0 }
0x4355   :  { %v2345_v51 = vrot.slane %v2338_v50, 1  ;;  %v3454_v52 = vpop.f32.mrb[61].mxu0 }
0x4356   :  { %v2341_v53 = vpop.f32.mrb[62].mxu0 }
0x4357   :  { %v2347_v54 = vadd.f32 %v2345_v51, %v4223_v13  ;;  %v3455_v55 = vpop.f32.mrb[63].mxu0 }
0x4359   :  { %3647 = vtanh.f32 %v2347_v54 }
0x4363   :  { %v3648_v56 = vpop.eup %3647 }
0x4364   :  { %2356 = vrot.lane.b32.xlu1 %v3648_v56, %s3756_s13  ;;  %v2349_v57 = vmul.f32 0.5, %v3648_v56 }
0x4366   :  { %v2350_v58 = vadd.f32 0.5, %v2349_v57 }
0x4368   :  { %v2354_v1 = vmul.f32 %v2352_v60, %v2350_v58 }
0x43d6   :  { %v2357_v4 = vpop.permute.xlu1 %2356 }
0x43d7   :  { %v2359_v59 = vmul.f32 %v2357_v4, %v2350_v58 }
0x43d9   :  { %2361 = vrot.lane.b32.xlu0 %v2359_v59, %s3763_s25 }
0x444b   :  { %v2362_v63 = vpop.permute.xlu0 %2361 }
0x444c   :  { %v2364_v2 = vadd.f32 %v2362_v63, %v2354_v1 }
0x444e   :  { %3649 = vtanh.f32 %v2364_v2  ;;  %v2426_v21 = vrot.slane %v2364_v2, 7 }
0x4458   :  { %v3650_v3 = vpop.eup %3649 }
0x4459   :  { %2367 = vrot.lane.b32.xlu1 %v3650_v3, %s3756_s13 }
0x44cb   :  { %v2368_v13 = vpop.permute.xlu1 %2367 }
0x44cc   :  { %v2370_v48 = vmul.f32 %v2368_v13, %v2350_v58 }
0x44ce   :  { %v2371_v62 = vpack.c.bf16 %v2370_v48, %v2370_v48  ;;  %v4327_v5 = vsel %vm1685_vm9, %v2979_v45, %v2370_v48 }
0x44d0   :  { %v2373_v7 = vshrl.u32 %v2371_v62, 16 }
0x44d2   :  { %v2375_v8 = vrot.slane %v2373_v7, 3 }
0x44d4   :  { %2376 = vrot.lane.b32.xlu0 %v2375_v8, %s3763_s25 }
0x4546   :  { %v2377_v49 = vpop.permute.xlu0 %2376 }
0x4547   :  { %3461 = vmatmul.mubr.msk.bf16.vlgmr.msra.gmra.mrb[52].mxu1 %vm321_vm4, %v2377_v49 }
0x4548   :  { %3473 = vmatpush3.bf16.msra.mxu1 %v4187_v6  ;;  %3476 = vmatprep.mubr.msk.bf16.mxu1 %vm3760_vm0, %v3759_v0 }
0x4549   :  { %3474 = vmatprep.subr.bf16.mxu1 %v3759_v0 }
0x454c   :  { %3475 = vmatpush3.bf16.msra.mxu1 %v4196_v61 }
0x454d   :  { %3488 = vmatprep.subr.bf16.mxu1 %v3759_v0 }
0x461a   :  { %v2415_v9 = vpop.f32.mrb[52].mxu1 }
0x461b   :  { %v2421_v10 = vadd.f32 %v2415_v9, %v4225_v16  ;;  %v3462_v11 = vpop.f32.mrb[53].mxu1 }
0x461c   :  { %v2418_v12 = vpop.f32.mrb[54].mxu1 }
0x461d   :  { %3651 = vtanh.f32 %v2421_v10  ;;  %v3463_v14 = vpop.f32.mrb[55].mxu1 }
0x4627   :  { %v3652_v15 = vpop.eup %3651 }
0x4628   :  { %2430 = vrot.lane.b32.xlu1 %v3652_v15, %s3756_s13  ;;  %v2423_v17 = vmul.f32 0.5, %v3652_v15 }
0x462a   :  { %v2424_v18 = vadd.f32 0.5, %v2423_v17 }
0x462c   :  { %v2428_v22 = vmul.f32 %v2426_v21, %v2424_v18 }
0x469a   :  { %v2431_v19 = vpop.permute.xlu1 %2430 }
0x469b   :  { %v2433_v20 = vmul.f32 %v2431_v19, %v2424_v18 }
0x469d   :  { %2435 = vrot.lane.b32.xlu0 %v2433_v20, %s3763_s25 }
0x470f   :  { %v2436_v23 = vpop.permute.xlu0 %2435 }
0x4710   :  { %v2438_v24 = vadd.f32 %v2436_v23, %v2428_v22 }
0x4712   :  { %3653 = vtanh.f32 %v2438_v24  ;;  %v2500_v41 = vrot.slane %v2438_v24, 7 }
0x471c   :  { %v3654_v25 = vpop.eup %3653 }
0x471d   :  { %2441 = vrot.lane.b32.xlu1 %v3654_v25, %s3756_s13 }
0x478f   :  { %v2442_v26 = vpop.permute.xlu1 %2441 }
0x4790   :  { %v4341_v27 = vmul.f32 %v2442_v26, %v2424_v18 }
0x4792   :  { %v2445_v28 = vpack.c.bf16 %v4341_v27, %v4341_v27 }
0x4794   :  { %2447 = vrot.lane.b32.xlu0 %v2445_v28, %s3763_s25 }
0x4806   :  { %v2448_v29 = vpop.permute.xlu0 %2447 }
0x4807   :  { %3469 = vmatmul.mubr.msk.bf16.vlgmr.msra.gmra.mrb[64].mxu0 %vm321_vm4, %v2448_v29 }
0x4808   :  { %3481 = vmatpush3.bf16.msra.mxu0 %v4187_v6  ;;  %3484 = vmatprep.mubr.msk.bf16.mxu0 %vm3760_vm0, %v3759_v0 }
0x4809   :  { %3482 = vmatprep.subr.bf16.mxu0 %v3759_v0 }
0x480c   :  { %3483 = vmatpush3.bf16.msra.mxu0 %v4196_v61 }
0x480d   :  { %3496 = vmatprep.subr.bf16.mxu0 %v3759_v0 }
0x48da   :  { %v2486_v30 = vpop.f32.mrb[64].mxu0 }
0x48db   :  { %v2493_v31 = vrot.slane %v2486_v30, 7  ;;  %v3470_v32 = vpop.f32.mrb[65].mxu0 }
0x48dc   :  { %v2489_v33 = vpop.f32.mrb[66].mxu0 }
0x48dd   :  { %v2495_v34 = vadd.f32 %v2493_v31, %v4225_v16  ;;  %v3471_v35 = vpop.f32.mrb[67].mxu0 }
0x48df   :  { %3655 = vtanh.f32 %v2495_v34 }
0x48e9   :  { %v3656_v36 = vpop.eup %3655 }
0x48ea   :  { %2504 = vrot.lane.b32.xlu1 %v3656_v36, %s3756_s13  ;;  %v2497_v37 = vmul.f32 0.5, %v3656_v36 }
0x48ec   :  { %v2498_v38 = vadd.f32 0.5, %v2497_v37 }
0x48ee   :  { %v2502_v42 = vmul.f32 %v2500_v41, %v2498_v38 }
0x495c   :  { %v2505_v39 = vpop.permute.xlu1 %2504 }
0x495d   :  { %v2507_v40 = vmul.f32 %v2505_v39, %v2498_v38 }
0x495f   :  { %2509 = vrot.lane.b32.xlu0 %v2507_v40, %s3763_s25 }
0x49d1   :  { %v2510_v43 = vpop.permute.xlu0 %2509 }
0x49d2   :  { %v2512_v44 = vadd.f32 %v2510_v43, %v2502_v42 }
0x49d4   :  { %3657 = vtanh.f32 %v2512_v44  ;;  %v2576_v2 = vrot.slane %v2512_v44, 7 }
0x49de   :  { %v3658_v45 = vpop.eup %3657 }
0x49df   :  { %2515 = vrot.lane.b32.xlu1 %v3658_v45, %s3756_s13 }
0x4a51   :  { %v2516_v46 = vpop.permute.xlu1 %2515 }
0x4a52   :  { %v2518_v47 = vmul.f32 %v2516_v46, %v2498_v38 }
0x4a54   :  { %v2519_v50 = vpack.c.bf16 %v2518_v47, %v2518_v47  ;;  %v2981_v49 = vsel %vm1675_vm5, %v4341_v27, %v2518_v47 }
0x4a56   :  { %v2521_v51 = vshrl.u32 %v2519_v50, 16 }
0x4a58   :  { %2523 = vrot.lane.b32.xlu0 %v2521_v51, %s3763_s25 }
0x4aca   :  { %v2524_v52 = vpop.permute.xlu0 %2523 }
0x4acb   :  { %3477 = vmatmul.mubr.msk.bf16.vlgmr.msra.gmra.mrb[56].mxu1 %vm321_vm4, %v2524_v52 }
0x4acc   :  { %3489 = vmatpush3.bf16.msra.mxu1 %v4187_v6  ;;  %3492 = vmatprep.mubr.msk.bf16.mxu1 %vm3760_vm0, %v3759_v0 }
0x4acd   :  { %3490 = vmatprep.subr.bf16.mxu1 %v3759_v0 }
0x4ad0   :  { %3491 = vmatpush3.bf16.msra.mxu1 %v4196_v61 }
0x4ad1   :  { %3504 = vmatprep.subr.bf16.mxu1 %v3759_v0 }
0x4b9e   :  { %v2562_v53 = vpop.f32.mrb[56].mxu1 }
0x4b9f   :  { %v2569_v54 = vrot.slane %v2562_v53, 6  ;;  %v3478_v55 = vpop.f32.mrb[57].mxu1 }
0x4ba0   :  { %v2565_v56 = vpop.f32.mrb[58].mxu1 }
0x4ba1   :  { %v2571_v57 = vadd.f32 %v2569_v54, %v4225_v16  ;;  %v3479_v58 = vpop.f32.mrb[59].mxu1 }
0x4ba3   :  { %3659 = vtanh.f32 %v2571_v57 }
0x4bad   :  { %v3660_v4 = vpop.eup %3659 }
0x4bae   :  { %2580 = vrot.lane.b32.xlu1 %v3660_v4, %s3756_s13  ;;  %v2573_v59 = vmul.f32 0.5, %v3660_v4 }
0x4bb0   :  { %v2574_v60 = vadd.f32 0.5, %v2573_v59 }
0x4bb2   :  { %v2578_v3 = vmul.f32 %v2576_v2, %v2574_v60 }
0x4c20   :  { %v2581_v1 = vpop.permute.xlu1 %2580 }
0x4c21   :  { %v2583_v63 = vmul.f32 %v2581_v1, %v2574_v60 }
0x4c23   :  { %2585 = vrot.lane.b32.xlu0 %v2583_v63, %s3763_s25 }
0x4c95   :  { %v2586_v13 = vpop.permute.xlu0 %2585 }
0x4c96   :  { %v2588_v48 = vadd.f32 %v2586_v13, %v2578_v3 }
0x4c98   :  { %3661 = vtanh.f32 %v2588_v48  ;;  %v2651_v26 = vrot.slane %v2588_v48, 7 }
0x4ca2   :  { %v3662_v62 = vpop.eup %3661 }
0x4ca3   :  { %2591 = vrot.lane.b32.xlu1 %v3662_v62, %s3756_s13 }
0x4d15   :  { %v2592_v7 = vpop.permute.xlu1 %2591 }
0x4d16   :  { %v2594_v8 = vmul.f32 %v2592_v7, %v2574_v60 }
0x4d18   :  { %v2595_v9 = vpack.c.bf16 %v2594_v8, %v2594_v8  ;;  %v2982_v10 = vsel %vm110_vm1, %v2981_v49, %v2594_v8 }
0x4d1a   :  { %v2597_v11 = vrot.slane %v2595_v9, 1 }
0x4d1c   :  { %2598 = vrot.lane.b32.xlu0 %v2597_v11, %s3763_s25 }
0x4d8e   :  { %v2599_v12 = vpop.permute.xlu0 %2598 }
0x4d8f   :  { %3485 = vmatmul.mubr.msk.bf16.vlgmr.msra.gmra.mrb[68].mxu0 %vm321_vm4, %v2599_v12 }
0x4d90   :  { %3497 = vmatpush3.bf16.msra.mxu0 %v4187_v6  ;;  %3500 = vmatprep.mubr.msk.bf16.mxu0 %vm3760_vm0, %v3759_v0 }
0x4d91   :  { %3498 = vmatprep.subr.bf16.mxu0 %v3759_v0 }
0x4d94   :  { %3499 = vmatpush3.bf16.msra.mxu0 %v4196_v61 }
0x4d95   :  { %3512 = vmatprep.subr.bf16.mxu0 %v3759_v0 }
0x4e62   :  { %v2637_v14 = vpop.f32.mrb[68].mxu0 }
0x4e63   :  { %v2644_v15 = vrot.slane %v2637_v14, 5  ;;  %v3486_v17 = vpop.f32.mrb[69].mxu0 }
0x4e64   :  { %v2640_v18 = vpop.f32.mrb[70].mxu0 }
0x4e65   :  { %v2646_v19 = vadd.f32 %v2644_v15, %v4225_v16  ;;  %v3487_v20 = vpop.f32.mrb[71].mxu0 }
0x4e67   :  { %3663 = vtanh.f32 %v2646_v19 }
0x4e71   :  { %v3664_v21 = vpop.eup %3663 }
0x4e72   :  { %2655 = vrot.lane.b32.xlu1 %v3664_v21, %s3756_s13  ;;  %v2648_v22 = vmul.f32 0.5, %v3664_v21 }
0x4e74   :  { %v2649_v23 = vadd.f32 0.5, %v2648_v22 }
0x4e76   :  { %v2653_v27 = vmul.f32 %v2651_v26, %v2649_v23 }
0x4ee4   :  { %v2656_v24 = vpop.permute.xlu1 %2655 }
0x4ee5   :  { %v2658_v25 = vmul.f32 %v2656_v24, %v2649_v23 }
0x4ee7   :  { %2660 = vrot.lane.b32.xlu0 %v2658_v25, %s3763_s25 }
0x4f59   :  { %v2661_v28 = vpop.permute.xlu0 %2660 }
0x4f5a   :  { %v2663_v29 = vadd.f32 %v2661_v28, %v2653_v27 }
0x4f5c   :  { %3665 = vtanh.f32 %v2663_v29  ;;  %v2728_v51 = vrot.slane %v2663_v29, 7 }
0x4f66   :  { %v3666_v30 = vpop.eup %3665 }
0x4f67   :  { %2666 = vrot.lane.b32.xlu1 %v3666_v30, %s3756_s13 }
0x4fd9   :  { %v2667_v31 = vpop.permute.xlu1 %2666 }
0x4fda   :  { %v2669_v32 = vmul.f32 %v2667_v31, %v2649_v23 }
0x4fdc   :  { %v2670_v33 = vpack.c.bf16 %v2669_v32, %v2669_v32  ;;  %v2983_v34 = vsel %vm111_vm2, %v2982_v10, %v2669_v32 }
0x4fde   :  { %v2672_v35 = vshrl.u32 %v2670_v33, 16 }
0x4fe0   :  { %v2674_v36 = vrot.slane %v2672_v35, 1 }
0x4fe2   :  { %2675 = vrot.lane.b32.xlu0 %v2674_v36, %s3763_s25 }
0x5054   :  { %v2676_v37 = vpop.permute.xlu0 %2675 }
0x5055   :  { %3493 = vmatmul.mubr.msk.bf16.vlgmr.msra.gmra.mrb[60].mxu1 %vm321_vm4, %v2676_v37 }
0x5056   :  { %3505 = vmatpush3.bf16.msra.mxu1 %v4187_v6  ;;  %3508 = vmatprep.mubr.msk.bf16.mxu1 %vm3760_vm0, %v3759_v0 }
0x5057   :  { %3506 = vmatprep.subr.bf16.mxu1 %v3759_v0 }
0x505a   :  { %3507 = vmatpush3.bf16.msra.mxu1 %v4196_v61 }
0x5128   :  { %v2714_v38 = vpop.f32.mrb[60].mxu1 }
0x5129   :  { %v2721_v39 = vrot.slane %v2714_v38, 4  ;;  %v3494_v40 = vpop.f32.mrb[61].mxu1 }
0x512a   :  { %v2717_v41 = vpop.f32.mrb[62].mxu1 }
0x512b   :  { %v2723_v42 = vadd.f32 %v2721_v39, %v4225_v16  ;;  %v3495_v43 = vpop.f32.mrb[63].mxu1 }
0x512d   :  { %3667 = vtanh.f32 %v2723_v42 }
0x5137   :  { %v3668_v44 = vpop.eup %3667 }
0x5138   :  { %2732 = vrot.lane.b32.xlu1 %v3668_v44, %s3756_s13  ;;  %v2725_v45 = vmul.f32 0.5, %v3668_v44 }
0x513a   :  { %v2726_v46 = vadd.f32 0.5, %v2725_v45 }
0x513c   :  { %v2730_v52 = vmul.f32 %v2728_v51, %v2726_v46 }
0x51aa   :  { %v2733_v47 = vpop.permute.xlu1 %2732 }
0x51ab   :  { %v2735_v50 = vmul.f32 %v2733_v47, %v2726_v46 }
0x51ad   :  { %2737 = vrot.lane.b32.xlu0 %v2735_v50, %s3763_s25 }
0x521f   :  { %v2738_v53 = vpop.permute.xlu0 %2737 }
0x5220   :  { %v2740_v54 = vadd.f32 %v2738_v53, %v2730_v52 }
0x5222   :  { %3669 = vtanh.f32 %v2740_v54 }
0x522c   :  { %v3670_v55 = vpop.eup %3669 }
0x522d   :  { %2743 = vrot.lane.b32.xlu1 %v3670_v55, %s3756_s13 }
0x529f   :  { %v2744_v56 = vpop.permute.xlu1 %2743 }
0x52a0   :  { %v2746_v57 = vmul.f32 %v2744_v56, %v2726_v46 }
0x52a2   :  { %v2747_v58 = vpack.c.bf16 %v2746_v57, %v2746_v57  ;;  %v2984_v4 = vsel %vm1679_vm6, %v2983_v34, %v2746_v57 }
0x52a4   :  { %v2749_v59 = vrot.slane %v2747_v58, 2 }
0x52a6   :  { %2750 = vrot.lane.b32.xlu0 %v2749_v59, %s3763_s25 }
0x5318   :  { %v2751_v60 = vpop.permute.xlu0 %2750 }
0x5319   :  { %3501 = vmatmul.mubr.msk.bf16.vlgmr.msra.gmra.mrb[72].mxu0 %vm321_vm4, %v2751_v60 }
0x531a   :  { %3513 = vmatpush3.bf16.msra.mxu0 %v4187_v6  ;;  %3516 = vmatprep.mubr.msk.bf16.mxu0 %vm3760_vm0, %v3759_v0 }
0x531b   :  { %3514 = vmatprep.subr.bf16.mxu0 %v3759_v0  ;;  %v2803_v0 = vrot.slane %v2740_v54, 7 }
0x531e   :  { %3515 = vmatpush3.bf16.msra.mxu0 %v4196_v61 }
0x53ec   :  { %v2789_v1 = vpop.f32.mrb[72].mxu0 }
0x53ed   :  { %v2796_v63 = vrot.slane %v2789_v1, 3  ;;  %v3502_v2 = vpop.f32.mrb[73].mxu0 }
0x53ee   :  { %v2792_v3 = vpop.f32.mrb[74].mxu0 }
0x53ef   :  { %v2798_v13 = vadd.f32 %v2796_v63, %v4225_v16  ;;  %v3503_v48 = vpop.f32.mrb[75].mxu0 }
0x53f1   :  { %3671 = vtanh.f32 %v2798_v13 }
0x53fb   :  { %v3672_v62 = vpop.eup %3671 }
0x53fc   :  { %2807 = vrot.lane.b32.xlu1 %v3672_v62, %s3756_s13  ;;  %v2800_v7 = vmul.f32 0.5, %v3672_v62 }
0x53fe   :  { %v2801_v6 = vadd.f32 0.5, %v2800_v7 }
0x5400   :  { %v2805_v9 = vmul.f32 %v2803_v0, %v2801_v6 }
0x546e   :  { %v2808_v8 = vpop.permute.xlu1 %2807 }
0x546f   :  { %v2810_v49 = vmul.f32 %v2808_v8, %v2801_v6 }
0x5471   :  { %2812 = vrot.lane.b32.xlu0 %v2810_v49, %s3763_s25 }
0x54e3   :  { %v2813_v61 = vpop.permute.xlu0 %2812 }
0x54e4   :  { %v2815_v10 = vadd.f32 %v2813_v61, %v2805_v9 }
0x54e6   :  { %3673 = vtanh.f32 %v2815_v10  ;;  %v2880_v32 = vrot.slane %v2815_v10, 7 }
0x54f0   :  { %v3674_v11 = vpop.eup %3673 }
0x54f1   :  { %2818 = vrot.lane.b32.xlu1 %v3674_v11, %s3756_s13 }
0x5563   :  { %v2819_v12 = vpop.permute.xlu1 %2818 }
0x5564   :  { %v2821_v14 = vmul.f32 %v2819_v12, %v2801_v6 }
0x5566   :  { %v2822_v15 = vpack.c.bf16 %v2821_v14, %v2821_v14  ;;  %v2985_v17 = vsel %vm1681_vm7, %v2984_v4, %v2821_v14 }
0x5568   :  { %v2824_v18 = vshrl.u32 %v2822_v15, 16 }
0x556a   :  { %v2826_v19 = vrot.slane %v2824_v18, 2 }
0x556c   :  { %2827 = vrot.lane.b32.xlu0 %v2826_v19, %s3763_s25 }
0x55de   :  { %v2828_v20 = vpop.permute.xlu0 %2827 }
0x55df   :  { %3509 = vmatmul.mubr.msk.bf16.vlgmr.msra.gmra.mrb[64].mxu1 %vm321_vm4, %v2828_v20 }
0x56b2   :  { %v2866_v21 = vpop.f32.mrb[64].mxu1 }
0x56b3   :  { %v2873_v22 = vrot.slane %v2866_v21, 2  ;;  %v3510_v23 = vpop.f32.mrb[65].mxu1 }
0x56b4   :  { %v2869_v24 = vpop.f32.mrb[66].mxu1 }
0x56b5   :  { %v2875_v25 = vadd.f32 %v2873_v22, %v4225_v16  ;;  %v3511_v26 = vpop.f32.mrb[67].mxu1 }
0x56b7   :  { %3675 = vtanh.f32 %v2875_v25 }
0x56c1   :  { %v3676_v27 = vpop.eup %3675 }
0x56c2   :  { %2884 = vrot.lane.b32.xlu1 %v3676_v27, %s3756_s13  ;;  %v2877_v28 = vmul.f32 0.5, %v3676_v27 }
0x56c4   :  { %v2878_v29 = vadd.f32 0.5, %v2877_v28 }
0x56c6   :  { %v2882_v33 = vmul.f32 %v2880_v32, %v2878_v29 }
0x5734   :  { %v2885_v30 = vpop.permute.xlu1 %2884 }
0x5735   :  { %v2887_v31 = vmul.f32 %v2885_v30, %v2878_v29 }
0x5737   :  { %2889 = vrot.lane.b32.xlu0 %v2887_v31, %s3763_s25 }
0x57a9   :  { %v2890_v34 = vpop.permute.xlu0 %2889 }
0x57aa   :  { %v2892_v35 = vadd.f32 %v2890_v34, %v2882_v33 }
0x57ac   :  { %3677 = vtanh.f32 %v2892_v35  ;;  %v2955_v56 = vrot.slane %v2892_v35, 7 }
0x57b6   :  { %v3678_v36 = vpop.eup %3677 }
0x57b7   :  { %2895 = vrot.lane.b32.xlu1 %v3678_v36, %s3756_s13 }
0x5829   :  { %v2896_v37 = vpop.permute.xlu1 %2895 }
0x582a   :  { %v2898_v38 = vmul.f32 %v2896_v37, %v2878_v29 }
0x582c   :  { %v2899_v39 = vpack.c.bf16 %v2898_v38, %v2898_v38  ;;  %v2986_v40 = vsel %vm1683_vm8, %v2985_v17, %v2898_v38 }
0x582e   :  { %v2901_v41 = vrot.slane %v2899_v39, 3 }
0x5830   :  { %2902 = vrot.lane.b32.xlu0 %v2901_v41, %s3763_s25 }
0x58a2   :  { %v2903_v42 = vpop.permute.xlu0 %2902 }
0x58a3   :  { %3517 = vmatmul.mubr.msk.bf16.vlgmr.msra.gmra.mrb[76].mxu0 %vm321_vm4, %v2903_v42 }
0x5976   :  { %v2941_v43 = vpop.f32.mrb[76].mxu0 }
0x5977   :  { %v2948_v44 = vrot.slane %v2941_v43, 1  ;;  %v3518_v45 = vpop.f32.mrb[77].mxu0 }
0x5978   :  { %v2944_v46 = vpop.f32.mrb[78].mxu0 }
0x5979   :  { %v2950_v47 = vadd.f32 %v2948_v44, %v4225_v16  ;;  %v3519_v50 = vpop.f32.mrb[79].mxu0 }
0x597b   :  { %3679 = vtanh.f32 %v2950_v47 }
0x5985   :  { %v3680_v51 = vpop.eup %3679 }
0x5986   :  { %2959 = vrot.lane.b32.xlu1 %v3680_v51, %s3756_s13  ;;  %v2952_v52 = vmul.f32 0.5, %v3680_v51 }
0x5988   :  { %v2953_v53 = vadd.f32 0.5, %v2952_v52 }
0x598a   :  { %v2957_v57 = vmul.f32 %v2955_v56, %v2953_v53 }
0x59f8   :  { %v2960_v54 = vpop.permute.xlu1 %2959 }
0x59f9   :  { %v2962_v55 = vmul.f32 %v2960_v54, %v2953_v53 }
0x59fb   :  { %2964 = vrot.lane.b32.xlu0 %v2962_v55, %s3763_s25 }
0x59ff   :  { %2990 = vrot.lane.b32.xlu0 %v4327_v5, %s3763_s25 }
0x5a6d   :  { %v2965_v58 = vpop.permute.xlu0 %2964 }
0x5a6e   :  { %v2967_v4 = vadd.f32 %v2965_v58, %v2957_v57 }
0x5a70   :  { %3681 = vtanh.f32 %v2967_v4 }
0x5a71   :  { %v2991_v16 = vpop.permute.xlu0 %2990 }
0x5a72   :  { %2996 = vst.msk [vmem:[#allocation9] sm:$0xff] %vm321_vm4, %v2991_v16 }
0x5a7a   :  { %v3682_v59 = vpop.eup %3681 }
0x5a7b   :  { %2970 = vrot.lane.b32.xlu1 %v3682_v59, %s3756_s13 }
0x5aed   :  { %v2971_v60 = vpop.permute.xlu1 %2970 }
0x5aee   :  { %v2973_v1 = vmul.f32 %v2971_v60, %v2953_v53 }
0x5af0   :  { %v2987_v63 = vsel %vm1685_vm9, %v2986_v40, %v2973_v1 }
0x5af1   :  { %2992 = vrot.lane.b32.xlu1 %v2987_v63, %s3763_s25 }
0x5b63   :  { %v2993_v5 = vpop.permute.xlu1 %2992 }
0x5b64   :  { %2997 = vst.msk [vmem:[#allocation9 + $0x8] sm:$0xff] %vm321_vm4, %v2993_v5 }
0x5b65   :  { %3738 = shalt.err (!%p3735_p6)
}
0x5b66   :  { %s3739_s14 = scalar_lea.hbm %s4452_s12, 256 }
0x5b67   :  { %p3740_p7 = scmp.ne.s32.totalorder %s4452_s12, %s3739_s14  ;;  %p3743_p8 = scmp.lt.u32.totalorder %s3739_s14, %s4452_s12 }
0x5b69   :  { %p3745_p9 = pnand %p3743_p8, %p3740_p7 }
0x5b6b   :  { %3748 = shalt.err (!%p3745_p9)
}
0x5b6c   :  { %s3765_s16 = smov 128   ;;  %s3766_s17 = smov 8  }
0x5b6d   :  { %3009 = dma.vmem_to_hbm [thread:$0]  %s3004_s28, 256, %s4452_s12, [#allocation6], %s3765_s16, %s3765_s16, %s3766_s17  }
0x5b6e   :  { %3753 = dma.done.wait [#allocation6], 256  }
0x5b6f   :  { %3754 = vsyncadd [#allocation6], 4294967040 }
0x5b70   :  { %3013 = vsyncpa [#allocation5], 1 }
0x5b71   :  { %3014 = vsyncpa [#allocation8], 1 }
0x5b72   :  { %3015 = vsyncpa [#allocation6], 1 }

</bundles_post_ra>
